<compile_context>
chip_gen: v6e
topology: v6e:2x2x1
jax: 0.10.0
libtpu: 0.0.40
codegen_flags: <defaults>
</compile_context>

<pallas_src>
import math

import jax
import jax.numpy as jnp
import numpy as np
from jax.experimental import pallas as pl
from jax.experimental.pallas import tpu as pltpu


# ----------------------------------------------------------------------------
# Pallas kernel: one fused conv-as-matmul + bias + ReLU
# ----------------------------------------------------------------------------
def matmul_bias_relu_kernel(p_ref, w_ref, b_ref, o_ref):
    # p_ref: (1, TM, K)   bf16 im2col patches tile (K = taps * Cin)
    # w_ref: (K, Cp)      bf16 weights, BN scale already folded in
    # b_ref: (1, Cp)      f32 folded BN bias
    # o_ref: (1, TM, Cp)  f32 output tile (Cp is a multiple of 128)
    acc = jnp.dot(p_ref[0], w_ref[...], preferred_element_type=jnp.float32)
    y = jnp.maximum(acc + b_ref[...], 0.0)
    o_ref[...] = y[None].astype(o_ref.dtype)


def _pick_tm(M):
    """Spatial tile size: divisible by 8, >=2 tiles when possible."""
    for tm in (512, 256, 128):
        if M % tm == 0 and M // tm >= 2:
            return tm
    return M  # whole image (block dim == full dim is always legal)


def fused_conv(patches_bf16, w_bf16, bias_f32):
    """(N, M, K) bf16 patches @ (K, Cp) bf16 weights -> (N, M, Cp) f32."""
    N, M, K = patches_bf16.shape
    Cp = w_bf16.shape[1]
    TM = _pick_tm(M)
    return pl.pallas_call(
        matmul_bias_relu_kernel,
        out_shape=jax.ShapeDtypeStruct((N, M, Cp), jnp.float32),
        grid=(N, M // TM),
        in_specs=[
            pl.BlockSpec((1, TM, K), lambda n, m: (n, m, 0)),
            pl.BlockSpec((K, Cp), lambda n, m: (0, 0)),
            pl.BlockSpec((1, Cp), lambda n, m: (0, 0)),
        ],
        out_specs=pl.BlockSpec((1, TM, Cp), lambda n, m: (n, m, 0)),
        compiler_params=pltpu.CompilerParams(
            dimension_semantics=("parallel", "parallel"),
            vmem_limit_bytes=32 * 1024 * 1024,
        ),
    )(patches_bf16, w_bf16, bias_f32)


# ----------------------------------------------------------------------------
# Plain-JAX glue
# ----------------------------------------------------------------------------
def _im2col(x_nhwc, ksize, pad):
    """(N,H,W,C) -> (N, H*W, ksize*ksize*C); tap order row-major (kh, kw), C fastest."""
    N, H, W, C = x_nhwc.shape
    xp = jnp.pad(x_nhwc, ((0, 0), (pad, pad), (pad, pad), (0, 0)))
    taps = [xp[:, i:i + H, j:j + W, :] for i in range(ksize) for j in range(ksize)]
    return jnp.concatenate(taps, axis=-1).reshape(N, H * W, ksize * ksize * C)


def inception_a_forward(x_nchw, prep):
    pf = prep["pool_features"]
    x = jnp.transpose(x_nchw, (0, 2, 3, 1))  # NCHW -> NHWC
    N, H, W, Cin = x.shape
    M = H * W

    # ---- Stage 1: fused stem (three 1x1 branches + avgpool3x3∘1x1) ----------
    sw, sb, _ = prep["stem"]
    stem = fused_conv(_im2col(x, 3, 1).astype(jnp.bfloat16), sw, sb)  # (N, M, 256)
    b1 = stem[..., 0:64]
    b5 = stem[..., 64:112]            # branch5x5_1 output (48 ch)
    b3 = stem[..., 112:176]           # branch3x3dbl_1 output (64 ch)
    bp = stem[..., 176:176 + pf]      # pooled + branch_pool output

    def conv(x_flat, cin, name, ksize, pad):
        w, b, cout = prep[name]
        xi = x_flat.reshape(N, H, W, cin)
        patches = _im2col(xi, ksize, pad).astype(jnp.bfloat16)
        return fused_conv(patches, w, b)[..., :cout]

    # ---- Stage 2 / 3: remaining convs, one big matmul each ------------------
    b5 = conv(b5, 48, "branch5x5_2", 5, 2)        # 48 -> 64
    b3 = conv(b3, 64, "branch3x3dbl_2", 3, 1)     # 64 -> 96
    b3 = conv(b3, 96, "branch3x3dbl_3", 3, 1)     # 96 -> 96

    out = jnp.concatenate([b1, b5, b3, bp], axis=-1)    # channel order == torch.cat dim=1
    out = out.reshape(N, H, W, -1)
    return jnp.transpose(out, (0, 3, 1, 2))             # -> NCHW


# ----------------------------------------------------------------------------
# Deterministic parameters (conv weight + inference-mode BN folded to scale/bias)
# ----------------------------------------------------------------------------
def _make_basic_conv(key, in_ch, out_ch, ksize):
    kw_, kg, kb, km, kv = jax.random.split(key, 5)
    fan_in = in_ch * ksize * ksize
    w = jax.random.normal(kw_, (out_ch, in_ch, ksize, ksize), jnp.float32) / math.sqrt(fan_in)
    gamma = 1.0 + 0.1 * jax.random.normal(kg, (out_ch,), jnp.float32)
    beta = 0.1 * jax.random.normal(kb, (out_ch,), jnp.float32)
    r_mean = 0.1 * jax.random.normal(km, (out_ch,), jnp.float32)
    r_var = 0.5 + 0.5 * jnp.abs(jax.random.normal(kv, (out_ch,), jnp.float32))
    eps = 0.001
    scale = gamma / jnp.sqrt(r_var + eps)
    bias = beta - r_mean * scale
    return {"w": w, "scale": scale, "bias": bias}


def make_inception_a_params(key, in_channels, pool_features):
    ks = jax.random.split(key, 7)
    return {
        "branch1x1": _make_basic_conv(ks[0], in_channels, 64, 1),
        "branch5x5_1": _make_basic_conv(ks[1], in_channels, 48, 1),
        "branch5x5_2": _make_basic_conv(ks[2], 48, 64, 5),
        "branch3x3dbl_1": _make_basic_conv(ks[3], in_channels, 64, 1),
        "branch3x3dbl_2": _make_basic_conv(ks[4], 64, 96, 3),
        "branch3x3dbl_3": _make_basic_conv(ks[5], 96, 96, 3),
        "branch_pool": _make_basic_conv(ks[6], in_channels, pool_features, 1),
    }


def _round_up(n, m):
    return ((n + m - 1) // m) * m


def _pad_cols(W, b, mult=128):
    """Pad Cout to a multiple of 128 (lane-dense stores); cast W to bf16."""
    cout = W.shape[1]
    cp = max(mult, _round_up(cout, mult))
    W = jnp.pad(W, ((0, 0), (0, cp - cout))).astype(jnp.bfloat16)
    b = jnp.pad(b, (0, cp - cout))[None, :].astype(jnp.float32)
    return W, b, cout


def _conv_to_matmul(p):
    """(Cout,Cin,KH,KW) conv weight (+ folded BN scale) -> (KH*KW*Cin, Cout)."""
    w, scale = p["w"], p["scale"]
    cout, cin, kh, kw = w.shape
    wm = jnp.transpose(w, (2, 3, 1, 0)).reshape(kh * kw * cin, cout)
    return wm * scale[None, :]


def prepare_params(params, in_channels, pool_features):
    """Build kernel-ready bf16 matmul weights with BN folded in."""
    K = 9 * in_channels
    center = 4 * in_channels  # tap (1,1) of the 3x3 window

    def center_tap(p):  # 1x1 conv expressed over 3x3 taps (only center non-zero)
        wm = p["w"][:, :, 0, 0].T * p["scale"][None, :]          # (Cin, Cout)
        return jnp.zeros((K, wm.shape[1]), jnp.float32).at[
            center:center + in_channels, :].set(wm)

    pp = params["branch_pool"]
    # avgpool3x3 (count_include_pad) + 1x1 conv == 3x3 conv with weight w/9 at every tap
    pool_w = jnp.tile(pp["w"][:, :, 0, 0].T * pp["scale"][None, :] / 9.0, (9, 1))

    stem_w = jnp.concatenate(
        [center_tap(params["branch1x1"]),
         center_tap(params["branch5x5_1"]),
         center_tap(params["branch3x3dbl_1"]),
         pool_w], axis=1)
    stem_b = jnp.concatenate(
        [params["branch1x1"]["bias"], params["branch5x5_1"]["bias"],
         params["branch3x3dbl_1"]["bias"], pp["bias"]])

    prep = {"pool_features": pool_features, "stem": _pad_cols(stem_w, stem_b)}
    for name in ("branch5x5_2", "branch3x3dbl_2", "branch3x3dbl_3"):
        p = params[name]
        prep[name] = _pad_cols(_conv_to_matmul(p), p["bias"])
    return prep


# ----------------------------------------------------------------------------
# Pure-JAX f32 reference (verification only)
# ----------------------------------------------------------------------------
def _ref_conv_bn_relu(x_nhwc, p, pad):
    w_hwio = jnp.transpose(p["w"], (2, 3, 1, 0))
    y = jax.lax.conv_general_dilated(
        x_nhwc, w_hwio, (1, 1), [(pad, pad), (pad, pad)],
        dimension_numbers=("NHWC", "HWIO", "NHWC"))
    return jnp.maximum(y * p["scale"] + p["bias"], 0.0)


def ref_forward(x_nchw, params):
    x = jnp.transpose(x_nchw, (0, 2, 3, 1))
    b1 = _ref_conv_bn_relu(x, params["branch1x1"], 0)
    b5 = _ref_conv_bn_relu(x, params["branch5x5_1"], 0)
    b5 = _ref_conv_bn_relu(b5, params["branch5x5_2"], 2)
    b3 = _ref_conv_bn_relu(x, params["branch3x3dbl_1"], 0)
    b3 = _ref_conv_bn_relu(b3, params["branch3x3dbl_2"], 1)
    b3 = _ref_conv_bn_relu(b3, params["branch3x3dbl_3"], 1)
    pooled = jax.lax.reduce_window(
        x, 0.0, jax.lax.add, (1, 3, 3, 1), (1, 1, 1, 1),
        [(0, 0), (1, 1), (1, 1), (0, 0)]) / 9.0
    bp = _ref_conv_bn_relu(pooled, params["branch_pool"], 0)
    out = jnp.concatenate([b1, b5, b3, bp], axis=-1)
    return jnp.transpose(out, (0, 3, 1, 2))


# ----------------------------------------------------------------------------
if __name__ == "__main__":
    key = jax.random.PRNGKey(0)
    kx, kp = jax.random.split(key)

    N, Cin, H, W = 2, 4, 16, 16
    pool_features = 8

    x = jax.random.normal(kx, (N, Cin, H, W), jnp.float32)
    params = make_inception_a_params(kp, Cin, pool_features)
    prep = prepare_params(params, Cin, pool_features)

    fwd = jax.jit(lambda inp: inception_a_forward(inp, prep))
    out = jax.block_until_ready(fwd(x))

    expected_channels = 64 + 64 + 96 + pool_features  # 232
    assert out.shape == (N, expected_channels, H, W), out.shape

    ref = jax.block_until_ready(jax.jit(lambda inp: ref_forward(inp, params))(x))
    # bf16 matmul inputs with f32 accumulation -> slightly relaxed tolerance
    np.testing.assert_allclose(np.asarray(out), np.asarray(ref), rtol=3e-2, atol=3e-2)

    print("KERNEL_OK")
</pallas_src>

<mosaic_0001>
module attributes {stable_mosaic.version = 11 : i64} {
  func.func @matmul_bias_relu_kernel(%arg0: i32, %arg1: i32, %arg2: memref<1x128x36xbf16, #tpu.memory_space<vmem>>, %arg3: memref<36x256xbf16, #tpu.memory_space<vmem>>, %arg4: memref<1x256xf32, #tpu.memory_space<vmem>>, %arg5: memref<1x128x256xf32, #tpu.memory_space<vmem>>) attributes {dimension_semantics = [#tpu.dimension_semantics<parallel>, #tpu.dimension_semantics<parallel>], iteration_bounds = array<i64: 2, 2>, scalar_prefetch = 0 : i64, scratch_operands = 0 : i64, tpu.core_type = #tpu.core_type<tc>, window_params = [{transform_indices = @transform_0, window_bounds = array<i64: 1, 128, 36>}, {pipeline_mode = #tpu.pipeline_mode<synchronous>, transform_indices = @transform_1, window_bounds = array<i64: 36, 256>}, {pipeline_mode = #tpu.pipeline_mode<synchronous>, transform_indices = @transform_2, window_bounds = array<i64: 1, 256>}, {transform_indices = @transform_3, window_bounds = array<i64: 1, 128, 256>}]} {
    %c0 = arith.constant 0 : index
    %c0_0 = arith.constant 0 : index
    %c0_1 = arith.constant 0 : index
    %0 = vector.load %arg2[%c0, %c0_0, %c0_1] : memref<1x128x36xbf16, #tpu.memory_space<vmem>>, vector<1x128x36xbf16>
    %1 = vector.shape_cast %0 : vector<1x128x36xbf16> to vector<128x36xbf16>
    %c0_2 = arith.constant 0 : index
    %c0_3 = arith.constant 0 : index
    %2 = vector.load %arg3[%c0_2, %c0_3] : memref<36x256xbf16, #tpu.memory_space<vmem>>, vector<36x256xbf16>
    %cst = arith.constant dense<0.000000e+00> : vector<128x256xf32>
    %3 = tpu.matmul %1, %2, %cst {dimension_numbers = #tpu.dot_dimension_numbers<[1], [0], [0], [1], [0, 0, 1, 1], [], []>} : vector<128x36xbf16>, vector<36x256xbf16>, vector<128x256xf32> -> vector<128x256xf32>
    %c0_4 = arith.constant 0 : index
    %c0_5 = arith.constant 0 : index
    %4 = vector.load %arg4[%c0_4, %c0_5] : memref<1x256xf32, #tpu.memory_space<vmem>>, vector<1x256xf32>
    %5 = vector.broadcast %4 : vector<1x256xf32> to vector<128x256xf32>
    %6 = arith.addf %3, %5 : vector<128x256xf32>
    %cst_6 = arith.constant 0.000000e+00 : f32
    %7 = vector.broadcast %cst_6 : f32 to vector<128x256xf32>
    %8 = arith.maximumf %6, %7 : vector<128x256xf32>
    %9 = vector.shape_cast %8 : vector<128x256xf32> to vector<1x128x256xf32>
    %c0_7 = arith.constant 0 : index
    %c0_8 = arith.constant 0 : index
    %c0_9 = arith.constant 0 : index
    %10 = vector.load %arg5[%c0_7, %c0_8, %c0_9] : memref<1x128x256xf32, #tpu.memory_space<vmem>>, vector<1x128x256xf32>
    tpu.vector_store %arg5[%c0_7, %c0_8, %c0_9], %9 {strides = array<i32>} : memref<1x128x256xf32, #tpu.memory_space<vmem>>, vector<1x128x256xf32>,
    return
  }
  func.func @transform_0(%arg0: i32, %arg1: i32) -> (i32, i32, i32) {
    %c0_i32 = arith.constant 0 : i32
    %c0_i32_0 = arith.constant 0 : i32
    return %arg0, %arg1, %c0_i32 : i32, i32, i32
  }
  func.func @transform_1(%arg0: i32, %arg1: i32) -> (i32, i32) {
    %c0_i32 = arith.constant 0 : i32
    %c0_i32_0 = arith.constant 0 : i32
    %c0_i32_1 = arith.constant 0 : i32
    return %c0_i32, %c0_i32_0 : i32, i32
  }
  func.func @transform_2(%arg0: i32, %arg1: i32) -> (i32, i32) {
    %c0_i32 = arith.constant 0 : i32
    %c0_i32_0 = arith.constant 0 : i32
    %c0_i32_1 = arith.constant 0 : i32
    return %c0_i32, %c0_i32_0 : i32, i32
  }
  func.func @transform_3(%arg0: i32, %arg1: i32) -> (i32, i32, i32) {
    %c0_i32 = arith.constant 0 : i32
    %c0_i32_0 = arith.constant 0 : i32
    return %arg0, %arg1, %c0_i32 : i32, i32, i32
  }
}

module attributes {stable_mosaic.version = 11 : i64} {
  func.func @matmul_bias_relu_kernel(%arg0: i32, %arg1: i32, %arg2: memref<1x128x1200xbf16, #tpu.memory_space<vmem>>, %arg3: memref<1200x128xbf16, #tpu.memory_space<vmem>>, %arg4: memref<1x128xf32, #tpu.memory_space<vmem>>, %arg5: memref<1x128x128xf32, #tpu.memory_space<vmem>>) attributes {dimension_semantics = [#tpu.dimension_semantics<parallel>, #tpu.dimension_semantics<parallel>], iteration_bounds = array<i64: 2, 2>, scalar_prefetch = 0 : i64, scratch_operands = 0 : i64, tpu.core_type = #tpu.core_type<tc>, window_params = [{transform_indices = @transform_0, window_bounds = array<i64: 1, 128, 1200>}, {pipeline_mode = #tpu.pipeline_mode<synchronous>, transform_indices = @transform_1, window_bounds = array<i64: 1200, 128>}, {pipeline_mode = #tpu.pipeline_mode<synchronous>, transform_indices = @transform_2, window_bounds = array<i64: 1, 128>}, {transform_indices = @transform_3, window_bounds = array<i64: 1, 128, 128>}]} {
    %c0 = arith.constant 0 : index
    %c0_0 = arith.constant 0 : index
    %c0_1 = arith.constant 0 : index
    %0 = vector.load %arg2[%c0, %c0_0, %c0_1] : memref<1x128x1200xbf16, #tpu.memory_space<vmem>>, vector<1x128x1200xbf16>
    %1 = vector.shape_cast %0 : vector<1x128x1200xbf16> to vector<128x1200xbf16>
    %c0_2 = arith.constant 0 : index
    %c0_3 = arith.constant 0 : index
    %2 = vector.load %arg3[%c0_2, %c0_3] : memref<1200x128xbf16, #tpu.memory_space<vmem>>, vector<1200x128xbf16>
    %cst = arith.constant dense<0.000000e+00> : vector<128x128xf32>
    %3 = tpu.matmul %1, %2, %cst {dimension_numbers = #tpu.dot_dimension_numbers<[1], [0], [0], [1], [0, 0, 1, 1], [], []>} : vector<128x1200xbf16>, vector<1200x128xbf16>, vector<128x128xf32> -> vector<128x128xf32>
    %c0_4 = arith.constant 0 : index
    %c0_5 = arith.constant 0 : index
    %4 = vector.load %arg4[%c0_4, %c0_5] : memref<1x128xf32, #tpu.memory_space<vmem>>, vector<1x128xf32>
    %5 = vector.broadcast %4 : vector<1x128xf32> to vector<128x128xf32>
    %6 = arith.addf %3, %5 : vector<128x128xf32>
    %cst_6 = arith.constant 0.000000e+00 : f32
    %7 = vector.broadcast %cst_6 : f32 to vector<128x128xf32>
    %8 = arith.maximumf %6, %7 : vector<128x128xf32>
    %9 = vector.shape_cast %8 : vector<128x128xf32> to vector<1x128x128xf32>
    %c0_7 = arith.constant 0 : index
    %c0_8 = arith.constant 0 : index
    %c0_9 = arith.constant 0 : index
    %10 = vector.load %arg5[%c0_7, %c0_8, %c0_9] : memref<1x128x128xf32, #tpu.memory_space<vmem>>, vector<1x128x128xf32>
    tpu.vector_store %arg5[%c0_7, %c0_8, %c0_9], %9 {strides = array<i32>} : memref<1x128x128xf32, #tpu.memory_space<vmem>>, vector<1x128x128xf32>,
    return
  }
  func.func @transform_0(%arg0: i32, %arg1: i32) -> (i32, i32, i32) {
    %c0_i32 = arith.constant 0 : i32
    %c0_i32_0 = arith.constant 0 : i32
    return %arg0, %arg1, %c0_i32 : i32, i32, i32
  }
  func.func @transform_1(%arg0: i32, %arg1: i32) -> (i32, i32) {
    %c0_i32 = arith.constant 0 : i32
    %c0_i32_0 = arith.constant 0 : i32
    %c0_i32_1 = arith.constant 0 : i32
    return %c0_i32, %c0_i32_0 : i32, i32
  }
  func.func @transform_2(%arg0: i32, %arg1: i32) -> (i32, i32) {
    %c0_i32 = arith.constant 0 : i32
    %c0_i32_0 = arith.constant 0 : i32
    %c0_i32_1 = arith.constant 0 : i32
    return %c0_i32, %c0_i32_0 : i32, i32
  }
  func.func @transform_3(%arg0: i32, %arg1: i32) -> (i32, i32, i32) {
    %c0_i32 = arith.constant 0 : i32
    %c0_i32_0 = arith.constant 0 : i32
    return %arg0, %arg1, %c0_i32 : i32, i32, i32
  }
}

module attributes {stable_mosaic.version = 11 : i64} {
  func.func @matmul_bias_relu_kernel(%arg0: i32, %arg1: i32, %arg2: memref<1x128x576xbf16, #tpu.memory_space<vmem>>, %arg3: memref<576x128xbf16, #tpu.memory_space<vmem>>, %arg4: memref<1x128xf32, #tpu.memory_space<vmem>>, %arg5: memref<1x128x128xf32, #tpu.memory_space<vmem>>) attributes {dimension_semantics = [#tpu.dimension_semantics<parallel>, #tpu.dimension_semantics<parallel>], iteration_bounds = array<i64: 2, 2>, scalar_prefetch = 0 : i64, scratch_operands = 0 : i64, tpu.core_type = #tpu.core_type<tc>, window_params = [{transform_indices = @transform_0, window_bounds = array<i64: 1, 128, 576>}, {pipeline_mode = #tpu.pipeline_mode<synchronous>, transform_indices = @transform_1, window_bounds = array<i64: 576, 128>}, {pipeline_mode = #tpu.pipeline_mode<synchronous>, transform_indices = @transform_2, window_bounds = array<i64: 1, 128>}, {transform_indices = @transform_3, window_bounds = array<i64: 1, 128, 128>}]} {
    %c0 = arith.constant 0 : index
    %c0_0 = arith.constant 0 : index
    %c0_1 = arith.constant 0 : index
    %0 = vector.load %arg2[%c0, %c0_0, %c0_1] : memref<1x128x576xbf16, #tpu.memory_space<vmem>>, vector<1x128x576xbf16>
    %1 = vector.shape_cast %0 : vector<1x128x576xbf16> to vector<128x576xbf16>
    %c0_2 = arith.constant 0 : index
    %c0_3 = arith.constant 0 : index
    %2 = vector.load %arg3[%c0_2, %c0_3] : memref<576x128xbf16, #tpu.memory_space<vmem>>, vector<576x128xbf16>
    %cst = arith.constant dense<0.000000e+00> : vector<128x128xf32>
    %3 = tpu.matmul %1, %2, %cst {dimension_numbers = #tpu.dot_dimension_numbers<[1], [0], [0], [1], [0, 0, 1, 1], [], []>} : vector<128x576xbf16>, vector<576x128xbf16>, vector<128x128xf32> -> vector<128x128xf32>
    %c0_4 = arith.constant 0 : index
    %c0_5 = arith.constant 0 : index
    %4 = vector.load %arg4[%c0_4, %c0_5] : memref<1x128xf32, #tpu.memory_space<vmem>>, vector<1x128xf32>
    %5 = vector.broadcast %4 : vector<1x128xf32> to vector<128x128xf32>
    %6 = arith.addf %3, %5 : vector<128x128xf32>
    %cst_6 = arith.constant 0.000000e+00 : f32
    %7 = vector.broadcast %cst_6 : f32 to vector<128x128xf32>
    %8 = arith.maximumf %6, %7 : vector<128x128xf32>
    %9 = vector.shape_cast %8 : vector<128x128xf32> to vector<1x128x128xf32>
    %c0_7 = arith.constant 0 : index
    %c0_8 = arith.constant 0 : index
    %c0_9 = arith.constant 0 : index
    %10 = vector.load %arg5[%c0_7, %c0_8, %c0_9] : memref<1x128x128xf32, #tpu.memory_space<vmem>>, vector<1x128x128xf32>
    tpu.vector_store %arg5[%c0_7, %c0_8, %c0_9], %9 {strides = array<i32>} : memref<1x128x128xf32, #tpu.memory_space<vmem>>, vector<1x128x128xf32>,
    return
  }
  func.func @transform_0(%arg0: i32, %arg1: i32) -> (i32, i32, i32) {
    %c0_i32 = arith.constant 0 : i32
    %c0_i32_0 = arith.constant 0 : i32
    return %arg0, %arg1, %c0_i32 : i32, i32, i32
  }
  func.func @transform_1(%arg0: i32, %arg1: i32) -> (i32, i32) {
    %c0_i32 = arith.constant 0 : i32
    %c0_i32_0 = arith.constant 0 : i32
    %c0_i32_1 = arith.constant 0 : i32
    return %c0_i32, %c0_i32_0 : i32, i32
  }
  func.func @transform_2(%arg0: i32, %arg1: i32) -> (i32, i32) {
    %c0_i32 = arith.constant 0 : i32
    %c0_i32_0 = arith.constant 0 : i32
    %c0_i32_1 = arith.constant 0 : i32
    return %c0_i32, %c0_i32_0 : i32, i32
  }
  func.func @transform_3(%arg0: i32, %arg1: i32) -> (i32, i32, i32) {
    %c0_i32 = arith.constant 0 : i32
    %c0_i32_0 = arith.constant 0 : i32
    return %arg0, %arg1, %c0_i32 : i32, i32, i32
  }
}

module attributes {stable_mosaic.version = 11 : i64} {
  func.func @matmul_bias_relu_kernel(%arg0: i32, %arg1: i32, %arg2: memref<1x128x864xbf16, #tpu.memory_space<vmem>>, %arg3: memref<864x128xbf16, #tpu.memory_space<vmem>>, %arg4: memref<1x128xf32, #tpu.memory_space<vmem>>, %arg5: memref<1x128x128xf32, #tpu.memory_space<vmem>>) attributes {dimension_semantics = [#tpu.dimension_semantics<parallel>, #tpu.dimension_semantics<parallel>], iteration_bounds = array<i64: 2, 2>, scalar_prefetch = 0 : i64, scratch_operands = 0 : i64, tpu.core_type = #tpu.core_type<tc>, window_params = [{transform_indices = @transform_0, window_bounds = array<i64: 1, 128, 864>}, {pipeline_mode = #tpu.pipeline_mode<synchronous>, transform_indices = @transform_1, window_bounds = array<i64: 864, 128>}, {pipeline_mode = #tpu.pipeline_mode<synchronous>, transform_indices = @transform_2, window_bounds = array<i64: 1, 128>}, {transform_indices = @transform_3, window_bounds = array<i64: 1, 128, 128>}]} {
    %c0 = arith.constant 0 : index
    %c0_0 = arith.constant 0 : index
    %c0_1 = arith.constant 0 : index
    %0 = vector.load %arg2[%c0, %c0_0, %c0_1] : memref<1x128x864xbf16, #tpu.memory_space<vmem>>, vector<1x128x864xbf16>
    %1 = vector.shape_cast %0 : vector<1x128x864xbf16> to vector<128x864xbf16>
    %c0_2 = arith.constant 0 : index
    %c0_3 = arith.constant 0 : index
    %2 = vector.load %arg3[%c0_2, %c0_3] : memref<864x128xbf16, #tpu.memory_space<vmem>>, vector<864x128xbf16>
    %cst = arith.constant dense<0.000000e+00> : vector<128x128xf32>
    %3 = tpu.matmul %1, %2, %cst {dimension_numbers = #tpu.dot_dimension_numbers<[1], [0], [0], [1], [0, 0, 1, 1], [], []>} : vector<128x864xbf16>, vector<864x128xbf16>, vector<128x128xf32> -> vector<128x128xf32>
    %c0_4 = arith.constant 0 : index
    %c0_5 = arith.constant 0 : index
    %4 = vector.load %arg4[%c0_4, %c0_5] : memref<1x128xf32, #tpu.memory_space<vmem>>, vector<1x128xf32>
    %5 = vector.broadcast %4 : vector<1x128xf32> to vector<128x128xf32>
    %6 = arith.addf %3, %5 : vector<128x128xf32>
    %cst_6 = arith.constant 0.000000e+00 : f32
    %7 = vector.broadcast %cst_6 : f32 to vector<128x128xf32>
    %8 = arith.maximumf %6, %7 : vector<128x128xf32>
    %9 = vector.shape_cast %8 : vector<128x128xf32> to vector<1x128x128xf32>
    %c0_7 = arith.constant 0 : index
    %c0_8 = arith.constant 0 : index
    %c0_9 = arith.constant 0 : index
    %10 = vector.load %arg5[%c0_7, %c0_8, %c0_9] : memref<1x128x128xf32, #tpu.memory_space<vmem>>, vector<1x128x128xf32>
    tpu.vector_store %arg5[%c0_7, %c0_8, %c0_9], %9 {strides = array<i32>} : memref<1x128x128xf32, #tpu.memory_space<vmem>>, vector<1x128x128xf32>,
    return
  }
  func.func @transform_0(%arg0: i32, %arg1: i32) -> (i32, i32, i32) {
    %c0_i32 = arith.constant 0 : i32
    %c0_i32_0 = arith.constant 0 : i32
    return %arg0, %arg1, %c0_i32 : i32, i32, i32
  }
  func.func @transform_1(%arg0: i32, %arg1: i32) -> (i32, i32) {
    %c0_i32 = arith.constant 0 : i32
    %c0_i32_0 = arith.constant 0 : i32
    %c0_i32_1 = arith.constant 0 : i32
    return %c0_i32, %c0_i32_0 : i32, i32
  }
  func.func @transform_2(%arg0: i32, %arg1: i32) -> (i32, i32) {
    %c0_i32 = arith.constant 0 : i32
    %c0_i32_0 = arith.constant 0 : i32
    %c0_i32_1 = arith.constant 0 : i32
    return %c0_i32, %c0_i32_0 : i32, i32
  }
  func.func @transform_3(%arg0: i32, %arg1: i32) -> (i32, i32, i32) {
    %c0_i32 = arith.constant 0 : i32
    %c0_i32_0 = arith.constant 0 : i32
    return %arg0, %arg1, %c0_i32 : i32, i32, i32
  }
}

</mosaic_0001>

<bundles_post_ra>
// kernel: _lambda_.4
= control target key start
LH: loop header
LB: loop body
LE: loop exit
PB: predicated region body
PF: predicated region fallthrough
CT: control target
= control target key end

     0   :  { %s777_s12 = smov 0   ;;  %s779_s13 = smov 0   ;;  %s934_s0 = inlined_call_operand.vmem [shape: bf16[2,256,36], index: 0, kind: input, shape index: {}]   ;;  %s935_s1 = inlined_call_operand.vmem [shape: bf16[36,256], index: 1, kind: input, shape index: {}]   ;;  %s936_s2 = inlined_call_operand.vmem [shape: f32[1,256], index: 2, kind: input, shape index: {}]   ;;  %s937_s3 = inlined_call_operand.vmem [shape: f32[2,256,256], index: 3, kind: output, shape index: {}]  }
   0x1   :  { %s781_s14 = smov 0   ;;  %s783_s15 = smov 0  }
   0x2   :  { %s785_s16 = smov 0  }
   0x3 LB: > { %s22_s17 = sadd.s32 1, %s746_s14  ;;  %s25_s18 = sadd.s32 1, %s750_s15  ;;  %s754_s16 = sphi %s785_s16, %s13_s16   ;;  %s750_s15 = sphi %s783_s15, %s941_s15   ;;  %s746_s14 = sphi %s781_s14, %s940_s14   ;;  %s742_s13 = sphi %s779_s13, %s939_s13   ;;  %s738_s12 = sphi %s777_s12, %s938_s12  }
   0x4   : > { %p23_p0 = scmp.ge.s32.totalorder %s22_s17, 2  ;;  %p620_p1 = scmp.ge.s32.totalorder %s754_s16, 1 }
   0x5   : > { %p158_p2 = scmp.lt.s32.totalorder %s754_s16, 5 }
   0x6   : > { %s943_s17 = smov (%p23_p0, %s22_s17), 0  ;;  %s945_s18 = smov (!%p23_p0, %s25_s18), %s750_s15 }
   0x7   : > { %p159_p3 = pnand %p620_p1, %p158_p2  ;;  %p27_p4 = scmp.ge.s32.totalorder %s945_s18, 2 }
   0x8   : > { %s621_s23 = sshll.u32 (!%p159_p3), %s738_s12, 4  ;;  %p192_p5 = scmp.lt.s32.totalorder (!%p159_p3), %s742_s13, 1 }
   0x9   : > { %s947_s18 = smov (%p27_p4, %s945_s18), 0  ;;  %162 = sbr.rel (%p159_p3) target bundleno = 257 (0x101), region = 32 }
   0xa   : > { %p194_p6 = scmp.lt.s32.totalorder (!%p159_p3), %s621_s23, 31 }
   0xe   : > { %v233_v0 = vld [vmem:[%s935_s1 + $0x20] sm:$0x33]  ;;  %vm336_vm0 = vcmask 1041408   ;;  %v702_v3 = vld [vmem:[%s935_s1 + $0x14] ss:$8 sps:$4 sm:$0xff]   ;;  %v756_v4 = vmov 0   ;;  %v236_v17 = vlaneseq }
   0xf   : > { %v641_v1 = vcombine.high %v233_v0, %v233_v0  ;;  %v640_v2 = vcombine.low %v233_v0, %v233_v0  ;;  %375 = vmatprep.mubr.bf16.mxu0 %v756_v4  ;;  %415 = vmatprep.mubr.bf16.mxu1 %v756_v4  ;;  %v704_v6 = vld [vmem:[%s935_s1 + $0x10] ss:$8 sps:$4 sm:$0xff]   ;;  %s949_s13 = smov (!%p192_p5, %s742_s13), 1  ;;  %v705_v7 = vld [vmem:[%s935_s1 + $0x4] ss:$8 sps:$4 sm:$0xff]   ;;  %s951_s23 = smov (!%p194_p6, %s621_s23), 31 }
  0x10   : > { %s622_s28 = sshll.u32 %s949_s13, 5  ;;  %s626_s29 = sshll.u32 %s949_s13, 6  ;;  %v707_v8 = vld [vmem:[%s935_s1] ss:$8 sps:$4 sm:$0xff]   ;;  %vm311_vm1 = vcmask 293888   ;;  %v237_v18 = vshrl.u32 %v236_v17, 7 }
  0x11   : > { %642 = vmatprep.subr.msk.bf16.mxu0 %vm336_vm0, %v641_v1  ;;  %653 = vmatprep.subr.msk.bf16.mxu1 %vm336_vm0, %v641_v1  ;;  %v338_v5 = vsel %vm336_vm0, %v640_v2, 0  ;;  %s197_s30 = sadd.s32 %s622_s28, %s951_s23  ;;  %s625_s4 = sshll.u32 %s951_s23, 1  ;;  %v234_v20 = vld [vmem:[%s936_s2] sm:$0x3] }
  0x12   : > { %354 = vmatpush1.bf16.msra.mxu0 %v338_v5  ;;  %656 = vmatpush1.bf16.msra.mxu1 %v338_v5  ;;  %s623_s7 = sshll.u32 %s197_s30, 2  ;;  %s829_s8 = sadd.s32 %s626_s29, %s625_s4  ;;  %v238_v19 = vsub.s32 0, %v237_v18  ;;  %v242_v21 = vsub.s32 1, %v237_v18 }
  0x13   : > { %355 = vmatprep.subr.bf16.mxu0 %v702_v3  ;;  %654 = vmatprep.subr.bf16.mxu1 %v702_v3  ;;  %s199_s11 = scalar_lea.vmem %s934_s0, %s623_s7  ;;  %s627_s19 = sshll.u32 %s829_s8, 3 }
  0x14   : > { %v708_v9 = vld [vmem:[%s199_s11] sm:$0xff]   ;;  %v710_v11 = vld [vmem:[%s199_s11 + $0x8] sm:$0xff]   ;;  %v712_v13 = vld [vmem:[%s199_s11 + $0x10] sm:$0xff]   ;;  %v845_v22 = vrot.slane %v234_v20, %v238_v19  ;;  %v848_v23 = vrot.slane %v234_v20, %v242_v21  ;;  %s855_s22 = scalar_lea.vmem %s937_s3, %s627_s19 }
  0x15   : > { %v709_v10 = vld [vmem:[%s199_s11 + $0x20] sm:$0xff]   ;;  %v711_v12 = vld [vmem:[%s199_s11 + $0x28] sm:$0xff]   ;;  %v713_v14 = vld [vmem:[%s199_s11 + $0x30] sm:$0xff]  }
  0x16   : > { %356 = vmatpush1.bf16.msra.mxu0 %v704_v6  ;;  %657 = vmatpush1.bf16.msra.mxu1 %v704_v6  ;;  %v714_v15 = vld [vmem:[%s199_s11 + $0x18] sm:$0xff]  }
  0x17   : > { %357 = vmatprep.subr.bf16.mxu0 %v705_v7  ;;  %655 = vmatprep.subr.bf16.mxu1 %v705_v7  ;;  %v715_v16 = vld [vmem:[%s199_s11 + $0x38] sm:$0xff]  }
  0x1a   : > { %358 = vmatpush1.bf16.msra.mxu0 %v707_v8  ;;  %658 = vmatpush1.bf16.msra.mxu1 %v707_v8 }
  0x1d   : > { %643 = vmatmul.mubr.msk.bf16.vlgmr.msra.gmra.mxu0 %vm311_vm1, %v708_v9  ;;  %647 = vmatmul.mubr.msk.bf16.vlgmr.msra.gmra.mxu1 %vm311_vm1, %v709_v10 }
  0x1e   : > { %385 = vmatprep.mubr.bf16.mxu0 %v756_v4  ;;  %425 = vmatprep.mubr.bf16.mxu1 %v756_v4 }
  0x25   : > { %644 = vmatmul.mubr.msk.bf16.gmra.mxu0 %vm311_vm1, %v710_v11  ;;  %648 = vmatmul.mubr.msk.bf16.gmra.mxu1 %vm311_vm1, %v711_v12 }
  0x26   : > { %395 = vmatprep.mubr.bf16.mxu0 %v756_v4  ;;  %435 = vmatprep.mubr.bf16.mxu1 %v756_v4 }
  0x2d   : > { %645 = vmatmul.mubr.msk.bf16.gmra.mxu0 %vm311_vm1, %v712_v13  ;;  %649 = vmatmul.mubr.msk.bf16.gmra.mxu1 %vm311_vm1, %v713_v14 }
  0x2e   : > { %405 = vmatprep.mubr.bf16.mxu0 %v756_v4  ;;  %445 = vmatprep.mubr.bf16.mxu1 %v756_v4 }
  0x35   : > { %646 = vmatmul.mubr.msk.bf16.gmra.mxu0 %vm311_vm1, %v714_v15  ;;  %650 = vmatmul.mubr.msk.bf16.gmra.mxu1 %vm311_vm1, %v715_v16 }
  0xdd   : > { %v377_v24 = vpop.f32.mrf.mxu0  ;;  %v417_v25 = vpop.f32.mrf.mxu1 }
  0xde   : > { %v378_v26 = vadd.f32 %v377_v24, %v845_v22  ;;  %v418_v27 = vadd.f32 %v417_v25, %v845_v22 }
  0xdf   : > { %v379_v28 = vpop.f32.mrf.mxu0  ;;  %v419_v29 = vpop.f32.mrf.mxu1 }
  0xe0   : > { %v456_v30 = vmax.f32 %v378_v26, 0.0  ;;  %v472_v31 = vmax.f32 %v418_v27, 0.0  ;;  %v380_v32 = vadd.f32 %v379_v28, %v848_v23  ;;  %v420_v33 = vadd.f32 %v419_v29, %v848_v23 }
  0xe1   : > { %v381_v34 = vpop.f32.mrf.mxu0  ;;  %v421_v35 = vpop.f32.mrf.mxu1 }
  0xe2   : > { %488 = vst [vmem:[%s855_s22] sm:$0xff] %v456_v30  ;;  %504 = vst [vmem:[%s855_s22 + $0x80] sm:$0xff] %v472_v31  ;;  %v457_v36 = vmax.f32 %v380_v32, 0.0  ;;  %v473_v37 = vmax.f32 %v420_v33, 0.0  ;;  %v382_v38 = vadd.f32 %v381_v34, %v845_v22  ;;  %v422_v39 = vadd.f32 %v421_v35, %v845_v22 }
  0xe3   : > { %v383_v40 = vpop.f32.mrf.mxu0  ;;  %v423_v41 = vpop.f32.mrf.mxu1 }
  0xe4   : > { %489 = vst [vmem:[%s855_s22 + $0x8] sm:$0xff] %v457_v36  ;;  %505 = vst [vmem:[%s855_s22 + $0x88] sm:$0xff] %v473_v37  ;;  %v458_v42 = vmax.f32 %v382_v38, 0.0  ;;  %v474_v43 = vmax.f32 %v422_v39, 0.0  ;;  %v384_v44 = vadd.f32 %v383_v40, %v848_v23  ;;  %v424_v45 = vadd.f32 %v423_v41, %v848_v23 }
  0xe5   : > { %v387_v46 = vpop.f32.mrf.mxu0  ;;  %v427_v47 = vpop.f32.mrf.mxu1 }
  0xe6   : > { %490 = vst [vmem:[%s855_s22 + $0x10] sm:$0xff] %v458_v42  ;;  %506 = vst [vmem:[%s855_s22 + $0x90] sm:$0xff] %v474_v43  ;;  %v459_v48 = vmax.f32 %v384_v44, 0.0  ;;  %v475_v49 = vmax.f32 %v424_v45, 0.0  ;;  %v388_v50 = vadd.f32 %v387_v46, %v845_v22  ;;  %v428_v51 = vadd.f32 %v427_v47, %v845_v22 }
  0xe7   : > { %v389_v52 = vpop.f32.mrf.mxu0  ;;  %v429_v53 = vpop.f32.mrf.mxu1 }
  0xe8   : > { %491 = vst [vmem:[%s855_s22 + $0x18] sm:$0xff] %v459_v48  ;;  %507 = vst [vmem:[%s855_s22 + $0x98] sm:$0xff] %v475_v49  ;;  %v460_v54 = vmax.f32 %v388_v50, 0.0  ;;  %v476_v55 = vmax.f32 %v428_v51, 0.0  ;;  %v390_v56 = vadd.f32 %v389_v52, %v848_v23  ;;  %v430_v57 = vadd.f32 %v429_v53, %v848_v23 }
  0xe9   : > { %v391_v58 = vpop.f32.mrf.mxu0  ;;  %v431_v59 = vpop.f32.mrf.mxu1 }
  0xea   : > { %492 = vst [vmem:[%s855_s22 + $0x20] sm:$0xff] %v460_v54  ;;  %508 = vst [vmem:[%s855_s22 + $0xa0] sm:$0xff] %v476_v55  ;;  %v461_v60 = vmax.f32 %v390_v56, 0.0  ;;  %v477_v61 = vmax.f32 %v430_v57, 0.0  ;;  %v392_v62 = vadd.f32 %v391_v58, %v845_v22  ;;  %v432_v63 = vadd.f32 %v431_v59, %v845_v22 }
  0xeb   : > { %v393_v0 = vpop.f32.mrf.mxu0  ;;  %v433_v1 = vpop.f32.mrf.mxu1 }
  0xec   : > { %493 = vst [vmem:[%s855_s22 + $0x28] sm:$0xff] %v461_v60  ;;  %509 = vst [vmem:[%s855_s22 + $0xa8] sm:$0xff] %v477_v61  ;;  %v462_v2 = vmax.f32 %v392_v62, 0.0  ;;  %v478_v3 = vmax.f32 %v432_v63, 0.0  ;;  %v394_v4 = vadd.f32 %v393_v0, %v848_v23  ;;  %v434_v5 = vadd.f32 %v433_v1, %v848_v23 }
  0xed   : > { %v397_v6 = vpop.f32.mrf.mxu0  ;;  %v437_v7 = vpop.f32.mrf.mxu1 }
  0xee   : > { %494 = vst [vmem:[%s855_s22 + $0x30] sm:$0xff] %v462_v2  ;;  %510 = vst [vmem:[%s855_s22 + $0xb0] sm:$0xff] %v478_v3  ;;  %v463_v8 = vmax.f32 %v394_v4, 0.0  ;;  %v479_v9 = vmax.f32 %v434_v5, 0.0  ;;  %v398_v10 = vadd.f32 %v397_v6, %v845_v22  ;;  %v438_v11 = vadd.f32 %v437_v7, %v845_v22 }
  0xef   : > { %v399_v12 = vpop.f32.mrf.mxu0  ;;  %v439_v13 = vpop.f32.mrf.mxu1 }
  0xf0   : > { %495 = vst [vmem:[%s855_s22 + $0x38] sm:$0xff] %v463_v8  ;;  %511 = vst [vmem:[%s855_s22 + $0xb8] sm:$0xff] %v479_v9  ;;  %v464_v14 = vmax.f32 %v398_v10, 0.0  ;;  %v480_v15 = vmax.f32 %v438_v11, 0.0  ;;  %v400_v16 = vadd.f32 %v399_v12, %v848_v23  ;;  %v440_v17 = vadd.f32 %v439_v13, %v848_v23 }
  0xf1   : > { %v401_v18 = vpop.f32.mrf.mxu0  ;;  %v441_v19 = vpop.f32.mrf.mxu1 }
  0xf2   : > { %496 = vst [vmem:[%s855_s22 + $0x40] sm:$0xff] %v464_v14  ;;  %512 = vst [vmem:[%s855_s22 + $0xc0] sm:$0xff] %v480_v15  ;;  %v465_v20 = vmax.f32 %v400_v16, 0.0  ;;  %v481_v21 = vmax.f32 %v440_v17, 0.0  ;;  %v402_v24 = vadd.f32 %v401_v18, %v845_v22  ;;  %v442_v25 = vadd.f32 %v441_v19, %v845_v22 }
  0xf3   : > { %v403_v26 = vpop.f32.mrf.mxu0  ;;  %v443_v27 = vpop.f32.mrf.mxu1 }
  0xf4   : > { %497 = vst [vmem:[%s855_s22 + $0x48] sm:$0xff] %v465_v20  ;;  %513 = vst [vmem:[%s855_s22 + $0xc8] sm:$0xff] %v481_v21  ;;  %v466_v28 = vmax.f32 %v402_v24, 0.0  ;;  %v482_v29 = vmax.f32 %v442_v25, 0.0  ;;  %v404_v30 = vadd.f32 %v403_v26, %v848_v23  ;;  %v444_v31 = vadd.f32 %v443_v27, %v848_v23 }
  0xf5   : > { %v407_v32 = vpop.f32.mrf.mxu0  ;;  %v447_v33 = vpop.f32.mrf.mxu1 }
  0xf6   : > { %498 = vst [vmem:[%s855_s22 + $0x50] sm:$0xff] %v466_v28  ;;  %514 = vst [vmem:[%s855_s22 + $0xd0] sm:$0xff] %v482_v29  ;;  %v467_v34 = vmax.f32 %v404_v30, 0.0  ;;  %v483_v35 = vmax.f32 %v444_v31, 0.0  ;;  %v408_v36 = vadd.f32 %v407_v32, %v845_v22  ;;  %v448_v37 = vadd.f32 %v447_v33, %v845_v22 }
  0xf7   : > { %v409_v38 = vpop.f32.mrf.mxu0  ;;  %v449_v39 = vpop.f32.mrf.mxu1 }
  0xf8   : > { %499 = vst [vmem:[%s855_s22 + $0x58] sm:$0xff] %v467_v34  ;;  %515 = vst [vmem:[%s855_s22 + $0xd8] sm:$0xff] %v483_v35  ;;  %v468_v40 = vmax.f32 %v408_v36, 0.0  ;;  %v484_v41 = vmax.f32 %v448_v37, 0.0  ;;  %v410_v42 = vadd.f32 %v409_v38, %v848_v23  ;;  %v450_v43 = vadd.f32 %v449_v39, %v848_v23 }
  0xf9   : > { %v411_v44 = vpop.f32.mrf.mxu0  ;;  %v451_v45 = vpop.f32.mrf.mxu1 }
  0xfa   : > { %500 = vst [vmem:[%s855_s22 + $0x60] sm:$0xff] %v468_v40  ;;  %516 = vst [vmem:[%s855_s22 + $0xe0] sm:$0xff] %v484_v41  ;;  %v469_v46 = vmax.f32 %v410_v42, 0.0  ;;  %v485_v47 = vmax.f32 %v450_v43, 0.0  ;;  %v412_v48 = vadd.f32 %v411_v44, %v845_v22  ;;  %v452_v49 = vadd.f32 %v451_v45, %v845_v22 }
  0xfb   : > { %v413_v50 = vpop.f32.mrf.mxu0  ;;  %v453_v51 = vpop.f32.mrf.mxu1 }
  0xfc   : > { %501 = vst [vmem:[%s855_s22 + $0x68] sm:$0xff] %v469_v46  ;;  %517 = vst [vmem:[%s855_s22 + $0xe8] sm:$0xff] %v485_v47  ;;  %v470_v52 = vmax.f32 %v412_v48, 0.0  ;;  %v486_v53 = vmax.f32 %v452_v49, 0.0  ;;  %v414_v54 = vadd.f32 %v413_v50, %v848_v23  ;;  %v454_v55 = vadd.f32 %v453_v51, %v848_v23 }
  0xfe   : > { %502 = vst [vmem:[%s855_s22 + $0x70] sm:$0xff] %v470_v52  ;;  %518 = vst [vmem:[%s855_s22 + $0xf0] sm:$0xff] %v486_v53  ;;  %v471_v56 = vmax.f32 %v414_v54, 0.0  ;;  %v487_v57 = vmax.f32 %v454_v55, 0.0 }
 0x100   : > { %503 = vst [vmem:[%s855_s22 + $0x78] sm:$0xff] %v471_v56  ;;  %519 = vst [vmem:[%s855_s22 + $0xf8] sm:$0xff] %v487_v57 }
 0x101 PF: > { %s13_s16 = sadd.s32 1, %s754_s16   ;;  %s938_s12 = smov %s746_s14 }
 0x102   : > { %p10_p7 = scmp.ge.s32.totalorder %s13_s16, 6   ;;  %s939_s13 = smov %s750_s15 }
 0x103   : > { %s940_s14 = smov %s943_s17  ;;  %s941_s15 = smov %s947_s18 }
 0x104   :  { %12 = sbr.rel (!%p10_p7) target bundleno = 3 (0x3), region = 62 }

// kernel: _lambda_.5
= control target key start
LH: loop header
LB: loop body
LE: loop exit
PB: predicated region body
PF: predicated region fallthrough
CT: control target
= control target key end

     0   :  { %s2675_s12 = smov 0   ;;  %s2677_s13 = smov 0   ;;  %s3180_s0 = inlined_call_operand.vmem [shape: bf16[2,256,1200], index: 0, kind: input, shape index: {}]   ;;  %s3181_s1 = inlined_call_operand.vmem [shape: bf16[1200,128], index: 1, kind: input, shape index: {}]   ;;  %s3182_s2 = inlined_call_operand.vmem [shape: f32[1,128], index: 2, kind: input, shape index: {}]   ;;  %s3183_s3 = inlined_call_operand.vmem [shape: f32[2,256,128], index: 3, kind: output, shape index: {}]  }
   0x1   :  { %s2679_s14 = smov 0   ;;  %s2681_s15 = smov 0  }
   0x2   :  { %s2683_s16 = smov 0  }
   0x3 LB: > { %s22_s17 = sadd.s32 1, %s2644_s14  ;;  %s25_s18 = sadd.s32 1, %s2648_s15  ;;  %s2652_s16 = sphi %s2683_s16, %s13_s16   ;;  %s2648_s15 = sphi %s2681_s15, %s3187_s15   ;;  %s2644_s14 = sphi %s2679_s14, %s3186_s14   ;;  %s2640_s13 = sphi %s2677_s13, %s3185_s13   ;;  %s2636_s12 = sphi %s2675_s12, %s3184_s12  }
   0x4   : > { %p23_p0 = scmp.ge.s32.totalorder %s22_s17, 2  ;;  %p1932_p1 = scmp.ge.s32.totalorder %s2652_s16, 1 }
   0x5   : > { %p159_p2 = scmp.lt.s32.totalorder %s2652_s16, 5 }
   0x6   : > { %s3189_s17 = smov (%p23_p0, %s22_s17), 0  ;;  %s3191_s18 = smov (!%p23_p0, %s25_s18), %s2648_s15 }
   0x7   : > { %p160_p3 = pnand %p1932_p1, %p159_p2  ;;  %p27_p4 = scmp.ge.s32.totalorder %s3191_s18, 2 }
   0x8   : > { %s1933_s21 = sshll.u32 (!%p160_p3), %s2636_s12, 4  ;;  %p193_p5 = scmp.lt.s32.totalorder (!%p160_p3), %s2640_s13, 1 }
   0x9   : > { %s3193_s18 = smov (%p27_p4, %s3191_s18), 0  ;;  %163 = sbr.rel (%p160_p3) target bundleno = 407 (0x197), region = 32 }
   0xa   : > { %p195_p6 = scmp.lt.s32.totalorder (!%p160_p3), %s1933_s21, 31 }
   0xe   : > { %v2419_v0 = vld [vmem:[%s3181_s1 + $0x78] sm:$0xff]   ;;  %v2421_v2 = vld [vmem:[%s3181_s1 + $0x70] sm:$0xff]   ;;  %s3195_s13 = smov (!%p193_p5, %s2640_s13), 1  ;;  %v2423_v4 = vld [vmem:[%s3181_s1 + $0x68] sm:$0xff]   ;;  %s3197_s21 = smov (!%p195_p6, %s1933_s21), 31  ;;  %vm1293_vm0 = vcmask 392192  }
   0xf   : > { %v2420_v1 = vld [vmem:[%s3181_s1 + $0x38] sm:$0xff]   ;;  %2360 = vmatprep.subr.bf16.mxu1 %v2419_v0  ;;  %2104 = vmatprep.subr.bf16.mxu0 %v2419_v0  ;;  %v2422_v3 = vld [vmem:[%s3181_s1 + $0x30] sm:$0xff]   ;;  %s2377_s30 = smul.u32 320, %s3195_s13  ;;  %v2424_v5 = vld [vmem:[%s3181_s1 + $0x28] sm:$0xff]   ;;  %s1936_s25 = sshll.u32 %s3195_s13, 5 }
  0x10   : > { %2368 = vmatpush3.bf16.msra.mxu1 %v2420_v1  ;;  %2105 = vmatpush3.bf16.msra.mxu0 %v2420_v1  ;;  %s2376_s4 = smul.u32 10, %s3197_s21  ;;  %v2425_v6 = vld [vmem:[%s3181_s1 + $0x60] sm:$0xff]   ;;  %v2427_v8 = vld [vmem:[%s3181_s1 + $0x58] sm:$0xff]   ;;  %v2429_v10 = vld [vmem:[%s3181_s1 + $0x50] sm:$0xff]   ;;  %s209_s26 = sadd.s32 %s1936_s25, %s3197_s21 }
  0x11   : > { %2361 = vmatprep.subr.bf16.mxu1 %v2421_v2  ;;  %2106 = vmatprep.subr.bf16.mxu0 %v2421_v2  ;;  %v2426_v7 = vld [vmem:[%s3181_s1 + $0x20] sm:$0xff]   ;;  %v2428_v9 = vld [vmem:[%s3181_s1 + $0x18] sm:$0xff]   ;;  %v2430_v13 = vld [vmem:[%s3181_s1 + $0x10] sm:$0xff]   ;;  %s1937_s27 = sshll.u32 %s209_s26, 3 }
  0x12   : > { %s199_s9 = sadd.s32 %s2377_s30, %s2376_s4  ;;  %v2431_v14 = vld [vmem:[%s3181_s1 + $0x48] sm:$0xff]   ;;  %v2433_v16 = vld [vmem:[%s3181_s1 + $0x40] sm:$0xff]   ;;  %v2441_v20 = vld [vmem:[%s3181_s1 + $0xf8] sm:$0xff]   ;;  %s3132_s29 = scalar_lea.vmem %s3183_s3, %s1937_s27 }
  0x13   : > { %s1934_s12 = sshll.u32 %s199_s9, 2  ;;  %v2432_v15 = vld [vmem:[%s3181_s1 + $0x8] sm:$0xff]   ;;  %v2434_v17 = vld [vmem:[%s3181_s1] sm:$0xff]   ;;  %v2443_v21 = vld [vmem:[%s3181_s1 + $0x178] sm:$0xff]  }
  0x14   : > { %2369 = vmatpush3.bf16.msra.mxu1 %v2422_v3  ;;  %2107 = vmatpush3.bf16.msra.mxu0 %v2422_v3  ;;  %s2744_s24 = scalar_lea.vmem %s3180_s0, %s1934_s12  ;;  %v2442_v22 = vld [vmem:[%s3181_s1 + $0xb8] sm:$0xff]   ;;  %v2445_v24 = vld [vmem:[%s3181_s1 + $0xf0] sm:$0xff]   ;;  %v2454_v30 = vld [vmem:[%s3181_s1 + $0xe8] sm:$0xff]  }
  0x15   : > { %2362 = vmatprep.subr.bf16.mxu1 %v2423_v4  ;;  %2108 = vmatprep.subr.bf16.mxu0 %v2423_v4  ;;  %v2437_v11 = vld [vmem:[%s2744_s24 + $0x144] ss:$40 sps:$4 sm:$0xff]   ;;  %v2435_v18 = vld [vmem:[%s2744_s24 + $0x140] ss:$40 sps:$4 sm:$0xff]   ;;  %v2444_v23 = vld [vmem:[%s3181_s1 + $0x138] sm:$0xff]  }
  0x16   : > { %v2440_v12 = vld [vmem:[%s2744_s24 + $0x4] ss:$40 sps:$4 sm:$0xff]   ;;  %1382 = vmatprep.mubr.bf16.mxu1 %v2437_v11  ;;  %v2438_v19 = vld [vmem:[%s2744_s24] ss:$40 sps:$4 sm:$0xff]   ;;  %v2447_v25 = vld [vmem:[%s3181_s1 + $0x170] sm:$0xff]  }
  0x17   : > { %1350 = vmatprep.mubr.bf16.mxu0 %v2440_v12  ;;  %v2449_v26 = vld [vmem:[%s2744_s24 + $0x194] ss:$40 sps:$4 sm:$0xff]   ;;  %v2453_v31 = vld [vmem:[%s2744_s24 + $0x190] ss:$40 sps:$4 sm:$0xff]   ;;  %v2457_v32 = vld [vmem:[%s3181_s1 + $0x168] sm:$0xff]  }
  0x18   : > { %2370 = vmatpush3.bf16.msra.mxu1 %v2424_v5  ;;  %2109 = vmatpush3.bf16.msra.mxu0 %v2424_v5  ;;  %v2446_v27 = vld [vmem:[%s3181_s1 + $0xb0] sm:$0xff]   ;;  %v2456_v34 = vld [vmem:[%s3181_s1 + $0xa8] sm:$0xff]   ;;  %v2459_v36 = vld [vmem:[%s3181_s1 + $0xe0] sm:$0xff]  }
  0x19   : > { %2363 = vmatprep.subr.bf16.mxu1 %v2425_v6  ;;  %2110 = vmatprep.subr.bf16.mxu0 %v2425_v6  ;;  %v2451_v28 = vld [vmem:[%s2744_s24 + $0x54] ss:$40 sps:$4 sm:$0xff]   ;;  %v2455_v33 = vld [vmem:[%s2744_s24 + $0x50] ss:$40 sps:$4 sm:$0xff]   ;;  %v2458_v35 = vld [vmem:[%s3181_s1 + $0x128] sm:$0xff]  }
  0x1a   : > { %v2448_v29 = vld [vmem:[%s3181_s1 + $0x130] sm:$0xff]   ;;  %v2461_v37 = vld [vmem:[%s3181_s1 + $0x160] sm:$0xff]   ;;  %v2468_v42 = vld [vmem:[%s3181_s1 + $0xd8] sm:$0xff]  }
  0x1b   : > { %v2463_v38 = vld [vmem:[%s2744_s24 + $0x1e4] ss:$40 sps:$4 sm:$0xff]   ;;  %v2467_v43 = vld [vmem:[%s2744_s24 + $0x1e0] ss:$40 sps:$4 sm:$0xff]   ;;  %v2471_v45 = vld [vmem:[%s3181_s1 + $0x158] sm:$0xff]  }
  0x1c   : > { %2371 = vmatpush3.bf16.msra.mxu1 %v2426_v7  ;;  %2111 = vmatpush3.bf16.msra.mxu0 %v2426_v7  ;;  %v2460_v39 = vld [vmem:[%s3181_s1 + $0xa0] sm:$0xff]   ;;  %v2470_v46 = vld [vmem:[%s3181_s1 + $0x98] sm:$0xff]   ;;  %v2473_v48 = vld [vmem:[%s3181_s1 + $0xd0] sm:$0xff]   ;;  %v2654_v7 = vmov 0  }
  0x1d   : > { %2364 = vmatprep.subr.bf16.mxu1 %v2427_v8  ;;  %2112 = vmatprep.subr.bf16.mxu0 %v2427_v8  ;;  %v2465_v40 = vld [vmem:[%s2744_s24 + $0xa4] ss:$40 sps:$4 sm:$0xff]   ;;  %v2469_v44 = vld [vmem:[%s2744_s24 + $0xa0] ss:$40 sps:$4 sm:$0xff]   ;;  %v2472_v47 = vld [vmem:[%s3181_s1 + $0x118] sm:$0xff]  }
  0x1e   : > { %v2462_v41 = vld [vmem:[%s3181_s1 + $0x120] sm:$0xff]   ;;  %v2475_v49 = vld [vmem:[%s3181_s1 + $0x150] sm:$0xff]   ;;  %v2482_v54 = vld [vmem:[%s3181_s1 + $0xc8] sm:$0xff]  }
  0x1f   : > { %v2477_v50 = vld [vmem:[%s2744_s24 + $0x234] ss:$40 sps:$4 sm:$0xff]   ;;  %v2481_v55 = vld [vmem:[%s2744_s24 + $0x230] ss:$40 sps:$4 sm:$0xff]   ;;  %v2485_v57 = vld [vmem:[%s3181_s1 + $0x148] sm:$0xff]  }
  0x20   : > { %2372 = vmatpush3.bf16.msra.mxu1 %v2428_v9  ;;  %2113 = vmatpush3.bf16.msra.mxu0 %v2428_v9  ;;  %v2479_v51 = vld [vmem:[%s2744_s24 + $0xf4] ss:$40 sps:$4 sm:$0xff]   ;;  %v2483_v56 = vld [vmem:[%s2744_s24 + $0xf0] ss:$40 sps:$4 sm:$0xff]   ;;  %v2484_v58 = vld [vmem:[%s3181_s1 + $0x88] sm:$0xff]  }
  0x21   : > { %2365 = vmatprep.subr.bf16.mxu1 %v2429_v10  ;;  %2114 = vmatprep.subr.bf16.mxu0 %v2429_v10  ;;  %v2474_v52 = vld [vmem:[%s3181_s1 + $0x90] sm:$0xff]   ;;  %v2486_v59 = vld [vmem:[%s3181_s1 + $0x108] sm:$0xff]   ;;  %v2487_v60 = vld [vmem:[%s3181_s1 + $0xc0] sm:$0xff]  }
  0x22   : > { %v2476_v53 = vld [vmem:[%s3181_s1 + $0x110] sm:$0xff]   ;;  %v2489_v61 = vld [vmem:[%s3181_s1 + $0x140] sm:$0xff]   ;;  %v2497_v4 = vld [vmem:[%s3181_s1 + $0x1f8] sm:$0xff]  }
  0x23   : > { %v2488_v62 = vld [vmem:[%s3181_s1 + $0x80] sm:$0xff]   ;;  %v2493_v0 = vld [vmem:[%s2744_s24 + $0xc] ss:$40 sps:$4 sm:$0xff]   ;;  %v2491_v1 = vld [vmem:[%s2744_s24 + $0x8] ss:$40 sps:$4 sm:$0xff]  }
  0x24   : > { %2373 = vmatpush3.bf16.msra.mxu1 %v2430_v13  ;;  %2115 = vmatpush3.bf16.msra.mxu0 %v2430_v13  ;;  %v2490_v63 = vld [vmem:[%s3181_s1 + $0x100] sm:$0xff]   ;;  %v2494_v2 = vld [vmem:[%s2744_s24 + $0x10] ss:$40 sps:$4 sm:$0xff]   ;;  %v2496_v3 = vld [vmem:[%s2744_s24 + $0x14] ss:$40 sps:$4 sm:$0xff]  }
  0x25   : > { %2366 = vmatprep.subr.bf16.mxu1 %v2431_v14  ;;  %2116 = vmatprep.subr.bf16.mxu0 %v2431_v14  ;;  %v2498_v5 = vld [vmem:[%s3181_s1 + $0x1b8] sm:$0xff]   ;;  %v2503_v9 = vld [vmem:[%s2744_s24 + $0x64] ss:$40 sps:$4 sm:$0xff]   ;;  %v2505_v10 = vld [vmem:[%s3181_s1 + $0x1f0] sm:$0xff]  }
  0x26   : > { %v2499_v6 = vld [vmem:[%s2744_s24 + $0x5c] ss:$40 sps:$4 sm:$0xff]   ;;  %v2502_v11 = vld [vmem:[%s2744_s24 + $0x58] ss:$40 sps:$4 sm:$0xff]   ;;  %v2507_v12 = vld [vmem:[%s3181_s1 + $0x1b0] sm:$0xff]  }
  0x27   : > { %v2501_v8 = vld [vmem:[%s3181_s1 + $0x238] sm:$0xff]   ;;  %v2508_v13 = vld [vmem:[%s3181_s1 + $0x230] sm:$0xff]   ;;  %v2506_v14 = vld [vmem:[%s2744_s24 + $0x60] ss:$40 sps:$4 sm:$0xff]  }
  0x28   : > { %2374 = vmatpush3.bf16.msra.mxu1 %v2432_v15  ;;  %2117 = vmatpush3.bf16.msra.mxu0 %v2432_v15  ;;  %v2509_v15 = vld [vmem:[%s2744_s24 + $0xac] ss:$40 sps:$4 sm:$0xff]  }
  0x29   : > { %2367 = vmatprep.subr.bf16.mxu1 %v2433_v16  ;;  %2118 = vmatprep.subr.bf16.mxu0 %v2433_v16  ;;  %v2512_v16 = vld [vmem:[%s2744_s24 + $0xb4] ss:$40 sps:$4 sm:$0xff]  }
  0x2c   : > { %2375 = vmatpush3.bf16.msra.mxu1 %v2434_v17  ;;  %2119 = vmatpush3.bf16.msra.mxu0 %v2434_v17  ;;  %v2514_v17 = vld [vmem:[%s3181_s1 + $0x1e8] sm:$0xff]  }
  0x2d   : > { %2168 = vmatprep.subr.bf16.mxu1 %v2441_v20  ;;  %2232 = vmatprep.subr.bf16.mxu0 %v2443_v21  ;;  %v2511_v20 = vld [vmem:[%s2744_s24 + $0xa8] ss:$40 sps:$4 sm:$0xff]  }
  0x2e   : > { %v2515_v21 = vld [vmem:[%s2744_s24 + $0xb0] ss:$40 sps:$4 sm:$0xff]  }
  0x2f   : > { %1383 = vmatmul.mubr.bf16.vlgmr.msra.gmra.mxu1 %v2435_v18  ;;  %1351 = vmatmul.mubr.bf16.vlgmr.msra.gmra.mxu0 %v2438_v19  ;;  %v2516_v18 = vld [vmem:[%s3181_s1 + $0x1a8] sm:$0xff]  }
  0x30   : > { %2169 = vmatpush3.bf16.msra.mxu1 %v2442_v22  ;;  %2233 = vmatpush3.bf16.msra.mxu0 %v2444_v23  ;;  %v2517_v19 = vld [vmem:[%s3181_s1 + $0x228] sm:$0xff]   ;;  %v2518_v22 = vld [vmem:[%s2744_s24 + $0xfc] ss:$40 sps:$4 sm:$0xff]  }
  0x31   : > { %2170 = vmatprep.subr.bf16.mxu1 %v2445_v24  ;;  %2234 = vmatprep.subr.bf16.mxu0 %v2447_v25  ;;  %v2523_v23 = vld [vmem:[%s3181_s1 + $0x1e0] sm:$0xff]  }
  0x32   : > { %1390 = vmatprep.mubr.bf16.mxu1 %v2449_v26  ;;  %1358 = vmatprep.mubr.bf16.mxu0 %v2451_v28  ;;  %v2521_v24 = vld [vmem:[%s2744_s24 + $0x104] ss:$40 sps:$4 sm:$0xff]   ;;  %v2524_v28 = vld [vmem:[%s2744_s24 + $0x100] ss:$40 sps:$4 sm:$0xff]  }
  0x33   : > { %v2525_v25 = vld [vmem:[%s3181_s1 + $0x1a0] sm:$0xff]  }
  0x34   : > { %2171 = vmatpush3.bf16.msra.mxu1 %v2446_v27  ;;  %2235 = vmatpush3.bf16.msra.mxu0 %v2448_v29  ;;  %v2526_v26 = vld [vmem:[%s3181_s1 + $0x220] sm:$0xff]   ;;  %v2529_v29 = vld [vmem:[%s3181_s1 + $0x218] sm:$0xff]  }
  0x35   : > { %2172 = vmatprep.subr.bf16.mxu1 %v2454_v30  ;;  %2236 = vmatprep.subr.bf16.mxu0 %v2457_v32  ;;  %v2520_v27 = vld [vmem:[%s2744_s24 + $0xf8] ss:$40 sps:$4 sm:$0xff]   ;;  %v2527_v30 = vld [vmem:[%s2744_s24 + $0x14c] ss:$40 sps:$4 sm:$0xff]  }
  0x36   : > { %v2535_v32 = vld [vmem:[%s3181_s1 + $0x198] sm:$0xff]  }
  0x37   : > { %1391 = vmatmul.mubr.bf16.gmra.mxu1 %v2453_v31  ;;  %1359 = vmatmul.mubr.bf16.gmra.mxu0 %v2455_v33  ;;  %v2533_v31 = vld [vmem:[%s3181_s1 + $0x1d8] sm:$0xff]  }
  0x38   : > { %2173 = vmatpush3.bf16.msra.mxu1 %v2456_v34  ;;  %2237 = vmatpush3.bf16.msra.mxu0 %v2458_v35  ;;  %v2531_v33 = vld [vmem:[%s2744_s24 + $0x154] ss:$40 sps:$4 sm:$0xff]  }
  0x39   : > { %2174 = vmatprep.subr.bf16.mxu1 %v2459_v36  ;;  %2238 = vmatprep.subr.bf16.mxu0 %v2461_v37  ;;  %v2536_v34 = vld [vmem:[%s3181_s1 + $0x210] sm:$0xff]  }
  0x3a   : > { %1398 = vmatprep.mubr.bf16.mxu1 %v2463_v38  ;;  %1366 = vmatprep.mubr.bf16.mxu0 %v2465_v40  ;;  %v2542_v35 = vld [vmem:[%s3181_s1 + $0x1d0] sm:$0xff]   ;;  %v2545_v38 = vld [vmem:[%s3181_s1 + $0x208] sm:$0xff]   ;;  %v2537_v40 = vld [vmem:[%s2744_s24 + $0x19c] ss:$40 sps:$4 sm:$0xff]  }
  0x3b   : > { %v2530_v36 = vld [vmem:[%s2744_s24 + $0x148] ss:$40 sps:$4 sm:$0xff]  }
  0x3c   : > { %2175 = vmatpush3.bf16.msra.mxu1 %v2460_v39  ;;  %2239 = vmatpush3.bf16.msra.mxu0 %v2462_v41  ;;  %v2544_v37 = vld [vmem:[%s3181_s1 + $0x190] sm:$0xff]   ;;  %v2540_v41 = vld [vmem:[%s2744_s24 + $0x1a4] ss:$40 sps:$4 sm:$0xff]  }
  0x3d   : > { %2176 = vmatprep.subr.bf16.mxu1 %v2468_v42  ;;  %2240 = vmatprep.subr.bf16.mxu0 %v2471_v45  ;;  %v2534_v39 = vld [vmem:[%s2744_s24 + $0x150] ss:$40 sps:$4 sm:$0xff]   ;;  %v2551_v42 = vld [vmem:[%s3181_s1 + $0x1c8] sm:$0xff]  }
  0x3e   : > { %v2555_v45 = vld [vmem:[%s3181_s1 + $0x250] sm:$0xff]  }
  0x3f   : > { %1399 = vmatmul.mubr.bf16.gmra.mxu1 %v2467_v43  ;;  %1367 = vmatmul.mubr.bf16.gmra.mxu0 %v2469_v44  ;;  %v2552_v43 = vld [vmem:[%s3181_s1 + $0x200] sm:$0xff]   ;;  %v2554_v44 = vld [vmem:[%s3181_s1 + $0x188] sm:$0xff]  }
  0x40   : > { %2177 = vmatpush3.bf16.msra.mxu1 %v2470_v46  ;;  %2241 = vmatpush3.bf16.msra.mxu0 %v2472_v47  ;;  %v2539_v46 = vld [vmem:[%s2744_s24 + $0x198] ss:$40 sps:$4 sm:$0xff]  }
  0x41   : > { %2178 = vmatprep.subr.bf16.mxu1 %v2473_v48  ;;  %2242 = vmatprep.subr.bf16.mxu0 %v2475_v49  ;;  %v2543_v47 = vld [vmem:[%s2744_s24 + $0x1a0] ss:$40 sps:$4 sm:$0xff]   ;;  %v2546_v48 = vld [vmem:[%s2744_s24 + $0x1ec] ss:$40 sps:$4 sm:$0xff]  }
  0x42   : > { %1406 = vmatprep.mubr.bf16.mxu1 %v2477_v50  ;;  %1374 = vmatprep.mubr.bf16.mxu0 %v2479_v51  ;;  %v2549_v49 = vld [vmem:[%s2744_s24 + $0x1f4] ss:$40 sps:$4 sm:$0xff]   ;;  %v2561_v50 = vld [vmem:[%s3181_s1 + $0x1c0] sm:$0xff]  }
  0x43   : > { %v2563_v51 = vld [vmem:[%s3181_s1 + $0x180] sm:$0xff]  }
  0x44   : > { %2179 = vmatpush3.bf16.msra.mxu1 %v2474_v52  ;;  %2243 = vmatpush3.bf16.msra.mxu0 %v2476_v53  ;;  %v2564_v52 = vld [vmem:[%s3181_s1 + $0x248] sm:$0xff]   ;;  %v2565_v53 = vld [vmem:[%s3181_s1 + $0x240] sm:$0xff]  }
  0x45   : > { %2180 = vmatprep.subr.bf16.mxu1 %v2482_v54  ;;  %2244 = vmatprep.subr.bf16.mxu0 %v2485_v57  ;;  %v2548_v54 = vld [vmem:[%s2744_s24 + $0x1e8] ss:$40 sps:$4 sm:$0xff]   ;;  %v2559_v57 = vld [vmem:[%s2744_s24 + $0x244] ss:$40 sps:$4 sm:$0xff]  }
  0x47   : > { %1407 = vmatmul.mubr.bf16.gmra.mxu1 %v2481_v55  ;;  %1375 = vmatmul.mubr.bf16.gmra.mxu0 %v2483_v56  ;;  %v2553_v55 = vld [vmem:[%s2744_s24 + $0x1f0] ss:$40 sps:$4 sm:$0xff]   ;;  %v2556_v56 = vld [vmem:[%s2744_s24 + $0x23c] ss:$40 sps:$4 sm:$0xff]  }
  0x48   : > { %2181 = vmatpush3.bf16.msra.mxu1 %v2484_v58  ;;  %2245 = vmatpush3.bf16.msra.mxu0 %v2486_v59  ;;  %v2558_v58 = vld [vmem:[%s2744_s24 + $0x238] ss:$40 sps:$4 sm:$0xff]  }
  0x49   : > { %2182 = vmatprep.subr.bf16.mxu1 %v2487_v60  ;;  %2246 = vmatprep.subr.bf16.mxu0 %v2489_v61  ;;  %v2562_v59 = vld [vmem:[%s2744_s24 + $0x240] ss:$40 sps:$4 sm:$0xff]   ;;  %v2568_v60 = vld [vmem:[%s2744_s24 + $0x1c] ss:$40 sps:$4 sm:$0xff]  }
  0x4a   : > { %1447 = vmatprep.mubr.bf16.mxu1 %v2493_v0  ;;  %1544 = vmatprep.mubr.bf16.mxu0 %v2496_v3  ;;  %v2571_v61 = vld [vmem:[%s2744_s24 + $0x24] ss:$40 sps:$4 sm:$0xff]   ;;  %v2577_v3 = vld [vmem:[%s2744_s24 + $0x70] ss:$40 sps:$4 sm:$0xff]  }
  0x4b   : > { %v2572_v0 = vld [vmem:[%s2744_s24 + $0x6c] ss:$40 sps:$4 sm:$0xff]  }
  0x4c   : > { %2183 = vmatpush3.bf16.msra.mxu1 %v2488_v62  ;;  %2247 = vmatpush3.bf16.msra.mxu0 %v2490_v63  ;;  %v2566_v62 = vld [vmem:[%s2744_s24 + $0x18] ss:$40 sps:$4 sm:$0xff]  }
  0x4d   : > { %2296 = vmatprep.subr.bf16.mxu1 %v2497_v4  ;;  %1706 = vmatprep.subr.bf16.mxu0 %v2654_v7  ;;  %v2569_v63 = vld [vmem:[%s2744_s24 + $0x20] ss:$40 sps:$4 sm:$0xff]   ;;  %v2578_v4 = vld [vmem:[%s2744_s24 + $0xbc] ss:$40 sps:$4 sm:$0xff]  }
  0x4f   : > { %1448 = vmatmul.mubr.bf16.vlgmr.msra.gmra.mxu1 %v2491_v1  ;;  %1545 = vmatmul.mubr.bf16.vlgmr.msra.gmra.mxu0 %v2494_v2  ;;  %v2575_v1 = vld [vmem:[%s2744_s24 + $0x74] ss:$40 sps:$4 sm:$0xff]   ;;  %v2574_v2 = vld [vmem:[%s2744_s24 + $0x68] ss:$40 sps:$4 sm:$0xff]  }
  0x50   : > { %2297 = vmatpush3.bf16.msra.mxu1 %v2498_v5  ;;  %1455 = vmatprep.mubr.bf16.mxu1 %v2499_v6  ;;  %v2581_v5 = vld [vmem:[%s2744_s24 + $0xc4] ss:$40 sps:$4 sm:$0xff]   ;;  %v2580_v6 = vld [vmem:[%s2744_s24 + $0xb8] ss:$40 sps:$4 sm:$0xff]  }
  0x51   : > { %1707 = vmatpush1.bf16.msra.mxu0 %v2501_v8  ;;  %1552 = vmatprep.mubr.bf16.mxu0 %v2503_v9  ;;  %v2584_v8 = vld [vmem:[%s2744_s24 + $0x10c] ss:$40 sps:$4 sm:$0xff]  }
  0x52   : > { %2298 = vmatprep.subr.bf16.mxu1 %v2505_v10  ;;  %1708 = vmatprep.subr.bf16.mxu0 %v2654_v7  ;;  %v2587_v9 = vld [vmem:[%s2744_s24 + $0x114] ss:$40 sps:$4 sm:$0xff]   ;;  %v2586_v10 = vld [vmem:[%s2744_s24 + $0x108] ss:$40 sps:$4 sm:$0xff]  }
  0x54   : > { %2299 = vmatpush3.bf16.msra.mxu1 %v2507_v12  ;;  %v2590_v12 = vld [vmem:[%s2744_s24 + $0x15c] ss:$40 sps:$4 sm:$0xff]  }
  0x55   : > { %1709 = vmatpush1.bf16.msra.mxu0 %v2508_v13  ;;  %2300 = vmatprep.subr.bf16.mxu1 %v2514_v17  ;;  %v2593_v13 = vld [vmem:[%s2744_s24 + $0x164] ss:$40 sps:$4 sm:$0xff]   ;;  %v2599_v17 = vld [vmem:[%s2744_s24 + $0x1b4] ss:$40 sps:$4 sm:$0xff]  }
  0x56   : > { %1710 = vmatprep.subr.bf16.mxu0 %v2654_v7 }
  0x57   : > { %1456 = vmatmul.mubr.bf16.gmra.mxu1 %v2502_v11  ;;  %1553 = vmatmul.mubr.bf16.gmra.mxu0 %v2506_v14  ;;  %v2589_v11 = vld [vmem:[%s2744_s24 + $0x110] ss:$40 sps:$4 sm:$0xff]  }
  0x58   : > { %1463 = vmatprep.mubr.bf16.mxu1 %v2509_v15  ;;  %1560 = vmatprep.mubr.bf16.mxu0 %v2512_v16  ;;  %v2592_v14 = vld [vmem:[%s2744_s24 + $0x158] ss:$40 sps:$4 sm:$0xff]   ;;  %v2596_v16 = vld [vmem:[%s2744_s24 + $0x1ac] ss:$40 sps:$4 sm:$0xff]  }
  0x59   : > { %2301 = vmatpush3.bf16.msra.mxu1 %v2516_v18  ;;  %1711 = vmatpush1.bf16.msra.mxu0 %v2517_v19  ;;  %v2595_v15 = vld [vmem:[%s2744_s24 + $0x160] ss:$40 sps:$4 sm:$0xff]   ;;  %v2601_v19 = vld [vmem:[%s2744_s24 + $0x1b0] ss:$40 sps:$4 sm:$0xff]  }
  0x5a   : > { %1712 = vmatprep.subr.bf16.mxu0 %v2654_v7  ;;  %2302 = vmatprep.subr.bf16.mxu1 %v2523_v23  ;;  %v2598_v18 = vld [vmem:[%s2744_s24 + $0x1a8] ss:$40 sps:$4 sm:$0xff]  }
  0x5b   : > { %v2607_v23 = vld [vmem:[%s2744_s24 + $0x200] ss:$40 sps:$4 sm:$0xff]  }
  0x5d   : > { %2303 = vmatpush3.bf16.msra.mxu1 %v2525_v25  ;;  %1713 = vmatpush1.bf16.msra.mxu0 %v2526_v26  ;;  %v2611_v25 = vld [vmem:[%s2744_s24 + $0x254] ss:$40 sps:$4 sm:$0xff]   ;;  %v2610_v26 = vld [vmem:[%s2744_s24 + $0x248] ss:$40 sps:$4 sm:$0xff]  }
  0x5e   : > { %1714 = vmatprep.subr.bf16.mxu0 %v2654_v7  ;;  %2304 = vmatprep.subr.bf16.mxu1 %v2533_v31 }
  0x5f   : > { %1464 = vmatmul.mubr.bf16.gmra.mxu1 %v2511_v20  ;;  %1561 = vmatmul.mubr.bf16.gmra.mxu0 %v2515_v21  ;;  %v2602_v20 = vld [vmem:[%s2744_s24 + $0x1fc] ss:$40 sps:$4 sm:$0xff]  }
  0x60   : > { %1471 = vmatprep.mubr.bf16.mxu1 %v2518_v22  ;;  %1568 = vmatprep.mubr.bf16.mxu0 %v2521_v24  ;;  %v2605_v21 = vld [vmem:[%s2744_s24 + $0x204] ss:$40 sps:$4 sm:$0xff]   ;;  %v2604_v22 = vld [vmem:[%s2744_s24 + $0x1f8] ss:$40 sps:$4 sm:$0xff]  }
  0x61   : > { %1715 = vmatpush1.bf16.msra.mxu0 %v2529_v29  ;;  %2305 = vmatpush3.bf16.msra.mxu1 %v2535_v32  ;;  %v2608_v24 = vld [vmem:[%s2744_s24 + $0x24c] ss:$40 sps:$4 sm:$0xff]  }
  0x62   : > { %1716 = vmatprep.subr.bf16.mxu0 %v2654_v7  ;;  %2306 = vmatprep.subr.bf16.mxu1 %v2542_v35 }
  0x65   : > { %1717 = vmatpush1.bf16.msra.mxu0 %v2536_v34  ;;  %2307 = vmatpush3.bf16.msra.mxu1 %v2544_v37 }
  0x66   : > { %1718 = vmatprep.subr.bf16.mxu0 %v2654_v7  ;;  %2308 = vmatprep.subr.bf16.mxu1 %v2551_v42 }
  0x67   : > { %1472 = vmatmul.mubr.bf16.gmra.mxu1 %v2520_v27  ;;  %1569 = vmatmul.mubr.bf16.gmra.mxu0 %v2524_v28  ;;  %v2613_v27 = vld [vmem:[%s2744_s24 + $0x250] ss:$40 sps:$4 sm:$0xff]  }
  0x68   : > { %1479 = vmatprep.mubr.bf16.mxu1 %v2527_v30  ;;  %1576 = vmatprep.mubr.bf16.mxu0 %v2531_v33 }
  0x69   : > { %1719 = vmatpush1.bf16.msra.mxu0 %v2545_v38  ;;  %2309 = vmatpush3.bf16.msra.mxu1 %v2554_v44 }
  0x6a   : > { %1720 = vmatprep.subr.bf16.mxu0 %v2654_v7  ;;  %2310 = vmatprep.subr.bf16.mxu1 %v2561_v50 }
  0x6d   : > { %1721 = vmatpush1.bf16.msra.mxu0 %v2552_v43  ;;  %2311 = vmatpush3.bf16.msra.mxu1 %v2563_v51 }
  0x6e   : > { %1732 = vmatprep.subr.bf16.mxu0 %v2654_v7 }
  0x6f   : > { %1480 = vmatmul.mubr.bf16.gmra.mxu1 %v2530_v36  ;;  %1577 = vmatmul.mubr.bf16.gmra.mxu0 %v2534_v39 }
  0x70   : > { %1487 = vmatprep.mubr.bf16.mxu1 %v2537_v40  ;;  %1584 = vmatprep.mubr.bf16.mxu0 %v2540_v41 }
  0x71   : > { %1733 = vmatpush2.bf16.msra.mxu0 %v2555_v45 }
  0x72   : > { %1734 = vmatprep.subr.bf16.mxu0 %v2654_v7 }
  0x75   : > { %1735 = vmatpush2.bf16.msra.mxu0 %v2564_v52 }
  0x76   : > { %1736 = vmatprep.subr.bf16.mxu0 %v2654_v7  ;;  %v2583_v7 = vld [vmem:[%s2744_s24 + $0xc0] ss:$40 sps:$4 sm:$0xff]  }
  0x77   : > { %1488 = vmatmul.mubr.bf16.gmra.mxu1 %v2539_v46  ;;  %1585 = vmatmul.mubr.bf16.gmra.mxu0 %v2543_v47 }
  0x78   : > { %1495 = vmatprep.mubr.bf16.mxu1 %v2546_v48  ;;  %1592 = vmatprep.mubr.bf16.mxu0 %v2549_v49 }
  0x79   : > { %1737 = vmatpush2.bf16.msra.mxu0 %v2565_v53 }
  0x7f   : > { %1496 = vmatmul.mubr.bf16.gmra.mxu1 %v2548_v54  ;;  %1593 = vmatmul.mubr.bf16.gmra.mxu0 %v2553_v55 }
  0x80   : > { %1503 = vmatprep.mubr.bf16.mxu1 %v2556_v56  ;;  %1600 = vmatprep.mubr.bf16.mxu0 %v2559_v57 }
  0x87   : > { %1504 = vmatmul.mubr.bf16.gmra.mxu1 %v2558_v58  ;;  %1601 = vmatmul.mubr.bf16.gmra.mxu0 %v2562_v59 }
  0x88   : > { %1641 = vmatprep.mubr.bf16.mxu1 %v2568_v60  ;;  %2094 = vmatprep.mubr.msk.bf16.mxu0 %vm1293_vm0, %v2571_v61 }
  0x8f   : > { %1642 = vmatmul.mubr.bf16.vlgmr.msra.gmra.mxu1 %v2566_v62  ;;  %1739 = vmatmul.mubr.bf16.vlgmr.msra.gmra.mxu0 %v2569_v63 }
  0x90   : > { %1649 = vmatprep.mubr.bf16.mxu1 %v2572_v0  ;;  %2095 = vmatprep.mubr.msk.bf16.mxu0 %vm1293_vm0, %v2575_v1 }
  0x97   : > { %1650 = vmatmul.mubr.bf16.gmra.mxu1 %v2574_v2  ;;  %1747 = vmatmul.mubr.bf16.gmra.mxu0 %v2577_v3 }
  0x98   : > { %1657 = vmatprep.mubr.bf16.mxu1 %v2578_v4  ;;  %2096 = vmatprep.mubr.msk.bf16.mxu0 %vm1293_vm0, %v2581_v5 }
  0x9f   : > { %1658 = vmatmul.mubr.bf16.gmra.mxu1 %v2580_v6  ;;  %1755 = vmatmul.mubr.bf16.gmra.mxu0 %v2583_v7 }
  0xa0   : > { %1665 = vmatprep.mubr.bf16.mxu1 %v2584_v8  ;;  %2097 = vmatprep.mubr.msk.bf16.mxu0 %vm1293_vm0, %v2587_v9 }
  0xa7   : > { %1666 = vmatmul.mubr.bf16.gmra.mxu1 %v2586_v10  ;;  %1763 = vmatmul.mubr.bf16.gmra.mxu0 %v2589_v11 }
  0xa8   : > { %1673 = vmatprep.mubr.bf16.mxu1 %v2590_v12  ;;  %2098 = vmatprep.mubr.msk.bf16.mxu0 %vm1293_vm0, %v2593_v13 }
  0xaf   : > { %1674 = vmatmul.mubr.bf16.gmra.mxu1 %v2592_v14  ;;  %1771 = vmatmul.mubr.bf16.gmra.mxu0 %v2595_v15  ;;  %v3066_v14 = vld [vmem:[%s3182_s2] ss:$0 sm:$0xff] }
  0xb0   : > { %1681 = vmatprep.mubr.bf16.mxu1 %v2596_v16  ;;  %2099 = vmatprep.mubr.msk.bf16.mxu0 %vm1293_vm0, %v2599_v17 }
  0xb7   : > { %1682 = vmatmul.mubr.bf16.gmra.mxu1 %v2598_v18  ;;  %1779 = vmatmul.mubr.bf16.gmra.mxu0 %v2601_v19 }
  0xb8   : > { %1689 = vmatprep.mubr.bf16.mxu1 %v2602_v20  ;;  %2100 = vmatprep.mubr.msk.bf16.mxu0 %vm1293_vm0, %v2605_v21 }
  0xbf   : > { %1690 = vmatmul.mubr.bf16.gmra.mxu1 %v2604_v22  ;;  %1787 = vmatmul.mubr.bf16.gmra.mxu0 %v2607_v23 }
  0xc0   : > { %1697 = vmatprep.mubr.bf16.mxu1 %v2608_v24  ;;  %2101 = vmatprep.mubr.msk.bf16.mxu0 %vm1293_vm0, %v2611_v25 }
  0xc7   : > { %1698 = vmatmul.mubr.bf16.gmra.mxu1 %v2610_v26  ;;  %1795 = vmatmul.mubr.bf16.gmra.mxu0 %v2613_v27 }
  0xef   : > { %v2144_v28 = vpop.f32.mrf.mxu1  ;;  %v2120_v29 = vpop.f32.mrf.mxu0 }
  0xf1   : > { %v2145_v30 = vpop.f32.mrf.mxu1  ;;  %v2121_v31 = vpop.f32.mrf.mxu0 }
  0xf2   : > { %v3043_v32 = vadd.f32 %v2145_v30, %v2144_v28  ;;  %v2122_v33 = vadd.f32 %v2121_v31, %v2120_v29 }
  0xf3   : > { %v2147_v34 = vpop.f32.mrf.mxu1  ;;  %v2123_v35 = vpop.f32.mrf.mxu0 }
  0xf4   : > { %v1353_v17 = vadd.f32 %v2122_v33, %v3066_v14 }
  0xf5   : > { %v2148_v36 = vpop.f32.mrf.mxu1  ;;  %v2124_v37 = vpop.f32.mrf.mxu0 }
  0xf6   : > { %v3045_v38 = vadd.f32 %v2148_v36, %v2147_v34  ;;  %v2125_v39 = vadd.f32 %v2124_v37, %v2123_v35 }
  0xf7   : > { %v2150_v40 = vpop.f32.mrf.mxu1  ;;  %v2126_v41 = vpop.f32.mrf.mxu0 }
  0xf8   : > { %v1356_v25 = vadd.f32 %v2125_v39, %v3066_v14 }
  0xf9   : > { %v2151_v42 = vpop.f32.mrf.mxu1  ;;  %v2127_v43 = vpop.f32.mrf.mxu0 }
  0xfa   : > { %v3047_v44 = vadd.f32 %v2151_v42, %v2150_v40  ;;  %v2128_v45 = vadd.f32 %v2127_v43, %v2126_v41 }
  0xfb   : > { %v2153_v46 = vpop.f32.mrf.mxu1  ;;  %v2129_v47 = vpop.f32.mrf.mxu0 }
  0xfc   : > { %v1361_v33 = vadd.f32 %v2128_v45, %v3066_v14 }
  0xfd   : > { %v2154_v48 = vpop.f32.mrf.mxu1  ;;  %v2130_v49 = vpop.f32.mrf.mxu0 }
  0xfe   : > { %v3049_v50 = vadd.f32 %v2154_v48, %v2153_v46  ;;  %v2131_v51 = vadd.f32 %v2130_v49, %v2129_v47 }
  0xff   : > { %v2156_v52 = vpop.f32.mrf.mxu1  ;;  %v2132_v53 = vpop.f32.mrf.mxu0 }
 0x100   : > { %v1364_v47 = vadd.f32 %v2131_v51, %v3066_v14 }
 0x101   : > { %v2157_v54 = vpop.f32.mrf.mxu1  ;;  %v2133_v55 = vpop.f32.mrf.mxu0 }
 0x102   : > { %v3051_v56 = vadd.f32 %v2157_v54, %v2156_v52  ;;  %v2134_v57 = vadd.f32 %v2133_v55, %v2132_v53 }
 0x103   : > { %v2159_v58 = vpop.f32.mrf.mxu1  ;;  %v2135_v59 = vpop.f32.mrf.mxu0 }
 0x105   : > { %v2160_v60 = vpop.f32.mrf.mxu1  ;;  %v2136_v61 = vpop.f32.mrf.mxu0 }
 0x106   : > { %v3053_v62 = vadd.f32 %v2160_v60, %v2159_v58  ;;  %v2137_v63 = vadd.f32 %v2136_v61, %v2135_v59  ;;  %v1369_v59 = vadd.f32 %v2134_v57, %v3066_v14 }
 0x107   : > { %v2162_v0 = vpop.f32.mrf.mxu1  ;;  %v2138_v1 = vpop.f32.mrf.mxu0 }
 0x109   : > { %v2163_v2 = vpop.f32.mrf.mxu1  ;;  %v2139_v3 = vpop.f32.mrf.mxu0 }
 0x10a   : > { %v3055_v4 = vadd.f32 %v2163_v2, %v2162_v0  ;;  %v3057_v5 = vadd.f32 %v2139_v3, %v2138_v1 }
 0x10b   : > { %v2165_v6 = vpop.f32.mrf.mxu1  ;;  %v2141_v7 = vpop.f32.mrf.mxu0 }
 0x10d   : > { %v2166_v8 = vpop.f32.mrf.mxu1  ;;  %v2142_v9 = vpop.f32.mrf.mxu0 }
 0x10e   : > { %v3059_v10 = vadd.f32 %v2166_v8, %v2165_v6  ;;  %v3061_v11 = vadd.f32 %v2142_v9, %v2141_v7  ;;  %v1372_v7 = vadd.f32 %v2137_v63, %v3066_v14 }
 0x10f   : > { %v2184_v12 = vpop.f32.mrf.mxu1  ;;  %v2248_v13 = vpop.f32.mrf.mxu0 }
 0x111   : > { %v2185_v15 = vpop.f32.mrf.mxu1  ;;  %v2249_v16 = vpop.f32.mrf.mxu0 }
 0x112   : > { %v2186_v18 = vadd.f32 %v2185_v15, %v2184_v12  ;;  %v2250_v19 = vadd.f32 %v2249_v16, %v2248_v13 }
 0x113   : > { %v2187_v20 = vpop.f32.mrf.mxu1  ;;  %v2251_v21 = vpop.f32.mrf.mxu0 }
 0x114   : > { %v1450_v22 = vadd.f32 %v2186_v18, %v1353_v17  ;;  %v1377_v18 = vadd.f32 %v3057_v5, %v3066_v14 }
 0x115   : > { %v2188_v23 = vpop.f32.mrf.mxu1  ;;  %v2252_v24 = vpop.f32.mrf.mxu0 }
 0x116   : > { %v3070_v26 = vadd.f32 %v2250_v19, %v1450_v22  ;;  %v2189_v27 = vadd.f32 %v2188_v23, %v2187_v20  ;;  %v2253_v31 = vadd.f32 %v2252_v24, %v2251_v21 }
 0x117   : > { %v2190_v28 = vpop.f32.mrf.mxu1  ;;  %v2254_v29 = vpop.f32.mrf.mxu0 }
 0x118   : > { %v1453_v30 = vadd.f32 %v2189_v27, %v1356_v25  ;;  %v1380_v27 = vadd.f32 %v3061_v11, %v3066_v14 }
 0x119   : > { %v2191_v34 = vpop.f32.mrf.mxu1  ;;  %v2255_v35 = vpop.f32.mrf.mxu0 }
 0x11a   : > { %v3073_v36 = vadd.f32 %v2253_v31, %v1453_v30  ;;  %v2192_v37 = vadd.f32 %v2191_v34, %v2190_v28  ;;  %v2256_v40 = vadd.f32 %v2255_v35, %v2254_v29 }
 0x11b   : > { %v2193_v41 = vpop.f32.mrf.mxu1  ;;  %v2257_v42 = vpop.f32.mrf.mxu0 }
 0x11c   : > { %v1458_v43 = vadd.f32 %v2192_v37, %v1361_v33  ;;  %v1385_v37 = vadd.f32 %v3043_v32, %v3066_v14 }
 0x11d   : > { %v2194_v46 = vpop.f32.mrf.mxu1  ;;  %v2258_v39 = vpop.f32.mrf.mxu0 }
 0x11e   : > { %v3076_v48 = vadd.f32 %v2256_v40, %v1458_v43  ;;  %v2195_v49 = vadd.f32 %v2194_v46, %v2193_v41  ;;  %v2259_v55 = vadd.f32 %v2258_v39, %v2257_v42 }
 0x11f   : > { %v2196_v52 = vpop.f32.mrf.mxu1  ;;  %v2260_v53 = vpop.f32.mrf.mxu0 }
 0x120   : > { %v1461_v54 = vadd.f32 %v2195_v49, %v1364_v47  ;;  %v1388_v49 = vadd.f32 %v3045_v38, %v3066_v14 }
 0x121   : > { %v2197_v58 = vpop.f32.mrf.mxu1  ;;  %v2261_v45 = vpop.f32.mrf.mxu0 }
 0x122   : > { %v3079_v60 = vadd.f32 %v2259_v55, %v1461_v54  ;;  %v2198_v61 = vadd.f32 %v2197_v58, %v2196_v52  ;;  %v2262_v0 = vadd.f32 %v2261_v45, %v2260_v53 }
 0x123   : > { %v2199_v1 = vpop.f32.mrf.mxu1  ;;  %v2263_v2 = vpop.f32.mrf.mxu0 }
 0x124   : > { %v1466_v3 = vadd.f32 %v2198_v61, %v1369_v59  ;;  %v1393_v61 = vadd.f32 %v3047_v44, %v3066_v14 }
 0x125   : > { %v2200_v6 = vpop.f32.mrf.mxu1  ;;  %v2264_v51 = vpop.f32.mrf.mxu0 }
 0x126   : > { %v3082_v8 = vadd.f32 %v2262_v0, %v1466_v3  ;;  %v2201_v9 = vadd.f32 %v2200_v6, %v2199_v1  ;;  %v2265_v16 = vadd.f32 %v2264_v51, %v2263_v2 }
 0x127   : > { %v2202_v12 = vpop.f32.mrf.mxu1  ;;  %v2266_v13 = vpop.f32.mrf.mxu0 }
 0x128   : > { %v1469_v15 = vadd.f32 %v2201_v9, %v1372_v7  ;;  %v1396_v9 = vadd.f32 %v3049_v50, %v3066_v14 }
 0x129   : > { %v2203_v17 = vpop.f32.mrf.mxu1  ;;  %v2267_v57 = vpop.f32.mrf.mxu0 }
 0x12a   : > { %v3086_v19 = vadd.f32 %v2265_v16, %v1469_v15  ;;  %v2204_v20 = vadd.f32 %v2203_v17, %v2202_v12  ;;  %v2268_v21 = vadd.f32 %v2267_v57, %v2266_v13 }
 0x12b   : > { %v2205_v22 = vpop.f32.mrf.mxu1  ;;  %v2269_v23 = vpop.f32.mrf.mxu0 }
 0x12c   : > { %v1474_v24 = vadd.f32 %v2204_v20, %v1377_v18  ;;  %v1401_v20 = vadd.f32 %v3051_v56, %v3066_v14 }
 0x12d   : > { %v2206_v63 = vpop.f32.mrf.mxu1  ;;  %v2270_v25 = vpop.f32.mrf.mxu0 }
 0x12e   : > { %v3090_v28 = vadd.f32 %v2268_v21, %v1474_v24  ;;  %v2207_v29 = vadd.f32 %v2206_v63, %v2205_v22  ;;  %v2271_v35 = vadd.f32 %v2270_v25, %v2269_v23 }
 0x12f   : > { %v2208_v30 = vpop.f32.mrf.mxu1  ;;  %v2272_v31 = vpop.f32.mrf.mxu0 }
 0x130   : > { %v1477_v34 = vadd.f32 %v2207_v29, %v1380_v27  ;;  %v1404_v29 = vadd.f32 %v3053_v62, %v3066_v14 }
 0x131   : > { %v2209_v5 = vpop.f32.mrf.mxu1  ;;  %v2273_v33 = vpop.f32.mrf.mxu0 }
 0x132   : > { %v3094_v40 = vadd.f32 %v2271_v35, %v1477_v34  ;;  %v2210_v41 = vadd.f32 %v2209_v5, %v2208_v30  ;;  %v2274_v42 = vadd.f32 %v2273_v33, %v2272_v31 }
 0x133   : > { %v2211_v43 = vpop.f32.mrf.mxu1  ;;  %v2275_v46 = vpop.f32.mrf.mxu0 }
 0x134   : > { %v1482_v39 = vadd.f32 %v2210_v41, %v1385_v37  ;;  %v1409_v41 = vadd.f32 %v3055_v4, %v3066_v14 }
 0x135   : > { %v2212_v11 = vpop.f32.mrf.mxu1  ;;  %v2276_v47 = vpop.f32.mrf.mxu0 }
 0x136   : > { %v3098_v52 = vadd.f32 %v2274_v42, %v1482_v39  ;;  %v2213_v53 = vadd.f32 %v2212_v11, %v2211_v43  ;;  %v2277_v45 = vadd.f32 %v2276_v47, %v2275_v46 }
 0x137   : > { %v2214_v54 = vpop.f32.mrf.mxu1  ;;  %v2278_v55 = vpop.f32.mrf.mxu0 }
 0x138   : > { %v1485_v58 = vadd.f32 %v2213_v53, %v1388_v49  ;;  %v1412_v53 = vadd.f32 %v3059_v10, %v3066_v14 }
 0x139   : > { %v2215_v32 = vpop.f32.mrf.mxu1  ;;  %v2279_v59 = vpop.f32.mrf.mxu0 }
 0x13a   : > { %v3102_v0 = vadd.f32 %v2277_v45, %v1485_v58  ;;  %v2216_v1 = vadd.f32 %v2215_v32, %v2214_v54  ;;  %v2280_v2 = vadd.f32 %v2279_v59, %v2278_v55 }
 0x13b   : > { %v2217_v3 = vpop.f32.mrf.mxu1  ;;  %v2281_v6 = vpop.f32.mrf.mxu0 }
 0x13c   : > { %v1490_v51 = vadd.f32 %v2216_v1, %v1393_v61 }
 0x13d   : > { %v2218_v38 = vpop.f32.mrf.mxu1  ;;  %v2282_v7 = vpop.f32.mrf.mxu0 }
 0x13e   : > { %v3106_v12 = vadd.f32 %v2280_v2, %v1490_v51  ;;  %v2219_v13 = vadd.f32 %v2218_v38, %v2217_v3  ;;  %v2283_v57 = vadd.f32 %v2282_v7, %v2281_v6 }
 0x13f   : > { %v2220_v15 = vpop.f32.mrf.mxu1  ;;  %v2284_v16 = vpop.f32.mrf.mxu0 }
 0x140   : > { %v1493_v17 = vadd.f32 %v2219_v13, %v1396_v9 }
 0x141   : > { %v2221_v44 = vpop.f32.mrf.mxu1  ;;  %v2285_v18 = vpop.f32.mrf.mxu0 }
 0x142   : > { %v3110_v21 = vadd.f32 %v2283_v57, %v1493_v17  ;;  %v2222_v22 = vadd.f32 %v2221_v44, %v2220_v15  ;;  %v2286_v23 = vadd.f32 %v2285_v18, %v2284_v16 }
 0x143   : > { %v2223_v24 = vpop.f32.mrf.mxu1  ;;  %v2287_v63 = vpop.f32.mrf.mxu0 }
 0x144   : > { %v1498_v25 = vadd.f32 %v2222_v22, %v1401_v20 }
 0x145   : > { %v2224_v50 = vpop.f32.mrf.mxu1  ;;  %v2288_v27 = vpop.f32.mrf.mxu0 }
 0x146   : > { %v3114_v30 = vadd.f32 %v2286_v23, %v1498_v25  ;;  %v2225_v31 = vadd.f32 %v2224_v50, %v2223_v24  ;;  %v2289_v56 = vadd.f32 %v2288_v27, %v2287_v63 }
 0x147   : > { %v2226_v34 = vpop.f32.mrf.mxu1  ;;  %v2290_v35 = vpop.f32.mrf.mxu0 }
 0x148   : > { %v1501_v5 = vadd.f32 %v2225_v31, %v1404_v29 }
 0x149   : > { %v2227_v33 = vpop.f32.mrf.mxu1  ;;  %v2291_v37 = vpop.f32.mrf.mxu0 }
 0x14a   : > { %v3118_v42 = vadd.f32 %v2289_v56, %v1501_v5  ;;  %v2228_v43 = vadd.f32 %v2227_v33, %v2226_v34  ;;  %v2292_v46 = vadd.f32 %v2291_v37, %v2290_v35 }
 0x14b   : > { %v2229_v39 = vpop.f32.mrf.mxu1  ;;  %v2293_v62 = vpop.f32.mrf.mxu0 }
 0x14c   : > { %v1506_v11 = vadd.f32 %v2228_v43, %v1409_v41 }
 0x14d   : > { %v2230_v47 = vpop.f32.mrf.mxu1  ;;  %v2294_v49 = vpop.f32.mrf.mxu0 }
 0x14e   : > { %v3122_v54 = vadd.f32 %v2292_v46, %v1506_v11  ;;  %v2231_v55 = vadd.f32 %v2230_v47, %v2229_v39  ;;  %v2295_v32 = vadd.f32 %v2294_v49, %v2293_v62 }
 0x14f   : > { %v2312_v58 = vpop.f32.mrf.mxu1  ;;  %v1740_v45 = vpop.f32.mrf.mxu0 }
 0x150   : > { %v1509_v4 = vadd.f32 %v2231_v55, %v1412_v53 }
 0x151   : > { %v2313_v59 = vpop.f32.mrf.mxu1  ;;  %v1742_v61 = vpop.f32.mrf.mxu0 }
 0x152   : > { %v3126_v1 = vadd.f32 %v2295_v32, %v1509_v4  ;;  %v2314_v2 = vadd.f32 %v2313_v59, %v2312_v58 }
 0x153   : > { %v2315_v3 = vpop.f32.mrf.mxu1  ;;  %v1743_v6 = vpop.f32.mrf.mxu0 }
 0x154   : > { %v1644_v51 = vadd.f32 %v2314_v2, %v3070_v26 }
 0x155   : > { %v2316_v10 = vpop.f32.mrf.mxu1  ;;  %v1745_v14 = vpop.f32.mrf.mxu0 }
 0x156   : > { %v1741_v38 = vadd.f32 %v1740_v45, %v1644_v51  ;;  %v2317_v7 = vadd.f32 %v2316_v10, %v2315_v3 }
 0x157   : > { %v2318_v9 = vpop.f32.mrf.mxu1  ;;  %v1748_v13 = vpop.f32.mrf.mxu0 }
 0x158   : > { %v1803_v15 = vmax.f32 %v1741_v38, 0.0  ;;  %v1647_v16 = vadd.f32 %v2317_v7, %v3073_v36 }
 0x159   : > { %v2319_v17 = vpop.f32.mrf.mxu1  ;;  %v1750_v57 = vpop.f32.mrf.mxu0 }
 0x15a   : > { %1819 = vst [vmem:[%s3132_s29] sm:$0xff] %v1803_v15  ;;  %v1744_v26 = vadd.f32 %v1743_v6, %v1647_v16  ;;  %v2320_v44 = vadd.f32 %v2319_v17, %v2318_v9 }
 0x15b   : > { %v2321_v18 = vpop.f32.mrf.mxu1  ;;  %v1751_v20 = vpop.f32.mrf.mxu0 }
 0x15c   : > { %v1804_v22 = vmax.f32 %v1744_v26, 0.0  ;;  %v1652_v23 = vadd.f32 %v2320_v44, %v3076_v48 }
 0x15d   : > { %v2322_v24 = vpop.f32.mrf.mxu1  ;;  %v1753_v63 = vpop.f32.mrf.mxu0 }
 0x15e   : > { %1820 = vst [vmem:[%s3132_s29 + $0x8] sm:$0xff] %v1804_v22  ;;  %v1749_v25 = vadd.f32 %v1748_v13, %v1652_v23  ;;  %v2323_v50 = vadd.f32 %v2322_v24, %v2321_v18 }
 0x15f   : > { %v2324_v27 = vpop.f32.mrf.mxu1  ;;  %v1756_v29 = vpop.f32.mrf.mxu0 }
 0x160   : > { %v1805_v36 = vmax.f32 %v1749_v25, 0.0  ;;  %v1655_v31 = vadd.f32 %v2323_v50, %v3079_v60 }
 0x161   : > { %v2325_v34 = vpop.f32.mrf.mxu1  ;;  %v1758_v35 = vpop.f32.mrf.mxu0 }
 0x162   : > { %1821 = vst [vmem:[%s3132_s29 + $0x10] sm:$0xff] %v1805_v36  ;;  %v1752_v5 = vadd.f32 %v1751_v20, %v1655_v31  ;;  %v2326_v56 = vadd.f32 %v2325_v34, %v2324_v27 }
 0x163   : > { %v2327_v33 = vpop.f32.mrf.mxu1  ;;  %v1759_v37 = vpop.f32.mrf.mxu0 }
 0x164   : > { %v1806_v48 = vmax.f32 %v1752_v5, 0.0  ;;  %v1660_v41 = vadd.f32 %v2326_v56, %v3082_v8 }
 0x165   : > { %v2328_v43 = vpop.f32.mrf.mxu1  ;;  %v1761_v46 = vpop.f32.mrf.mxu0 }
 0x166   : > { %1822 = vst [vmem:[%s3132_s29 + $0x18] sm:$0xff] %v1806_v48  ;;  %v1757_v39 = vadd.f32 %v1756_v29, %v1660_v41  ;;  %v2329_v62 = vadd.f32 %v2328_v43, %v2327_v33 }
 0x167   : > { %v2330_v11 = vpop.f32.mrf.mxu1  ;;  %v1764_v47 = vpop.f32.mrf.mxu0 }
 0x168   : > { %v1807_v60 = vmax.f32 %v1757_v39, 0.0  ;;  %v1663_v49 = vadd.f32 %v2329_v62, %v3086_v19 }
 0x169   : > { %v2331_v53 = vpop.f32.mrf.mxu1  ;;  %v1766_v55 = vpop.f32.mrf.mxu0 }
 0x16a   : > { %1823 = vst [vmem:[%s3132_s29 + $0x20] sm:$0xff] %v1807_v60  ;;  %v1760_v58 = vadd.f32 %v1759_v37, %v1663_v49  ;;  %v2332_v45 = vadd.f32 %v2331_v53, %v2330_v11 }
 0x16b   : > { %v2333_v4 = vpop.f32.mrf.mxu1  ;;  %v1767_v32 = vpop.f32.mrf.mxu0 }
 0x16c   : > { %v1808_v8 = vmax.f32 %v1760_v58, 0.0  ;;  %v1668_v59 = vadd.f32 %v2332_v45, %v3090_v28 }
 0x16d   : > { %v2334_v61 = vpop.f32.mrf.mxu1  ;;  %v1769_v2 = vpop.f32.mrf.mxu0 }
 0x16e   : > { %1824 = vst [vmem:[%s3132_s29 + $0x28] sm:$0xff] %v1808_v8  ;;  %v1765_v3 = vadd.f32 %v1764_v47, %v1668_v59  ;;  %v2335_v6 = vadd.f32 %v2334_v61, %v2333_v4 }
 0x16f   : > { %v2336_v51 = vpop.f32.mrf.mxu1  ;;  %v1772_v10 = vpop.f32.mrf.mxu0 }
 0x170   : > { %v1809_v19 = vmax.f32 %v1765_v3, 0.0  ;;  %v1671_v14 = vadd.f32 %v2335_v6, %v3094_v40 }
 0x171   : > { %v2337_v38 = vpop.f32.mrf.mxu1  ;;  %v1774_v7 = vpop.f32.mrf.mxu0 }
 0x172   : > { %1825 = vst [vmem:[%s3132_s29 + $0x30] sm:$0xff] %v1809_v19  ;;  %v1768_v9 = vadd.f32 %v1767_v32, %v1671_v14  ;;  %v2338_v13 = vadd.f32 %v2337_v38, %v2336_v51 }
 0x173   : > { %v2339_v15 = vpop.f32.mrf.mxu1  ;;  %v1775_v16 = vpop.f32.mrf.mxu0 }
 0x174   : > { %v1810_v28 = vmax.f32 %v1768_v9, 0.0  ;;  %v1676_v17 = vadd.f32 %v2338_v13, %v3098_v52 }
 0x175   : > { %v2340_v57 = vpop.f32.mrf.mxu1  ;;  %v1777_v26 = vpop.f32.mrf.mxu0 }
 0x176   : > { %1826 = vst [vmem:[%s3132_s29 + $0x38] sm:$0xff] %v1810_v28  ;;  %v1773_v44 = vadd.f32 %v1772_v10, %v1676_v17  ;;  %v2341_v18 = vadd.f32 %v2340_v57, %v2339_v15 }
 0x177   : > { %v2342_v20 = vpop.f32.mrf.mxu1  ;;  %v1780_v22 = vpop.f32.mrf.mxu0 }
 0x178   : > { %v1811_v40 = vmax.f32 %v1773_v44, 0.0  ;;  %v1679_v23 = vadd.f32 %v2341_v18, %v3102_v0 }
 0x179   : > { %v2343_v24 = vpop.f32.mrf.mxu1  ;;  %v1782_v63 = vpop.f32.mrf.mxu0 }
 0x17a   : > { %1827 = vst [vmem:[%s3132_s29 + $0x40] sm:$0xff] %v1811_v40  ;;  %v1776_v25 = vadd.f32 %v1775_v16, %v1679_v23  ;;  %v2344_v50 = vadd.f32 %v2343_v24, %v2342_v20 }
 0x17b   : > { %v2345_v27 = vpop.f32.mrf.mxu1  ;;  %v1783_v29 = vpop.f32.mrf.mxu0 }
 0x17c   : > { %v1812_v52 = vmax.f32 %v1776_v25, 0.0  ;;  %v1684_v36 = vadd.f32 %v2344_v50, %v3106_v12 }
 0x17d   : > { %v2346_v31 = vpop.f32.mrf.mxu1  ;;  %v1785_v34 = vpop.f32.mrf.mxu0 }
 0x17e   : > { %1828 = vst [vmem:[%s3132_s29 + $0x48] sm:$0xff] %v1812_v52  ;;  %v1781_v35 = vadd.f32 %v1780_v22, %v1684_v36  ;;  %v2347_v5 = vadd.f32 %v2346_v31, %v2345_v27 }
 0x17f   : > { %v2348_v56 = vpop.f32.mrf.mxu1  ;;  %v1788_v33 = vpop.f32.mrf.mxu0 }
 0x180   : > { %v1813_v0 = vmax.f32 %v1781_v35, 0.0  ;;  %v1687_v37 = vadd.f32 %v2347_v5, %v3110_v21 }
 0x181   : > { %v2349_v48 = vpop.f32.mrf.mxu1  ;;  %v1790_v41 = vpop.f32.mrf.mxu0 }
 0x182   : > { %1829 = vst [vmem:[%s3132_s29 + $0x50] sm:$0xff] %v1813_v0  ;;  %v1784_v43 = vadd.f32 %v1783_v29, %v1687_v37  ;;  %v2350_v46 = vadd.f32 %v2349_v48, %v2348_v56 }
 0x183   : > { %v2351_v39 = vpop.f32.mrf.mxu1  ;;  %v1791_v62 = vpop.f32.mrf.mxu0 }
 0x184   : > { %v1814_v12 = vmax.f32 %v1784_v43, 0.0  ;;  %v1692_v11 = vadd.f32 %v2350_v46, %v3114_v30 }
 0x185   : > { %v2352_v47 = vpop.f32.mrf.mxu1  ;;  %v1793_v60 = vpop.f32.mrf.mxu0 }
 0x186   : > { %1830 = vst [vmem:[%s3132_s29 + $0x58] sm:$0xff] %v1814_v12  ;;  %v1789_v49 = vadd.f32 %v1788_v33, %v1692_v11  ;;  %v2353_v53 = vadd.f32 %v2352_v47, %v2351_v39 }
 0x187   : > { %v2354_v55 = vpop.f32.mrf.mxu1  ;;  %v1796_v58 = vpop.f32.mrf.mxu0 }
 0x188   : > { %v1815_v21 = vmax.f32 %v1789_v49, 0.0  ;;  %v1695_v45 = vadd.f32 %v2353_v53, %v3118_v42 }
 0x189   : > { %v2355_v4 = vpop.f32.mrf.mxu1  ;;  %v1798_v32 = vpop.f32.mrf.mxu0 }
 0x18a   : > { %1831 = vst [vmem:[%s3132_s29 + $0x60] sm:$0xff] %v1815_v21  ;;  %v1792_v8 = vadd.f32 %v1791_v62, %v1695_v45  ;;  %v2356_v59 = vadd.f32 %v2355_v4, %v2354_v55 }
 0x18b   : > { %v2357_v61 = vpop.f32.mrf.mxu1  ;;  %v1799_v30 = vpop.f32.mrf.mxu0 }
 0x18c   : > { %v1816_v2 = vmax.f32 %v1792_v8, 0.0  ;;  %v1700_v3 = vadd.f32 %v2356_v59, %v3122_v54 }
 0x18d   : > { %v2358_v6 = vpop.f32.mrf.mxu1  ;;  %v1801_v51 = vpop.f32.mrf.mxu0 }
 0x18e   : > { %1832 = vst [vmem:[%s3132_s29 + $0x68] sm:$0xff] %v1816_v2  ;;  %v1797_v10 = vadd.f32 %v1796_v58, %v1700_v3  ;;  %v2359_v19 = vadd.f32 %v2358_v6, %v2357_v61 }
 0x190   : > { %v1817_v14 = vmax.f32 %v1797_v10, 0.0  ;;  %v1703_v42 = vadd.f32 %v2359_v19, %v3126_v1 }
 0x192   : > { %1833 = vst [vmem:[%s3132_s29 + $0x70] sm:$0xff] %v1817_v14  ;;  %v1800_v38 = vadd.f32 %v1799_v30, %v1703_v42 }
 0x194   : > { %v1818_v7 = vmax.f32 %v1800_v38, 0.0 }
 0x196   : > { %1834 = vst [vmem:[%s3132_s29 + $0x78] sm:$0xff] %v1818_v7 }
 0x197 PF: > { %s13_s16 = sadd.s32 1, %s2652_s16   ;;  %s3184_s12 = smov %s2644_s14 }
 0x198   : > { %p10_p7 = scmp.ge.s32.totalorder %s13_s16, 6   ;;  %s3185_s13 = smov %s2648_s15 }
 0x199   : > { %s3186_s14 = smov %s3189_s17  ;;  %s3187_s15 = smov %s3193_s18 }
 0x19a   :  { %12 = sbr.rel (!%p10_p7) target bundleno = 3 (0x3), region = 62 }

// kernel: _lambda_.6
= control target key start
LH: loop header
LB: loop body
LE: loop exit
PB: predicated region body
PF: predicated region fallthrough
CT: control target
= control target key end

     0   :  { %s1661_s12 = smov 0   ;;  %s1663_s13 = smov 0   ;;  %s2017_s0 = inlined_call_operand.vmem [shape: bf16[2,256,576], index: 0, kind: input, shape index: {}]   ;;  %s2018_s1 = inlined_call_operand.vmem [shape: bf16[576,128], index: 1, kind: input, shape index: {}]   ;;  %s2019_s2 = inlined_call_operand.vmem [shape: f32[1,128], index: 2, kind: input, shape index: {}]   ;;  %s2020_s3 = inlined_call_operand.vmem [shape: f32[2,256,128], index: 3, kind: output, shape index: {}]  }
   0x1   :  { %s1665_s14 = smov 0   ;;  %s1667_s15 = smov 0  }
   0x2   :  { %s1669_s16 = smov 0  }
   0x3 LB: > { %s22_s17 = sadd.s32 1, %s1631_s14  ;;  %s25_s18 = sadd.s32 1, %s1635_s15  ;;  %s1639_s16 = sphi %s1669_s16, %s13_s16   ;;  %s1635_s15 = sphi %s1667_s15, %s2028_s15   ;;  %s1631_s14 = sphi %s1665_s14, %s2027_s14   ;;  %s1627_s13 = sphi %s1663_s13, %s2026_s13   ;;  %s1623_s12 = sphi %s1661_s12, %s2025_s12  }
   0x4   : > { %p23_p0 = scmp.ge.s32.totalorder %s22_s17, 2  ;;  %p1202_p1 = scmp.ge.s32.totalorder %s1639_s16, 1 }
   0x5   : > { %p159_p2 = scmp.lt.s32.totalorder %s1639_s16, 5 }
   0x6   : > { %s2030_s17 = smov (%p23_p0, %s22_s17), 0  ;;  %s2032_s18 = smov (!%p23_p0, %s25_s18), %s1635_s15 }
   0x7   : > { %p160_p3 = pnand %p1202_p1, %p159_p2  ;;  %p27_p4 = scmp.ge.s32.totalorder %s2032_s18, 2 }
   0x9   : > { %s2034_s18 = smov (%p27_p4, %s2032_s18), 0  ;;  %163 = sbr.rel (%p160_p3) target bundleno = 325 (0x145), region = 32 }
   0xe   : > { %v1509_v0 = vld [vmem:[%s2018_s1 + $0x78] sm:$0xff]   ;;  %v1513_v4 = vld [vmem:[%s2018_s1 + $0x70] sm:$0xff]   ;;  %v1517_v8 = vld [vmem:[%s2018_s1 + $0x68] sm:$0xff]   ;;  %s1203_s10 = sshll.u32 %s1623_s12, 4  ;;  %p193_p5 = scmp.lt.s32.totalorder %s1627_s13, 1  ;;  %vm757_vm0 = vcmask 523264  }
   0xf   : > { %v1510_v1 = vld [vmem:[%s2018_s1 + $0xf8] sm:$0xff]   ;;  %1295 = vmatprep.subr.bf16.mxu0 %v1509_v0  ;;  %v1514_v5 = vld [vmem:[%s2018_s1 + $0xf0] sm:$0xff]   ;;  %v1518_v9 = vld [vmem:[%s2018_s1 + $0xe8] sm:$0xff]   ;;  %p195_p6 = scmp.lt.s32.totalorder %s1203_s10, 31 }
  0x10   : > { %v1511_v2 = vld [vmem:[%s2018_s1 + $0x38] sm:$0xff]   ;;  %1359 = vmatprep.subr.bf16.mxu1 %v1510_v1  ;;  %v1515_v6 = vld [vmem:[%s2018_s1 + $0x30] sm:$0xff]   ;;  %v1519_v10 = vld [vmem:[%s2018_s1 + $0x28] sm:$0xff]   ;;  %s2036_s13 = smov (!%p193_p5, %s1627_s13), 1 }
  0x11   : > { %v1512_v3 = vld [vmem:[%s2018_s1 + $0xb8] sm:$0xff]   ;;  %1296 = vmatpush3.bf16.msra.mxu0 %v1511_v2  ;;  %v1516_v7 = vld [vmem:[%s2018_s1 + $0xb0] sm:$0xff]   ;;  %v1520_v11 = vld [vmem:[%s2018_s1 + $0xa8] sm:$0xff]   ;;  %s2038_s10 = smov (!%p195_p6, %s1203_s10), 31  ;;  %s1468_s11 = smul.u32 160, %s2036_s13 }
  0x12   : > { %1360 = vmatpush3.bf16.msra.mxu1 %v1512_v3  ;;  %1297 = vmatprep.subr.bf16.mxu0 %v1513_v4  ;;  %v1521_v12 = vld [vmem:[%s2018_s1 + $0x60] sm:$0xff]   ;;  %v1525_v16 = vld [vmem:[%s2018_s1 + $0x58] sm:$0xff]   ;;  %s1467_s21 = smul.u32 5, %s2038_s10  ;;  %v1529_v20 = vld [vmem:[%s2018_s1 + $0x50] sm:$0xff]  }
  0x13   : > { %1361 = vmatprep.subr.bf16.mxu1 %v1514_v5  ;;  %v1522_v13 = vld [vmem:[%s2018_s1 + $0xe0] sm:$0xff]   ;;  %v1526_v17 = vld [vmem:[%s2018_s1 + $0xd8] sm:$0xff]   ;;  %v1530_v21 = vld [vmem:[%s2018_s1 + $0xd0] sm:$0xff]  }
  0x14   : > { %v1523_v14 = vld [vmem:[%s2018_s1 + $0x20] sm:$0xff]   ;;  %v1527_v18 = vld [vmem:[%s2018_s1 + $0x18] sm:$0xff]   ;;  %v1531_v22 = vld [vmem:[%s2018_s1 + $0x10] sm:$0xff]   ;;  %s199_s29 = sadd.s32 %s1468_s11, %s1467_s21  ;;  %s1206_s21 = sshll.u32 %s2036_s13, 5 }
  0x15   : > { %1298 = vmatpush3.bf16.msra.mxu0 %v1515_v6  ;;  %v1524_v15 = vld [vmem:[%s2018_s1 + $0xa0] sm:$0xff]   ;;  %v1528_v19 = vld [vmem:[%s2018_s1 + $0x98] sm:$0xff]   ;;  %v1532_v23 = vld [vmem:[%s2018_s1 + $0x90] sm:$0xff]   ;;  %s1204_s9 = sshll.u32 %s199_s29, 2  ;;  %s1936_s13 = sadd.s32 %s1206_s21, %s2038_s10 }
  0x16   : > { %1362 = vmatpush3.bf16.msra.mxu1 %v1516_v7  ;;  %1299 = vmatprep.subr.bf16.mxu0 %v1517_v8  ;;  %v1533_v24 = vld [vmem:[%s2018_s1 + $0x48] sm:$0xff]   ;;  %v1537_v28 = vld [vmem:[%s2018_s1 + $0x40] sm:$0xff]   ;;  %s1797_s25 = scalar_lea.vmem %s2017_s0, %s1204_s9  ;;  %v1547_v36 = vld [vmem:[%s2018_s1 + $0x118] sm:$0xff]   ;;  %s1207_s10 = sshll.u32 %s1936_s13, 3 }
  0x17   : > { %1363 = vmatprep.subr.bf16.mxu1 %v1518_v9  ;;  %v1534_v25 = vld [vmem:[%s2018_s1 + $0xc8] sm:$0xff]   ;;  %v1538_v29 = vld [vmem:[%s2018_s1 + $0xc0] sm:$0xff]   ;;  %v1560_v42 = vld [vmem:[%s2018_s1 + $0x110] sm:$0xff]   ;;  %s1963_s24 = scalar_lea.vmem %s2020_s3, %s1207_s10 }
  0x18   : > { %v1535_v26 = vld [vmem:[%s2018_s1 + $0x8] sm:$0xff]   ;;  %v1539_v30 = vld [vmem:[%s2018_s1] sm:$0xff]   ;;  %v1556_v43 = vld [vmem:[%s1797_s25 + $0x5c] ss:$20 sps:$4 sm:$0xff]  }
  0x19   : > { %1300 = vmatpush3.bf16.msra.mxu0 %v1519_v10  ;;  %v1536_v27 = vld [vmem:[%s2018_s1 + $0x88] sm:$0xff]   ;;  %v1540_v31 = vld [vmem:[%s2018_s1 + $0x80] sm:$0xff]   ;;  %v1561_v47 = vld [vmem:[%s1797_s25 + $0x7c] ss:$20 sps:$4 sm:$0xff]  }
  0x1a   : > { %1364 = vmatpush3.bf16.msra.mxu1 %v1520_v11  ;;  %1301 = vmatprep.subr.bf16.mxu0 %v1521_v12  ;;  %v1541_v32 = vld [vmem:[%s1797_s25] ss:$20 sps:$4 sm:$0xff]   ;;  %v1543_v33 = vld [vmem:[%s1797_s25 + $0x4] ss:$20 sps:$4 sm:$0xff]   ;;  %v1544_v34 = vld [vmem:[%s1797_s25 + $0x8] ss:$20 sps:$4 sm:$0xff]  }
  0x1b   : > { %1365 = vmatprep.subr.bf16.mxu1 %v1522_v13  ;;  %v1546_v35 = vld [vmem:[%s1797_s25 + $0xc] ss:$20 sps:$4 sm:$0xff]   ;;  %814 = vmatprep.mubr.bf16.mxu0 %v1543_v33  ;;  %v1550_v38 = vld [vmem:[%s1797_s25 + $0x34] ss:$20 sps:$4 sm:$0xff]   ;;  %v1553_v40 = vld [vmem:[%s1797_s25 + $0x30] ss:$20 sps:$4 sm:$0xff]  }
  0x1c   : > { %911 = vmatprep.mubr.bf16.mxu1 %v1546_v35  ;;  %v1548_v37 = vld [vmem:[%s1797_s25 + $0x2c] ss:$20 sps:$4 sm:$0xff]   ;;  %v1552_v39 = vld [vmem:[%s1797_s25 + $0x28] ss:$20 sps:$4 sm:$0xff]   ;;  %v1558_v44 = vld [vmem:[%s1797_s25 + $0x50] ss:$20 sps:$4 sm:$0xff]  }
  0x1d   : > { %1302 = vmatpush3.bf16.msra.mxu0 %v1523_v14  ;;  %v1554_v41 = vld [vmem:[%s1797_s25 + $0x54] ss:$20 sps:$4 sm:$0xff]   ;;  %v1559_v45 = vld [vmem:[%s1797_s25 + $0x58] ss:$20 sps:$4 sm:$0xff]   ;;  %v1586_v49 = vld [vmem:[%s2018_s1 + $0x100] sm:$0xff]  }
  0x1e   : > { %1366 = vmatpush3.bf16.msra.mxu1 %v1524_v15  ;;  %1303 = vmatprep.subr.bf16.mxu0 %v1525_v16  ;;  %v1573_v46 = vld [vmem:[%s2018_s1 + $0x108] sm:$0xff]   ;;  %v1563_v48 = vld [vmem:[%s1797_s25 + $0x84] ss:$20 sps:$4 sm:$0xff]   ;;  %v1566_v51 = vld [vmem:[%s1797_s25 + $0x80] ss:$20 sps:$4 sm:$0xff]  }
  0x1f   : > { %1367 = vmatprep.subr.bf16.mxu1 %v1526_v17  ;;  %v1565_v50 = vld [vmem:[%s1797_s25 + $0x78] ss:$20 sps:$4 sm:$0xff]   ;;  %v1571_v54 = vld [vmem:[%s1797_s25 + $0xa0] ss:$20 sps:$4 sm:$0xff]   ;;  %v1572_v55 = vld [vmem:[%s1797_s25 + $0xa8] ss:$20 sps:$4 sm:$0xff]  }
  0x20   : > { %v1567_v52 = vld [vmem:[%s1797_s25 + $0xa4] ss:$20 sps:$4 sm:$0xff]   ;;  %v1569_v53 = vld [vmem:[%s1797_s25 + $0xac] ss:$20 sps:$4 sm:$0xff]   ;;  %v1576_v57 = vld [vmem:[%s1797_s25 + $0xd4] ss:$20 sps:$4 sm:$0xff]  }
  0x21   : > { %1304 = vmatpush3.bf16.msra.mxu0 %v1527_v18  ;;  %v1574_v56 = vld [vmem:[%s1797_s25 + $0xcc] ss:$20 sps:$4 sm:$0xff]   ;;  %v1578_v58 = vld [vmem:[%s1797_s25 + $0xc8] ss:$20 sps:$4 sm:$0xff]   ;;  %v1579_v59 = vld [vmem:[%s1797_s25 + $0xd0] ss:$20 sps:$4 sm:$0xff]  }
  0x22   : > { %1368 = vmatpush3.bf16.msra.mxu1 %v1528_v19  ;;  %1305 = vmatprep.subr.bf16.mxu0 %v1529_v20  ;;  %v1580_v60 = vld [vmem:[%s1797_s25 + $0xf4] ss:$20 sps:$4 sm:$0xff]   ;;  %v1582_v61 = vld [vmem:[%s1797_s25 + $0xfc] ss:$20 sps:$4 sm:$0xff]   ;;  %v1585_v63 = vld [vmem:[%s1797_s25 + $0xf8] ss:$20 sps:$4 sm:$0xff]  }
  0x23   : > { %1369 = vmatprep.subr.bf16.mxu1 %v1530_v21  ;;  %v1584_v62 = vld [vmem:[%s1797_s25 + $0xf0] ss:$20 sps:$4 sm:$0xff]   ;;  %v1591_v2 = vld [vmem:[%s1797_s25 + $0x118] ss:$20 sps:$4 sm:$0xff]   ;;  %v1592_v3 = vld [vmem:[%s1797_s25 + $0x120] ss:$20 sps:$4 sm:$0xff]  }
  0x24   : > { %v1587_v0 = vld [vmem:[%s1797_s25 + $0x11c] ss:$20 sps:$4 sm:$0xff]   ;;  %v1589_v1 = vld [vmem:[%s1797_s25 + $0x124] ss:$20 sps:$4 sm:$0xff]   ;;  %v1597_v8 = vld [vmem:[%s1797_s25 + $0x60] ss:$20 sps:$4 sm:$0xff]  }
  0x25   : > { %1306 = vmatpush3.bf16.msra.mxu0 %v1531_v22  ;;  %v1593_v4 = vld [vmem:[%s1797_s25 + $0x10] ss:$20 sps:$4 sm:$0xff]   ;;  %v1595_v6 = vld [vmem:[%s1797_s25 + $0x38] ss:$20 sps:$4 sm:$0xff]   ;;  %v1598_v9 = vld [vmem:[%s1797_s25 + $0x100] ss:$20 sps:$4 sm:$0xff]  }
  0x26   : > { %1370 = vmatpush3.bf16.msra.mxu1 %v1532_v23  ;;  %1307 = vmatprep.subr.bf16.mxu0 %v1533_v24  ;;  %v1594_v5 = vld [vmem:[%s1797_s25 + $0xb0] ss:$20 sps:$4 sm:$0xff]   ;;  %v1596_v7 = vld [vmem:[%s1797_s25 + $0xd8] ss:$20 sps:$4 sm:$0xff]   ;;  %v1599_v10 = vld [vmem:[%s1797_s25 + $0x88] ss:$20 sps:$4 sm:$0xff]  }
  0x27   : > { %1371 = vmatprep.subr.bf16.mxu1 %v1534_v25  ;;  %v1600_v11 = vld [vmem:[%s1797_s25 + $0x128] ss:$20 sps:$4 sm:$0xff]  }
  0x29   : > { %1308 = vmatpush3.bf16.msra.mxu0 %v1535_v26 }
  0x2a   : > { %1372 = vmatpush3.bf16.msra.mxu1 %v1536_v27  ;;  %1309 = vmatprep.subr.bf16.mxu0 %v1537_v28 }
  0x2b   : > { %1373 = vmatprep.subr.bf16.mxu1 %v1538_v29 }
  0x2d   : > { %1310 = vmatpush3.bf16.msra.mxu0 %v1539_v30 }
  0x2e   : > { %1374 = vmatpush3.bf16.msra.mxu1 %v1540_v31  ;;  %1435 = vmatprep.subr.bf16.mxu0 %v1547_v36 }
  0x2f   : > { %1459 = vmatprep.subr.bf16.mxu1 %v1547_v36 }
  0x30   : > { %815 = vmatmul.mubr.bf16.vlgmr.msra.gmra.mxu0 %v1541_v32 }
  0x31   : > { %912 = vmatmul.mubr.bf16.vlgmr.msra.gmra.mxu1 %v1544_v34  ;;  %1436 = vmatpush3.bf16.msra.mxu0 %v1547_v36 }
  0x32   : > { %1463 = vmatpush3.bf16.msra.mxu1 %v1547_v36  ;;  %822 = vmatprep.mubr.bf16.mxu0 %v1548_v37 }
  0x33   : > { %919 = vmatprep.mubr.bf16.mxu1 %v1550_v38  ;;  %1437 = vmatprep.subr.bf16.mxu0 %v1560_v42 }
  0x34   : > { %1460 = vmatprep.subr.bf16.mxu1 %v1560_v42 }
  0x35   : > { %1438 = vmatpush3.bf16.msra.mxu0 %v1560_v42 }
  0x36   : > { %1464 = vmatpush3.bf16.msra.mxu1 %v1560_v42  ;;  %1439 = vmatprep.subr.bf16.mxu0 %v1573_v46 }
  0x37   : > { %1461 = vmatprep.subr.bf16.mxu1 %v1573_v46 }
  0x38   : > { %823 = vmatmul.mubr.bf16.gmra.mxu0 %v1552_v39 }
  0x39   : > { %920 = vmatmul.mubr.bf16.gmra.mxu1 %v1553_v40  ;;  %830 = vmatprep.mubr.bf16.mxu0 %v1554_v41 }
  0x3a   : > { %927 = vmatprep.mubr.bf16.mxu1 %v1556_v43  ;;  %1440 = vmatpush3.bf16.msra.mxu0 %v1573_v46 }
  0x3b   : > { %1465 = vmatpush3.bf16.msra.mxu1 %v1573_v46  ;;  %1441 = vmatprep.subr.bf16.mxu0 %v1586_v49 }
  0x3c   : > { %1462 = vmatprep.subr.bf16.mxu1 %v1586_v49 }
  0x3e   : > { %1442 = vmatpush3.bf16.msra.mxu0 %v1586_v49 }
  0x3f   : > { %1466 = vmatpush3.bf16.msra.mxu1 %v1586_v49 }
  0x40   : > { %831 = vmatmul.mubr.bf16.gmra.mxu0 %v1558_v44 }
  0x41   : > { %928 = vmatmul.mubr.bf16.gmra.mxu1 %v1559_v45  ;;  %838 = vmatprep.mubr.bf16.mxu0 %v1561_v47 }
  0x42   : > { %935 = vmatprep.mubr.bf16.mxu1 %v1563_v48 }
  0x48   : > { %839 = vmatmul.mubr.bf16.gmra.mxu0 %v1565_v50 }
  0x49   : > { %936 = vmatmul.mubr.bf16.gmra.mxu1 %v1566_v51  ;;  %846 = vmatprep.mubr.bf16.mxu0 %v1567_v52 }
  0x4a   : > { %943 = vmatprep.mubr.bf16.mxu1 %v1569_v53 }
  0x50   : > { %847 = vmatmul.mubr.bf16.gmra.mxu0 %v1571_v54 }
  0x51   : > { %944 = vmatmul.mubr.bf16.gmra.mxu1 %v1572_v55  ;;  %854 = vmatprep.mubr.bf16.mxu0 %v1574_v56 }
  0x52   : > { %951 = vmatprep.mubr.bf16.mxu1 %v1576_v57 }
  0x58   : > { %855 = vmatmul.mubr.bf16.gmra.mxu0 %v1578_v58 }
  0x59   : > { %952 = vmatmul.mubr.bf16.gmra.mxu1 %v1579_v59  ;;  %862 = vmatprep.mubr.bf16.mxu0 %v1580_v60 }
  0x5a   : > { %959 = vmatprep.mubr.bf16.mxu1 %v1582_v61 }
  0x60   : > { %863 = vmatmul.mubr.bf16.gmra.mxu0 %v1584_v62 }
  0x61   : > { %960 = vmatmul.mubr.bf16.gmra.mxu1 %v1585_v63  ;;  %870 = vmatprep.mubr.bf16.mxu0 %v1587_v0 }
  0x62   : > { %967 = vmatprep.mubr.bf16.mxu1 %v1589_v1 }
  0x68   : > { %871 = vmatmul.mubr.bf16.gmra.mxu0 %v1591_v2  ;;  %v1914_v2 = vld [vmem:[%s2019_s2] ss:$0 sm:$0xff] }
  0x69   : > { %968 = vmatmul.mubr.bf16.gmra.mxu1 %v1592_v3  ;;  %1443 = vmatprep.mubr.msk.bf16.mxu0 %vm757_vm0, %v1593_v4 }
  0x6a   : > { %1451 = vmatprep.mubr.msk.bf16.mxu1 %vm757_vm0, %v1594_v5 }
  0x70   : > { %1444 = vmatmul.mubr.msk.bf16.vlgmr.msra.gmra.mxu0 %vm757_vm0, %v1595_v6 }
  0x71   : > { %1452 = vmatmul.mubr.msk.bf16.vlgmr.msra.gmra.mxu1 %vm757_vm0, %v1596_v7  ;;  %1447 = vmatprep.mubr.msk.bf16.mxu0 %vm757_vm0, %v1597_v8 }
  0x72   : > { %1455 = vmatprep.mubr.msk.bf16.mxu1 %vm757_vm0, %v1598_v9 }
  0x78   : > { %1448 = vmatmul.mubr.msk.bf16.gmra.mxu0 %vm757_vm0, %v1599_v10 }
  0x79   : > { %1456 = vmatmul.mubr.msk.bf16.gmra.mxu1 %vm757_vm0, %v1600_v11 }
  0xf0   : > { %v1311_v12 = vpop.f32.mrf.mxu0 }
  0xf1   : > { %v1865_v13 = vpop.f32.mrf.mxu1 }
  0xf2   : > { %v1312_v14 = vpop.f32.mrf.mxu0 }
  0xf3   : > { %v1376_v15 = vpop.f32.mrf.mxu1  ;;  %v1313_v0 = vadd.f32 %v1312_v14, %v1311_v12 }
  0xf4   : > { %v1314_v16 = vpop.f32.mrf.mxu0  ;;  %v1377_v14 = vadd.f32 %v1376_v15, %v1865_v13 }
  0xf5   : > { %v1867_v17 = vpop.f32.mrf.mxu1  ;;  %v817_v10 = vadd.f32 %v1313_v0, %v1914_v2 }
  0xf6   : > { %v1315_v18 = vpop.f32.mrf.mxu0 }
  0xf7   : > { %v1379_v19 = vpop.f32.mrf.mxu1  ;;  %v1316_v3 = vadd.f32 %v1315_v18, %v1314_v16 }
  0xf8   : > { %v1317_v20 = vpop.f32.mrf.mxu0  ;;  %v1380_v16 = vadd.f32 %v1379_v19, %v1867_v17  ;;  %v914_v17 = vadd.f32 %v1377_v14, %v817_v10 }
  0xf9   : > { %v1869_v21 = vpop.f32.mrf.mxu1 }
  0xfa   : > { %v1318_v22 = vpop.f32.mrf.mxu0 }
  0xfb   : > { %v1871_v23 = vpop.f32.mrf.mxu1  ;;  %v1319_v5 = vadd.f32 %v1318_v22, %v1317_v20 }
  0xfc   : > { %v1320_v24 = vpop.f32.mrf.mxu0  ;;  %v1383_v15 = vadd.f32 %v1871_v23, %v1869_v21 }
  0xfd   : > { %v1873_v25 = vpop.f32.mrf.mxu1  ;;  %v825_v18 = vadd.f32 %v1319_v5, %v1914_v2 }
  0xfe   : > { %v1321_v26 = vpop.f32.mrf.mxu0 }
  0xff   : > { %v1875_v27 = vpop.f32.mrf.mxu1  ;;  %v1322_v7 = vadd.f32 %v1321_v26, %v1320_v24 }
 0x100   : > { %v1323_v28 = vpop.f32.mrf.mxu0  ;;  %v1386_v19 = vadd.f32 %v1875_v27, %v1873_v25 }
 0x101   : > { %v1877_v29 = vpop.f32.mrf.mxu1  ;;  %v828_v26 = vadd.f32 %v1322_v7, %v1914_v2 }
 0x102   : > { %v1324_v30 = vpop.f32.mrf.mxu0 }
 0x103   : > { %v1879_v31 = vpop.f32.mrf.mxu1  ;;  %v1325_v8 = vadd.f32 %v1324_v30, %v1323_v28  ;;  %v925_v27 = vadd.f32 %v1386_v19, %v828_v26 }
 0x104   : > { %v1326_v32 = vpop.f32.mrf.mxu0 }
 0x105   : > { %v1881_v33 = vpop.f32.mrf.mxu1  ;;  %v833_v28 = vadd.f32 %v1325_v8, %v1914_v2 }
 0x106   : > { %2021 = vst [vmem:[#allocation2_spill] sm:$0xff] %v1881_v33  ;;  %v1327_v34 = vpop.f32.mrf.mxu0 }
 0x107   : > { %v1883_v35 = vpop.f32.mrf.mxu1  ;;  %v1328_v30 = vadd.f32 %v1327_v34, %v1326_v32 }
 0x108   : > { %2022 = vst [vmem:[#allocation3_spill] sm:$0xff] %v1883_v35  ;;  %v1329_v36 = vpop.f32.mrf.mxu0  ;;  %v820_v35 = vadd.f32 %v1316_v3, %v1914_v2 }
 0x109   : > { %v1885_v37 = vpop.f32.mrf.mxu1 }
 0x10a   : > { %v1330_v38 = vpop.f32.mrf.mxu0  ;;  %v917_v34 = vadd.f32 %v1380_v16, %v820_v35 }
 0x10b   : > { %v1887_v39 = vpop.f32.mrf.mxu1  ;;  %v1331_v20 = vadd.f32 %v1330_v38, %v1329_v36  ;;  %v1389_v36 = vadd.f32 %v1879_v31, %v1877_v29 }
 0x10c   : > { %v1889_v40 = vpop.f32.mrf.mxu0  ;;  %v1395_v31 = vadd.f32 %v1887_v39, %v1885_v37 }
 0x10d   : > { %v1891_v41 = vpop.f32.mrf.mxu1  ;;  %v1951_v29 = vadd.f32 %v1389_v36, %v833_v28 }
 0x10e   : > { %v1893_v42 = vpop.f32.mrf.mxu0 }
 0x10f   : > { %v1895_v43 = vpop.f32.mrf.mxu1 }
 0x110   : > { %v1335_v44 = vpop.f32.mrf.mxu0 }
 0x111   : > { %v1897_v45 = vpop.f32.mrf.mxu1 }
 0x112   : > { %v1336_v46 = vpop.f32.mrf.mxu0 }
 0x113   : > { %v1899_v47 = vpop.f32.mrf.mxu1  ;;  %v1337_v22 = vadd.f32 %v1336_v46, %v1335_v44  ;;  %v841_v44 = vadd.f32 %v1331_v20, %v1914_v2 }
 0x114   : > { %v1338_v48 = vpop.f32.mrf.mxu0  ;;  %v1401_v35 = vadd.f32 %v1899_v47, %v1897_v45 }
 0x115   : > { %v1901_v49 = vpop.f32.mrf.mxu1  ;;  %v849_v21 = vadd.f32 %v1337_v22, %v1914_v2  ;;  %v938_v47 = vadd.f32 %v1395_v31, %v841_v44  ;;  %v1398_v44 = vadd.f32 %v1895_v43, %v1891_v41  ;;  %v2023_v31 = vld [vmem:[#allocation2_spill] sm:$0xff] }
 0x116   : > { %v1339_v50 = vpop.f32.mrf.mxu0 }
 0x117   : > { %v1903_v51 = vpop.f32.mrf.mxu1  ;;  %v1340_v38 = vadd.f32 %v1339_v50, %v1338_v48  ;;  %v946_v45 = vadd.f32 %v1401_v35, %v849_v21  ;;  %v2024_v35 = vld [vmem:[#allocation3_spill] sm:$0xff] }
 0x118   : > { %v1341_v52 = vpop.f32.mrf.mxu0 }
 0x119   : > { %v1405_v53 = vpop.f32.mrf.mxu1 }
 0x11a   : > { %v1342_v54 = vpop.f32.mrf.mxu0 }
 0x11b   : > { %v1406_v55 = vpop.f32.mrf.mxu1  ;;  %v1343_v11 = vadd.f32 %v1342_v54, %v1341_v52 }
 0x11c   : > { %v1344_v56 = vpop.f32.mrf.mxu0  ;;  %v1407_v23 = vadd.f32 %v1406_v55, %v1405_v53  ;;  %v852_v55 = vadd.f32 %v1340_v38, %v1914_v2 }
 0x11d   : > { %v1408_v57 = vpop.f32.mrf.mxu1  ;;  %v857_v54 = vadd.f32 %v1343_v11, %v1914_v2  ;;  %v1334_v11 = vadd.f32 %v1893_v42, %v1889_v40 }
 0x11e   : > { %v1345_v58 = vpop.f32.mrf.mxu0 }
 0x11f   : > { %v1409_v59 = vpop.f32.mrf.mxu1  ;;  %v1346_v52 = vadd.f32 %v1345_v58, %v1344_v56  ;;  %v922_v56 = vadd.f32 %v1383_v15, %v825_v18  ;;  %v1947_v58 = vadd.f32 %v1328_v30, %v1914_v2  ;;  %v954_v53 = vadd.f32 %v1407_v23, %v857_v54 }
 0x120   : > { %v1347_v60 = vpop.f32.mrf.mxu0  ;;  %v1410_v5 = vadd.f32 %v1409_v59, %v1408_v57  ;;  %v844_v54 = vadd.f32 %v1334_v11, %v1914_v2 }
 0x121   : > { %v1905_v61 = vpop.f32.mrf.mxu1  ;;  %v860_v3 = vadd.f32 %v1346_v52, %v1914_v2 }
 0x122   : > { %v1348_v62 = vpop.f32.mrf.mxu0 }
 0x123   : > { %v1907_v63 = vpop.f32.mrf.mxu1  ;;  %v1349_v7 = vadd.f32 %v1348_v62, %v1347_v60  ;;  %v957_v62 = vadd.f32 %v1410_v5, %v860_v3 }
 0x124   : > { %v1909_v1 = vpop.f32.mrf.mxu0 }
 0x125   : > { %v1916_v4 = vpop.f32.mrf.mxu1  ;;  %v865_v20 = vadd.f32 %v1349_v7, %v1914_v2 }
 0x126   : > { %v1918_v6 = vpop.f32.mrf.mxu0 }
 0x127   : > { %v1920_v9 = vpop.f32.mrf.mxu1 }
 0x128   : > { %v1353_v12 = vpop.f32.mrf.mxu0 }
 0x129   : > { %v1925_v33 = vpop.f32.mrf.mxu1 }
 0x12a   : > { %v1354_v24 = vpop.f32.mrf.mxu0 }
 0x12b   : > { %v1418_v13 = vpop.f32.mrf.mxu1  ;;  %v1355_v48 = vadd.f32 %v1354_v24, %v1353_v12  ;;  %v1404_v12 = vadd.f32 %v1903_v51, %v1901_v49  ;;  %v1352_v51 = vadd.f32 %v1918_v6, %v1909_v1 }
 0x12c   : > { %v1356_v0 = vpop.f32.mrf.mxu0  ;;  %v1419_v28 = vadd.f32 %v1418_v13, %v1925_v33 }
 0x12d   : > { %v1942_v32 = vpop.f32.mrf.mxu1  ;;  %v873_v40 = vadd.f32 %v1355_v48, %v1914_v2  ;;  %v949_v49 = vadd.f32 %v1404_v12, %v852_v55  ;;  %v1392_v48 = vadd.f32 %v2024_v35, %v2023_v31 }
 0x12e   : > { %v1357_v46 = vpop.f32.mrf.mxu0 }
 0x12f   : > { %v1421_v25 = vpop.f32.mrf.mxu1  ;;  %v1358_v42 = vadd.f32 %v1357_v46, %v1356_v0  ;;  %v1413_v0 = vadd.f32 %v1907_v63, %v1905_v61  ;;  %v970_v13 = vadd.f32 %v1419_v28, %v873_v40 }
 0x130   : > { %v1445_v50 = vpop.f32.mrf.mxu0  ;;  %v1422_v46 = vadd.f32 %v1421_v25, %v1942_v32 }
 0x131   : > { %v1019_v8 = vadd.f32 %v1445_v50, %v922_v56  ;;  %v1453_v10 = vpop.f32.mrf.mxu1  ;;  %v876_v38 = vadd.f32 %v1358_v42, %v1914_v2  ;;  %v962_v63 = vadd.f32 %v1413_v0, %v865_v20 }
 0x132   : > { %v1051_v37 = vadd.f32 %v1453_v10, %v954_v53  ;;  %v1010_v39 = vpop.f32.mrf.mxu0  ;;  %v941_v53 = vadd.f32 %v1398_v44, %v844_v54 }
 0x133   : > { %v1075_v57 = vmax.f32 %v1019_v8, 0.0  ;;  %v1011_v59 = vadd.f32 %v1010_v39, %v914_v17  ;;  %v1042_v60 = vpop.f32.mrf.mxu1  ;;  %v973_v5 = vadd.f32 %v1422_v46, %v876_v38 }
 0x134   : > { %v1083_v14 = vmax.f32 %v1051_v37, 0.0  ;;  %v1043_v16 = vadd.f32 %v1042_v60, %v946_v45  ;;  %v1446_v18 = vpop.f32.mrf.mxu0 }
 0x135   : > { %1091 = vst [vmem:[%s1963_s24 + $0x10] sm:$0xff] %v1075_v57  ;;  %v1073_v22 = vmax.f32 %v1011_v59, 0.0  ;;  %v1022_v24 = vadd.f32 %v1446_v18, %v925_v27  ;;  %v1454_v26 = vpop.f32.mrf.mxu1 }
 0x136   : > { %1099 = vst [vmem:[%s1963_s24 + $0x50] sm:$0xff] %v1083_v14  ;;  %v1081_v30 = vmax.f32 %v1043_v16, 0.0  ;;  %v1054_v52 = vadd.f32 %v1454_v26, %v957_v62  ;;  %v1013_v15 = vpop.f32.mrf.mxu0 }
 0x137   : > { %1089 = vst [vmem:[%s1963_s24] sm:$0xff] %v1073_v22  ;;  %v1076_v17 = vmax.f32 %v1022_v24, 0.0  ;;  %v1014_v19 = vadd.f32 %v1013_v15, %v917_v34  ;;  %v1045_v36 = vpop.f32.mrf.mxu1  ;;  %v868_v34 = vadd.f32 %v1352_v51, %v1914_v2  ;;  %v1416_v2 = vadd.f32 %v1920_v9, %v1916_v4 }
 0x138   : > { %1097 = vst [vmem:[%s1963_s24 + $0x40] sm:$0xff] %v1081_v30  ;;  %v1084_v1 = vmax.f32 %v1054_v52, 0.0  ;;  %v1046_v33 = vadd.f32 %v1045_v36, %v949_v49  ;;  %v1449_v6 = vpop.f32.mrf.mxu0 }
 0x139   : > { %1092 = vst [vmem:[%s1963_s24 + $0x18] sm:$0xff] %v1076_v17  ;;  %v1074_v21 = vmax.f32 %v1014_v19, 0.0  ;;  %v1035_v23 = vadd.f32 %v1449_v6, %v938_v47  ;;  %v1457_v61 = vpop.f32.mrf.mxu1  ;;  %v965_v37 = vadd.f32 %v1416_v2, %v868_v34 }
 0x13a   : > { %1100 = vst [vmem:[%s1963_s24 + $0x58] sm:$0xff] %v1084_v1  ;;  %v1082_v56 = vmax.f32 %v1046_v33, 0.0  ;;  %v1067_v3 = vadd.f32 %v1457_v61, %v970_v13  ;;  %v1026_v27 = vpop.f32.mrf.mxu0 }
 0x13b   : > { %1090 = vst [vmem:[%s1963_s24 + $0x8] sm:$0xff] %v1074_v21  ;;  %v1079_v41 = vmax.f32 %v1035_v23, 0.0  ;;  %v1027_v43 = vadd.f32 %v1026_v27, %v1951_v29  ;;  %v1058_v50 = vpop.f32.mrf.mxu1  ;;  %v933_v29 = vadd.f32 %v1392_v48, %v1947_v58 }
 0x13c   : > { %1098 = vst [vmem:[%s1963_s24 + $0x48] sm:$0xff] %v1082_v56  ;;  %v1087_v32 = vmax.f32 %v1067_v3, 0.0  ;;  %v1059_v25 = vadd.f32 %v1058_v50, %v962_v63  ;;  %v1450_v55 = vpop.f32.mrf.mxu0 }
 0x13d   : > { %1095 = vst [vmem:[%s1963_s24 + $0x30] sm:$0xff] %v1079_v41  ;;  %v1077_v7 = vmax.f32 %v1027_v43, 0.0  ;;  %v1038_v8 = vadd.f32 %v1450_v55, %v941_v53  ;;  %v1458_v10 = vpop.f32.mrf.mxu1 }
 0x13e   : > { %1103 = vst [vmem:[%s1963_s24 + $0x70] sm:$0xff] %v1087_v32  ;;  %v1085_v11 = vmax.f32 %v1059_v25, 0.0  ;;  %v1070_v4 = vadd.f32 %v1458_v10, %v973_v5  ;;  %v1029_v9 = vpop.f32.mrf.mxu0 }
 0x13f   : > { %1093 = vst [vmem:[%s1963_s24 + $0x20] sm:$0xff] %v1077_v7  ;;  %v1080_v39 = vmax.f32 %v1038_v8, 0.0  ;;  %v1030_v45 = vadd.f32 %v1029_v9, %v933_v29  ;;  %v1061_v47 = vpop.f32.mrf.mxu1 }
 0x140   : > { %1101 = vst [vmem:[%s1963_s24 + $0x60] sm:$0xff] %v1085_v11  ;;  %v1088_v12 = vmax.f32 %v1070_v4, 0.0  ;;  %v1062_v57 = vadd.f32 %v1061_v47, %v965_v37 }
 0x141   : > { %1096 = vst [vmem:[%s1963_s24 + $0x38] sm:$0xff] %v1080_v39  ;;  %v1078_v59 = vmax.f32 %v1030_v45, 0.0 }
 0x142   : > { %1104 = vst [vmem:[%s1963_s24 + $0x78] sm:$0xff] %v1088_v12  ;;  %v1086_v60 = vmax.f32 %v1062_v57, 0.0 }
 0x143   : > { %1094 = vst [vmem:[%s1963_s24 + $0x28] sm:$0xff] %v1078_v59 }
 0x144   : > { %1102 = vst [vmem:[%s1963_s24 + $0x68] sm:$0xff] %v1086_v60 }
 0x145 PF: > { %s13_s16 = sadd.s32 1, %s1639_s16   ;;  %s2025_s12 = smov %s1631_s14 }
 0x146   : > { %p10_p7 = scmp.ge.s32.totalorder %s13_s16, 6   ;;  %s2026_s13 = smov %s1635_s15 }
 0x147   : > { %s2027_s14 = smov %s2030_s17  ;;  %s2028_s15 = smov %s2034_s18 }
 0x148   :  { %12 = sbr.rel (!%p10_p7) target bundleno = 3 (0x3), region = 62 }

// kernel: _lambda_.7
= control target key start
LH: loop header
LB: loop body
LE: loop exit
PB: predicated region body
PF: predicated region fallthrough
CT: control target
= control target key end

     0   :  { %s2136_s12 = smov 0   ;;  %s2138_s13 = smov 0   ;;  %s2646_s0 = inlined_call_operand.vmem [shape: bf16[2,256,864], index: 0, kind: input, shape index: {}]   ;;  %s2647_s1 = inlined_call_operand.vmem [shape: bf16[864,128], index: 1, kind: input, shape index: {}]   ;;  %s2648_s2 = inlined_call_operand.vmem [shape: f32[1,128], index: 2, kind: input, shape index: {}]   ;;  %s2649_s3 = inlined_call_operand.vmem [shape: f32[2,256,128], index: 3, kind: output, shape index: {}]  }
   0x1   :  { %s2140_s14 = smov 0   ;;  %s2142_s15 = smov 0  }
   0x2   :  { %s2144_s16 = smov 0  }
   0x3 LB: > { %s22_s17 = sadd.s32 1, %s2106_s14  ;;  %s25_s18 = sadd.s32 1, %s2110_s15  ;;  %s2114_s16 = sphi %s2144_s16, %s13_s16   ;;  %s2110_s15 = sphi %s2142_s15, %s2677_s15   ;;  %s2106_s14 = sphi %s2140_s14, %s2676_s14   ;;  %s2102_s13 = sphi %s2138_s13, %s2675_s13   ;;  %s2098_s12 = sphi %s2136_s12, %s2674_s12  }
   0x4   : > { %p23_p0 = scmp.ge.s32.totalorder %s22_s17, 2  ;;  %p1539_p1 = scmp.ge.s32.totalorder %s2114_s16, 1 }
   0x5   : > { %p159_p2 = scmp.lt.s32.totalorder %s2114_s16, 5 }
   0x6   : > { %s2679_s17 = smov (%p23_p0, %s22_s17), 0  ;;  %s2681_s18 = smov (!%p23_p0, %s25_s18), %s2110_s15 }
   0x7   : > { %p160_p3 = pnand %p1539_p1, %p159_p2  ;;  %p27_p4 = scmp.ge.s32.totalorder %s2681_s18, 2 }
   0x9   : > { %s2683_s18 = smov (%p27_p4, %s2681_s18), 0  ;;  %163 = sbr.rel (%p160_p3) target bundleno = 375 (0x177), region = 32 }
   0xe   : > { %v1942_v0 = vld [vmem:[%s2647_s1 + $0x78] sm:$0xff]   ;;  %v1946_v4 = vld [vmem:[%s2647_s1 + $0x70] sm:$0xff]   ;;  %s1540_s8 = sshll.u32 %s2098_s12, 4  ;;  %v1950_v8 = vld [vmem:[%s2647_s1 + $0x68] sm:$0xff]   ;;  %p193_p5 = scmp.lt.s32.totalorder %s2102_s13, 1  ;;  %vm997_vm0 = vcmask 785408  }
   0xf   : > { %v1943_v1 = vld [vmem:[%s2647_s1 + $0x38] sm:$0xff]   ;;  %1666 = vmatprep.subr.bf16.mxu0 %v1942_v0  ;;  %v1947_v5 = vld [vmem:[%s2647_s1 + $0x30] sm:$0xff]   ;;  %v1951_v9 = vld [vmem:[%s2647_s1 + $0x28] sm:$0xff]   ;;  %p195_p6 = scmp.lt.s32.totalorder %s1540_s8, 31 }
  0x10   : > { %v1944_v2 = vld [vmem:[%s2647_s1 + $0xf8] sm:$0xff]   ;;  %1667 = vmatpush3.bf16.msra.mxu0 %v1943_v1  ;;  %v1948_v6 = vld [vmem:[%s2647_s1 + $0xf0] sm:$0xff]   ;;  %v1952_v10 = vld [vmem:[%s2647_s1 + $0xe8] sm:$0xff]   ;;  %s2685_s13 = smov (!%p193_p5, %s2102_s13), 1 }
  0x11   : > { %v1945_v3 = vld [vmem:[%s2647_s1 + $0xb8] sm:$0xff]   ;;  %1730 = vmatprep.subr.bf16.mxu1 %v1944_v2  ;;  %1668 = vmatprep.subr.bf16.mxu0 %v1946_v4  ;;  %v1949_v7 = vld [vmem:[%s2647_s1 + $0xb0] sm:$0xff]   ;;  %v1953_v11 = vld [vmem:[%s2647_s1 + $0xa8] sm:$0xff]   ;;  %s2687_s8 = smov (!%p195_p6, %s1540_s8), 31  ;;  %s1901_s9 = smul.u32 224, %s2685_s13 }
  0x12   : > { %1731 = vmatpush3.bf16.msra.mxu1 %v1945_v3  ;;  %v1954_v12 = vld [vmem:[%s2647_s1 + $0x60] sm:$0xff]   ;;  %v1958_v16 = vld [vmem:[%s2647_s1 + $0x58] sm:$0xff]   ;;  %s1900_s19 = smul.u32 7, %s2687_s8  ;;  %v1962_v20 = vld [vmem:[%s2647_s1 + $0x50] sm:$0xff]  }
  0x13   : > { %1732 = vmatprep.subr.bf16.mxu1 %v1948_v6  ;;  %v1955_v13 = vld [vmem:[%s2647_s1 + $0x20] sm:$0xff]   ;;  %v1959_v17 = vld [vmem:[%s2647_s1 + $0x18] sm:$0xff]   ;;  %v1963_v21 = vld [vmem:[%s2647_s1 + $0x10] sm:$0xff]  }
  0x14   : > { %1669 = vmatpush3.bf16.msra.mxu0 %v1947_v5  ;;  %v1956_v14 = vld [vmem:[%s2647_s1 + $0xe0] sm:$0xff]   ;;  %v1960_v18 = vld [vmem:[%s2647_s1 + $0xd8] sm:$0xff]   ;;  %v1964_v22 = vld [vmem:[%s2647_s1 + $0xd0] sm:$0xff]   ;;  %s199_s27 = sadd.s32 %s1901_s9, %s1900_s19  ;;  %s1543_s9 = sshll.u32 %s2685_s13, 5 }
  0x15   : > { %1670 = vmatprep.subr.bf16.mxu0 %v1950_v8  ;;  %v1957_v15 = vld [vmem:[%s2647_s1 + $0xa0] sm:$0xff]   ;;  %v1961_v19 = vld [vmem:[%s2647_s1 + $0x98] sm:$0xff]   ;;  %v1965_v23 = vld [vmem:[%s2647_s1 + $0x90] sm:$0xff]   ;;  %s1541_s7 = sshll.u32 %s199_s27, 2  ;;  %s209_s19 = sadd.s32 %s1543_s9, %s2687_s8 }
  0x16   : > { %1733 = vmatpush3.bf16.msra.mxu1 %v1949_v7  ;;  %v1966_v24 = vld [vmem:[%s2647_s1 + $0x48] sm:$0xff]   ;;  %v1970_v28 = vld [vmem:[%s2647_s1 + $0x40] sm:$0xff]   ;;  %s2269_s23 = scalar_lea.vmem %s2646_s0, %s1541_s7  ;;  %v1977_v34 = vld [vmem:[%s2647_s1 + $0x178] sm:$0xff]   ;;  %s1544_s20 = sshll.u32 %s209_s19, 3 }
  0x17   : > { %1734 = vmatprep.subr.bf16.mxu1 %v1952_v10  ;;  %v1967_v25 = vld [vmem:[%s2647_s1 + $0x8] sm:$0xff]   ;;  %v1971_v29 = vld [vmem:[%s2647_s1] sm:$0xff]   ;;  %v1981_v37 = vld [vmem:[%s2647_s1 + $0x138] sm:$0xff]   ;;  %s2550_s21 = scalar_lea.vmem %s2649_s3, %s1544_s20 }
  0x18   : > { %1671 = vmatpush3.bf16.msra.mxu0 %v1951_v9  ;;  %v1968_v26 = vld [vmem:[%s2647_s1 + $0xc8] sm:$0xff]   ;;  %v1972_v30 = vld [vmem:[%s2647_s1 + $0xc0] sm:$0xff]   ;;  %v1982_v38 = vld [vmem:[%s2269_s23 + $0x3c] ss:$28 sps:$4 sm:$0xff]  }
  0x19   : > { %1672 = vmatprep.subr.bf16.mxu0 %v1954_v12  ;;  %v1969_v27 = vld [vmem:[%s2647_s1 + $0x88] sm:$0xff]   ;;  %v1973_v31 = vld [vmem:[%s2269_s23] ss:$28 sps:$4 sm:$0xff]   ;;  %v1984_v39 = vld [vmem:[%s2269_s23 + $0x38] ss:$28 sps:$4 sm:$0xff]  }
  0x1a   : > { %1735 = vmatpush3.bf16.msra.mxu1 %v1953_v11  ;;  %v1975_v32 = vld [vmem:[%s2269_s23 + $0x4] ss:$28 sps:$4 sm:$0xff]   ;;  %v1980_v36 = vld [vmem:[%s2269_s23 + $0xc] ss:$28 sps:$4 sm:$0xff]   ;;  %v1985_v40 = vld [vmem:[%s2647_s1 + $0x170] sm:$0xff]  }
  0x1b   : > { %1736 = vmatprep.subr.bf16.mxu1 %v1956_v14  ;;  %v1976_v33 = vld [vmem:[%s2647_s1 + $0x80] sm:$0xff]   ;;  %1054 = vmatprep.mubr.bf16.mxu0 %v1975_v32  ;;  %v1988_v42 = vld [vmem:[%s2647_s1 + $0x130] sm:$0xff]   ;;  %v1993_v45 = vld [vmem:[%s2647_s1 + $0x168] sm:$0xff]  }
  0x1c   : > { %1673 = vmatpush3.bf16.msra.mxu0 %v1955_v13  ;;  %v1978_v35 = vld [vmem:[%s2269_s23 + $0x8] ss:$28 sps:$4 sm:$0xff]   ;;  %1151 = vmatprep.mubr.bf16.mxu1 %v1980_v36  ;;  %v1989_v43 = vld [vmem:[%s2269_s23 + $0x40] ss:$28 sps:$4 sm:$0xff]   ;;  %v1990_v44 = vld [vmem:[%s2269_s23 + $0x74] ss:$28 sps:$4 sm:$0xff]  }
  0x1d   : > { %1674 = vmatprep.subr.bf16.mxu0 %v1958_v16  ;;  %v1986_v41 = vld [vmem:[%s2269_s23 + $0x44] ss:$28 sps:$4 sm:$0xff]   ;;  %v1994_v46 = vld [vmem:[%s2269_s23 + $0x7c] ss:$28 sps:$4 sm:$0xff]   ;;  %v1996_v47 = vld [vmem:[%s2647_s1 + $0x128] sm:$0xff]  }
  0x1e   : > { %1737 = vmatpush3.bf16.msra.mxu1 %v1957_v15  ;;  %v1992_v48 = vld [vmem:[%s2269_s23 + $0x70] ss:$28 sps:$4 sm:$0xff]   ;;  %v2001_v50 = vld [vmem:[%s2647_s1 + $0x160] sm:$0xff]   ;;  %v1997_v51 = vld [vmem:[%s2269_s23 + $0x78] ss:$28 sps:$4 sm:$0xff]  }
  0x1f   : > { %1738 = vmatprep.subr.bf16.mxu1 %v1960_v18  ;;  %v1998_v49 = vld [vmem:[%s2269_s23 + $0xac] ss:$28 sps:$4 sm:$0xff]   ;;  %v2004_v52 = vld [vmem:[%s2647_s1 + $0x120] sm:$0xff]   ;;  %v2002_v53 = vld [vmem:[%s2269_s23 + $0xb4] ss:$28 sps:$4 sm:$0xff]  }
  0x20   : > { %1675 = vmatpush3.bf16.msra.mxu0 %v1959_v17  ;;  %v2009_v54 = vld [vmem:[%s2647_s1 + $0x158] sm:$0xff]   ;;  %v2000_v55 = vld [vmem:[%s2269_s23 + $0xa8] ss:$28 sps:$4 sm:$0xff]   ;;  %v2005_v59 = vld [vmem:[%s2269_s23 + $0xb0] ss:$28 sps:$4 sm:$0xff]  }
  0x21   : > { %1676 = vmatprep.subr.bf16.mxu0 %v1962_v20  ;;  %v2012_v56 = vld [vmem:[%s2647_s1 + $0x118] sm:$0xff]   ;;  %v2006_v57 = vld [vmem:[%s2269_s23 + $0xe4] ss:$28 sps:$4 sm:$0xff]   ;;  %v2014_v58 = vld [vmem:[%s2647_s1 + $0x1a8] sm:$0xff]  }
  0x22   : > { %1739 = vmatpush3.bf16.msra.mxu1 %v1961_v19  ;;  %v2018_v60 = vld [vmem:[%s2647_s1 + $0x150] sm:$0xff]   ;;  %v2010_v61 = vld [vmem:[%s2269_s23 + $0xec] ss:$28 sps:$4 sm:$0xff]   ;;  %v2008_v63 = vld [vmem:[%s2269_s23 + $0xe0] ss:$28 sps:$4 sm:$0xff]  }
  0x23   : > { %1740 = vmatprep.subr.bf16.mxu1 %v1964_v22  ;;  %v2021_v62 = vld [vmem:[%s2647_s1 + $0x110] sm:$0xff]   ;;  %v2025_v0 = vld [vmem:[%s2647_s1 + $0x1a0] sm:$0xff]   ;;  %v2015_v1 = vld [vmem:[%s2269_s23 + $0x11c] ss:$28 sps:$4 sm:$0xff]  }
  0x24   : > { %1677 = vmatpush3.bf16.msra.mxu0 %v1963_v21  ;;  %v2027_v2 = vld [vmem:[%s2647_s1 + $0x148] sm:$0xff]   ;;  %v2019_v4 = vld [vmem:[%s2269_s23 + $0x124] ss:$28 sps:$4 sm:$0xff]   ;;  %v2032_v6 = vld [vmem:[%s2647_s1 + $0x198] sm:$0xff]  }
  0x25   : > { %1678 = vmatprep.subr.bf16.mxu0 %v1966_v24  ;;  %v2013_v3 = vld [vmem:[%s2269_s23 + $0xe8] ss:$28 sps:$4 sm:$0xff]   ;;  %v2017_v7 = vld [vmem:[%s2269_s23 + $0x118] ss:$28 sps:$4 sm:$0xff]   ;;  %v2022_v12 = vld [vmem:[%s2269_s23 + $0x120] ss:$28 sps:$4 sm:$0xff]  }
  0x26   : > { %1741 = vmatpush3.bf16.msra.mxu1 %v1965_v23  ;;  %v2030_v5 = vld [vmem:[%s2647_s1 + $0x108] sm:$0xff]   ;;  %v2036_v8 = vld [vmem:[%s2647_s1 + $0x140] sm:$0xff]   ;;  %v2037_v9 = vld [vmem:[%s2647_s1 + $0x190] sm:$0xff]  }
  0x27   : > { %1742 = vmatprep.subr.bf16.mxu1 %v1968_v26  ;;  %v2023_v10 = vld [vmem:[%s2269_s23 + $0x154] ss:$28 sps:$4 sm:$0xff]   ;;  %v2040_v11 = vld [vmem:[%s2647_s1 + $0x100] sm:$0xff]   ;;  %v2042_v13 = vld [vmem:[%s2647_s1 + $0x188] sm:$0xff]  }
  0x28   : > { %1679 = vmatpush3.bf16.msra.mxu0 %v1967_v25  ;;  %v2028_v14 = vld [vmem:[%s2269_s23 + $0x15c] ss:$28 sps:$4 sm:$0xff]   ;;  %v2046_v15 = vld [vmem:[%s2647_s1 + $0x180] sm:$0xff]   ;;  %v2026_v16 = vld [vmem:[%s2269_s23 + $0x150] ss:$28 sps:$4 sm:$0xff]  }
  0x29   : > { %1680 = vmatprep.subr.bf16.mxu0 %v1970_v28  ;;  %v2033_v17 = vld [vmem:[%s2269_s23 + $0x18c] ss:$28 sps:$4 sm:$0xff]   ;;  %v2031_v18 = vld [vmem:[%s2269_s23 + $0x158] ss:$28 sps:$4 sm:$0xff]   ;;  %v2054_v32 = vld [vmem:[%s2269_s23 + $0x80] ss:$28 sps:$4 sm:$0xff]  }
  0x2a   : > { %1743 = vmatpush3.bf16.msra.mxu1 %v1969_v27  ;;  %v2038_v19 = vld [vmem:[%s2269_s23 + $0x194] ss:$28 sps:$4 sm:$0xff]   ;;  %v2035_v20 = vld [vmem:[%s2269_s23 + $0x188] ss:$28 sps:$4 sm:$0xff]  }
  0x2b   : > { %1744 = vmatprep.subr.bf16.mxu1 %v1972_v30  ;;  %v2045_v21 = vld [vmem:[%s2269_s23 + $0x14] ss:$28 sps:$4 sm:$0xff]   ;;  %v2049_v25 = vld [vmem:[%s2269_s23 + $0x4c] ss:$28 sps:$4 sm:$0xff]   ;;  %v2056_v30 = vld [vmem:[%s2269_s23 + $0xc0] ss:$28 sps:$4 sm:$0xff]  }
  0x2c   : > { %1681 = vmatpush3.bf16.msra.mxu0 %v1971_v29  ;;  %v2041_v22 = vld [vmem:[%s2269_s23 + $0x190] ss:$28 sps:$4 sm:$0xff]   ;;  %v2047_v23 = vld [vmem:[%s2269_s23 + $0x18] ss:$28 sps:$4 sm:$0xff]   ;;  %v2055_v27 = vld [vmem:[%s2269_s23 + $0x88] ss:$28 sps:$4 sm:$0xff]  }
  0x2d   : > { %1794 = vmatprep.subr.bf16.mxu0 %v1977_v34  ;;  %v2043_v24 = vld [vmem:[%s2269_s23 + $0x10] ss:$28 sps:$4 sm:$0xff]   ;;  %v2051_v28 = vld [vmem:[%s2269_s23 + $0x48] ss:$28 sps:$4 sm:$0xff]   ;;  %v2059_v36 = vld [vmem:[%s2269_s23 + $0xb8] ss:$28 sps:$4 sm:$0xff]  }
  0x2e   : > { %1745 = vmatpush3.bf16.msra.mxu1 %v1976_v33  ;;  %v2048_v26 = vld [vmem:[%s2269_s23 + $0x50] ss:$28 sps:$4 sm:$0xff]   ;;  %v2052_v29 = vld [vmem:[%s2269_s23 + $0x84] ss:$28 sps:$4 sm:$0xff]   ;;  %v2057_v33 = vld [vmem:[%s2269_s23 + $0xbc] ss:$28 sps:$4 sm:$0xff]  }
  0x2f   : > { %1055 = vmatmul.mubr.bf16.vlgmr.msra.gmra.mxu0 %v1973_v31  ;;  %1872 = vmatprep.subr.bf16.mxu1 %v2014_v58  ;;  %v2063_v31 = vld [vmem:[%s2269_s23 + $0xf8] ss:$28 sps:$4 sm:$0xff]   ;;  %v2064_v34 = vld [vmem:[%s2269_s23 + $0x130] ss:$28 sps:$4 sm:$0xff]  }
  0x30   : > { %1795 = vmatpush3.bf16.msra.mxu0 %v1981_v37  ;;  %1062 = vmatprep.mubr.bf16.mxu0 %v1982_v38  ;;  %v2060_v37 = vld [vmem:[%s2269_s23 + $0xf4] ss:$28 sps:$4 sm:$0xff]   ;;  %v2072_v38 = vld [vmem:[%s2269_s23 + $0x1a0] ss:$28 sps:$4 sm:$0xff]  }
  0x31   : > { %1152 = vmatmul.mubr.bf16.vlgmr.msra.gmra.mxu1 %v1978_v35  ;;  %1796 = vmatprep.subr.bf16.mxu0 %v1985_v40  ;;  %v2071_v35 = vld [vmem:[%s2269_s23 + $0x168] ss:$28 sps:$4 sm:$0xff]  }
  0x32   : > { %1159 = vmatprep.mubr.bf16.mxu1 %v1986_v41  ;;  %1873 = vmatpush3.bf16.msra.mxu1 %v2014_v58  ;;  %v2065_v40 = vld [vmem:[%s2269_s23 + $0x12c] ss:$28 sps:$4 sm:$0xff]  }
  0x33   : > { %1874 = vmatprep.subr.bf16.mxu1 %v2025_v0  ;;  %v2067_v41 = vld [vmem:[%s2269_s23 + $0x128] ss:$28 sps:$4 sm:$0xff]  }
  0x34   : > { %1797 = vmatpush3.bf16.msra.mxu0 %v1988_v42  ;;  %v2068_v42 = vld [vmem:[%s2269_s23 + $0x164] ss:$28 sps:$4 sm:$0xff]  }
  0x35   : > { %1798 = vmatprep.subr.bf16.mxu0 %v1993_v45  ;;  %v2075_v45 = vld [vmem:[%s2269_s23 + $0x198] ss:$28 sps:$4 sm:$0xff]  }
  0x36   : > { %1875 = vmatpush3.bf16.msra.mxu1 %v2025_v0 }
  0x37   : > { %1063 = vmatmul.mubr.bf16.gmra.mxu0 %v1984_v39  ;;  %1876 = vmatprep.subr.bf16.mxu1 %v2032_v6  ;;  %v2062_v39 = vld [vmem:[%s2269_s23 + $0xf0] ss:$28 sps:$4 sm:$0xff]  }
  0x38   : > { %1070 = vmatprep.mubr.bf16.mxu0 %v1990_v44  ;;  %1799 = vmatpush3.bf16.msra.mxu0 %v1996_v47  ;;  %v2073_v44 = vld [vmem:[%s2269_s23 + $0x19c] ss:$28 sps:$4 sm:$0xff]  }
  0x39   : > { %1160 = vmatmul.mubr.bf16.gmra.mxu1 %v1989_v43  ;;  %1800 = vmatprep.subr.bf16.mxu0 %v2001_v50  ;;  %v2070_v43 = vld [vmem:[%s2269_s23 + $0x160] ss:$28 sps:$4 sm:$0xff]  }
  0x3a   : > { %1167 = vmatprep.mubr.bf16.mxu1 %v1994_v46  ;;  %1877 = vmatpush3.bf16.msra.mxu1 %v2032_v6 }
  0x3b   : > { %1878 = vmatprep.subr.bf16.mxu1 %v2037_v9 }
  0x3c   : > { %1801 = vmatpush3.bf16.msra.mxu0 %v2004_v52 }
  0x3d   : > { %1802 = vmatprep.subr.bf16.mxu0 %v2009_v54 }
  0x3e   : > { %1879 = vmatpush3.bf16.msra.mxu1 %v2037_v9 }
  0x3f   : > { %1071 = vmatmul.mubr.bf16.gmra.mxu0 %v1992_v48  ;;  %1880 = vmatprep.subr.bf16.mxu1 %v2042_v13 }
  0x40   : > { %1078 = vmatprep.mubr.bf16.mxu0 %v1998_v49  ;;  %1803 = vmatpush3.bf16.msra.mxu0 %v2012_v56 }
  0x41   : > { %1168 = vmatmul.mubr.bf16.gmra.mxu1 %v1997_v51  ;;  %1804 = vmatprep.subr.bf16.mxu0 %v2018_v60 }
  0x42   : > { %1175 = vmatprep.mubr.bf16.mxu1 %v2002_v53  ;;  %1881 = vmatpush3.bf16.msra.mxu1 %v2042_v13 }
  0x43   : > { %1882 = vmatprep.subr.bf16.mxu1 %v2046_v15 }
  0x44   : > { %1805 = vmatpush3.bf16.msra.mxu0 %v2021_v62 }
  0x45   : > { %1806 = vmatprep.subr.bf16.mxu0 %v2027_v2 }
  0x46   : > { %1883 = vmatpush3.bf16.msra.mxu1 %v2046_v15 }
  0x47   : > { %1079 = vmatmul.mubr.bf16.gmra.mxu0 %v2000_v55 }
  0x48   : > { %1086 = vmatprep.mubr.bf16.mxu0 %v2006_v57  ;;  %1807 = vmatpush3.bf16.msra.mxu0 %v2030_v5 }
  0x49   : > { %1176 = vmatmul.mubr.bf16.gmra.mxu1 %v2005_v59  ;;  %1808 = vmatprep.subr.bf16.mxu0 %v2036_v8 }
  0x4a   : > { %1183 = vmatprep.mubr.bf16.mxu1 %v2010_v61 }
  0x4c   : > { %1809 = vmatpush3.bf16.msra.mxu0 %v2040_v11 }
  0x4f   : > { %1087 = vmatmul.mubr.bf16.gmra.mxu0 %v2008_v63 }
  0x50   : > { %1094 = vmatprep.mubr.bf16.mxu0 %v2015_v1 }
  0x51   : > { %1184 = vmatmul.mubr.bf16.gmra.mxu1 %v2013_v3 }
  0x52   : > { %1191 = vmatprep.mubr.bf16.mxu1 %v2019_v4 }
  0x57   : > { %1095 = vmatmul.mubr.bf16.gmra.mxu0 %v2017_v7 }
  0x58   : > { %1102 = vmatprep.mubr.bf16.mxu0 %v2023_v10 }
  0x59   : > { %1192 = vmatmul.mubr.bf16.gmra.mxu1 %v2022_v12 }
  0x5a   : > { %1199 = vmatprep.mubr.bf16.mxu1 %v2028_v14 }
  0x5f   : > { %1103 = vmatmul.mubr.bf16.gmra.mxu0 %v2026_v16 }
  0x60   : > { %1110 = vmatprep.mubr.bf16.mxu0 %v2033_v17 }
  0x61   : > { %1200 = vmatmul.mubr.bf16.gmra.mxu1 %v2031_v18 }
  0x62   : > { %1207 = vmatprep.mubr.bf16.mxu1 %v2038_v19 }
  0x67   : > { %1111 = vmatmul.mubr.bf16.gmra.mxu0 %v2035_v20 }
  0x68   : > { %1248 = vmatprep.mubr.bf16.mxu0 %v2045_v21 }
  0x69   : > { %1208 = vmatmul.mubr.bf16.gmra.mxu1 %v2041_v22 }
  0x6a   : > { %1884 = vmatprep.mubr.msk.bf16.mxu1 %vm997_vm0, %v2047_v23 }
  0x6f   : > { %1249 = vmatmul.mubr.bf16.vlgmr.msra.gmra.mxu0 %v2043_v24 }
  0x70   : > { %1256 = vmatprep.mubr.bf16.mxu0 %v2049_v25 }
  0x71   : > { %1885 = vmatmul.mubr.msk.bf16.vlgmr.msra.gmra.mxu1 %vm997_vm0, %v2048_v26 }
  0x72   : > { %1888 = vmatprep.mubr.msk.bf16.mxu1 %vm997_vm0, %v2055_v27 }
  0x77   : > { %1257 = vmatmul.mubr.bf16.gmra.mxu0 %v2051_v28 }
  0x78   : > { %1264 = vmatprep.mubr.bf16.mxu0 %v2052_v29 }
  0x79   : > { %1889 = vmatmul.mubr.msk.bf16.gmra.mxu1 %vm997_vm0, %v2056_v30 }
  0x7a   : > { %1892 = vmatprep.mubr.msk.bf16.mxu1 %vm997_vm0, %v2063_v31 }
  0x7f   : > { %1265 = vmatmul.mubr.bf16.gmra.mxu0 %v2054_v32 }
  0x80   : > { %1272 = vmatprep.mubr.bf16.mxu0 %v2057_v33 }
  0x81   : > { %1893 = vmatmul.mubr.msk.bf16.gmra.mxu1 %vm997_vm0, %v2064_v34 }
  0x82   : > { %1896 = vmatprep.mubr.msk.bf16.mxu1 %vm997_vm0, %v2071_v35 }
  0x87   : > { %1273 = vmatmul.mubr.bf16.gmra.mxu0 %v2059_v36 }
  0x88   : > { %1280 = vmatprep.mubr.bf16.mxu0 %v2060_v37 }
  0x89   : > { %1897 = vmatmul.mubr.msk.bf16.gmra.mxu1 %vm997_vm0, %v2072_v38 }
  0x8f   : > { %1281 = vmatmul.mubr.bf16.gmra.mxu0 %v2062_v39 }
  0x90   : > { %1288 = vmatprep.mubr.bf16.mxu0 %v2065_v40 }
  0x97   : > { %1289 = vmatmul.mubr.bf16.gmra.mxu0 %v2067_v41 }
  0x98   : > { %1296 = vmatprep.mubr.bf16.mxu0 %v2068_v42  ;;  %v2521_v42 = vld [vmem:[%s2648_s2] ss:$0 sm:$0xff] }
  0x9f   : > { %1297 = vmatmul.mubr.bf16.gmra.mxu0 %v2070_v43 }
  0xa0   : > { %1304 = vmatprep.mubr.bf16.mxu0 %v2073_v44 }
  0xa7   : > { %1305 = vmatmul.mubr.bf16.gmra.mxu0 %v2075_v45 }
  0xef   : > { %v1682_v46 = vpop.f32.mrf.mxu0 }
  0xf1   : > { %v1683_v47 = vpop.f32.mrf.mxu0  ;;  %v2410_v48 = vpop.f32.mrf.mxu1 }
  0xf2   : > { %v1684_v40 = vadd.f32 %v1683_v47, %v1682_v46 }
  0xf3   : > { %v2412_v49 = vpop.f32.mrf.mxu0  ;;  %v1747_v50 = vpop.f32.mrf.mxu1 }
  0xf5   : > { %v1686_v51 = vpop.f32.mrf.mxu0  ;;  %v2414_v52 = vpop.f32.mrf.mxu1 }
  0xf7   : > { %v2416_v53 = vpop.f32.mrf.mxu0  ;;  %v2418_v54 = vpop.f32.mrf.mxu1 }
  0xf9   : > { %v1689_v55 = vpop.f32.mrf.mxu0  ;;  %v2420_v56 = vpop.f32.mrf.mxu1 }
  0xfb   : > { %v2422_v57 = vpop.f32.mrf.mxu0  ;;  %v2424_v58 = vpop.f32.mrf.mxu1 }
  0xfd   : > { %v2426_v59 = vpop.f32.mrf.mxu0  ;;  %v2428_v60 = vpop.f32.mrf.mxu1 }
  0xff   : > { %v2430_v61 = vpop.f32.mrf.mxu0  ;;  %v2432_v62 = vpop.f32.mrf.mxu1 }
 0x101   : > { %v2434_v63 = vpop.f32.mrf.mxu0  ;;  %v2436_v0 = vpop.f32.mrf.mxu1 }
 0x103   : > { %v2438_v1 = vpop.f32.mrf.mxu0  ;;  %v2440_v2 = vpop.f32.mrf.mxu1 }
 0x105   : > { %v2442_v3 = vpop.f32.mrf.mxu0  ;;  %v2444_v4 = vpop.f32.mrf.mxu1 }
 0x107   : > { %v2446_v5 = vpop.f32.mrf.mxu0  ;;  %v2448_v6 = vpop.f32.mrf.mxu1 }
 0x109   : > { %v2450_v7 = vpop.f32.mrf.mxu0  ;;  %v2452_v8 = vpop.f32.mrf.mxu1 }
 0x10b   : > { %v2454_v9 = vpop.f32.mrf.mxu0  ;;  %v2456_v10 = vpop.f32.mrf.mxu1 }
 0x10d   : > { %v2458_v11 = vpop.f32.mrf.mxu0  ;;  %v2460_v12 = vpop.f32.mrf.mxu1 }
 0x10f   : > { %v2462_v13 = vpop.f32.mrf.mxu0  ;;  %v2464_v14 = vpop.f32.mrf.mxu1 }
 0x111   : > { %v2466_v15 = vpop.f32.mrf.mxu0  ;;  %v2468_v16 = vpop.f32.mrf.mxu1 }
 0x113   : > { %v2470_v17 = vpop.f32.mrf.mxu0  ;;  %v2472_v18 = vpop.f32.mrf.mxu1 }
 0x115   : > { %v2474_v19 = vpop.f32.mrf.mxu0  ;;  %v2476_v20 = vpop.f32.mrf.mxu1 }
 0x117   : > { %v2478_v21 = vpop.f32.mrf.mxu0  ;;  %v2480_v22 = vpop.f32.mrf.mxu1 }
 0x119   : > { %v2482_v23 = vpop.f32.mrf.mxu0  ;;  %v2484_v24 = vpop.f32.mrf.mxu1 }
 0x11b   : > { %v2486_v25 = vpop.f32.mrf.mxu0  ;;  %v2488_v26 = vpop.f32.mrf.mxu1 }
 0x11d   : > { %v2490_v27 = vpop.f32.mrf.mxu0  ;;  %v2492_v28 = vpop.f32.mrf.mxu1 }
 0x11f   : > { %v2494_v29 = vpop.f32.mrf.mxu0  ;;  %v2496_v30 = vpop.f32.mrf.mxu1 }
 0x121   : > { %v2498_v31 = vpop.f32.mrf.mxu0  ;;  %v2500_v32 = vpop.f32.mrf.mxu1 }
 0x123   : > { %v2502_v33 = vpop.f32.mrf.mxu0  ;;  %v2504_v34 = vpop.f32.mrf.mxu1 }
 0x124   : > { %2650 = vst [vmem:[#allocation2_spill] sm:$0xff] %v2502_v33 }
 0x125   : > { %v2506_v35 = vpop.f32.mrf.mxu0  ;;  %v2508_v36 = vpop.f32.mrf.mxu1 }
 0x126   : > { %2651 = vst [vmem:[#allocation3_spill] sm:$0xff] %v2506_v35  ;;  %2652 = vst [vmem:[#allocation4_spill] sm:$0xff] %v2508_v36  ;;  %v1057_v36 = vadd.f32 %v1684_v40, %v2521_v42  ;;  %v1751_v40 = vadd.f32 %v2418_v54, %v2414_v52 }
 0x127   : > { %v2510_v37 = vpop.f32.mrf.mxu0  ;;  %v2512_v38 = vpop.f32.mrf.mxu1 }
 0x128   : > { %2653 = vst [vmem:[#allocation5_spill] sm:$0xff] %v2510_v37  ;;  %2654 = vst [vmem:[#allocation6_spill] sm:$0xff] %v2512_v38  ;;  %v1748_v38 = vadd.f32 %v1747_v50, %v2410_v48  ;;  %v1690_v37 = vadd.f32 %v1689_v55, %v2416_v53 }
 0x129   : > { %v2514_v39 = vpop.f32.mrf.mxu0  ;;  %v2516_v41 = vpop.f32.mrf.mxu1 }
 0x12a   : > { %2655 = vst [vmem:[#allocation7_spill] sm:$0xff] %v2514_v39  ;;  %2656 = vst [vmem:[#allocation8_spill] sm:$0xff] %v2516_v41  ;;  %v1687_v39 = vadd.f32 %v1686_v51, %v2412_v49 }
 0x12b   : > { %v2523_v43 = vpop.f32.mrf.mxu0  ;;  %v2525_v44 = vpop.f32.mrf.mxu1 }
 0x12c   : > { %2657 = vst [vmem:[#allocation9_spill] sm:$0xff] %v2523_v43  ;;  %2658 = vst [vmem:[#allocation10_spill] sm:$0xff] %v2525_v44  ;;  %v1154_v43 = vadd.f32 %v1748_v38, %v1057_v36  ;;  %v1060_v44 = vadd.f32 %v1687_v39, %v2521_v42  ;;  %v1693_v36 = vadd.f32 %v2426_v59, %v2422_v57 }
 0x12d   : > { %v2527_v45 = vpop.f32.mrf.mxu0  ;;  %v2532_v46 = vpop.f32.mrf.mxu1  ;;  %v1757_v59 = vadd.f32 %v2432_v62, %v2428_v60 }
 0x12e   : > { %2659 = vst [vmem:[#allocation11_spill] sm:$0xff] %v2527_v45  ;;  %2660 = vst [vmem:[#allocation12_spill] sm:$0xff] %v2532_v46  ;;  %v1065_v46 = vadd.f32 %v1690_v37, %v2521_v42  ;;  %v1157_v55 = vadd.f32 %v1751_v40, %v1060_v44  ;;  %v1068_v57 = vadd.f32 %v1693_v36, %v2521_v42 }
 0x12f   : > { %v1810_v47 = vpop.f32.mrf.mxu0  ;;  %v2535_v41 = vpop.f32.mrf.mxu1 }
 0x130   : > { %2661 = vst [vmem:[#allocation13_spill] sm:$0xff] %v2535_v41  ;;  %v1754_v41 = vadd.f32 %v2424_v58, %v2420_v56  ;;  %v1696_v56 = vadd.f32 %v2434_v63, %v2430_v61  ;;  %v1165_v63 = vadd.f32 %v1757_v59, %v1068_v57  ;;  %v1705_v57 = vadd.f32 %v2458_v11, %v2454_v9 }
 0x131   : > { %v1811_v35 = vpop.f32.mrf.mxu0  ;;  %v1886_v48 = vpop.f32.mrf.mxu1 }
 0x132   : > { %v1812_v45 = vadd.f32 %v1811_v35, %v1810_v47 }
 0x133   : > { %v1813_v50 = vpop.f32.mrf.mxu0  ;;  %v1347_v51 = vpop.f32.mrf.mxu1 }
 0x134   : > { %v1251_v49 = vadd.f32 %v1812_v45, %v1154_v43  ;;  %v1162_v43 = vadd.f32 %v1754_v41, %v1065_v46  ;;  %v1760_v41 = vadd.f32 %v2440_v2, %v2436_v0  ;;  %v1699_v46 = vadd.f32 %v2442_v3, %v2438_v1 }
 0x135   : > { %v1814_v53 = vpop.f32.mrf.mxu0  ;;  %v1887_v33 = vpop.f32.mrf.mxu1  ;;  %v1763_v2 = vadd.f32 %v2448_v6, %v2444_v4 }
 0x136   : > { %v1815_v38 = vadd.f32 %v1814_v53, %v1813_v50  ;;  %v1348_v39 = vadd.f32 %v1347_v51, %v1251_v49  ;;  %v1073_v51 = vadd.f32 %v1696_v56, %v2521_v42  ;;  %v1076_v0 = vadd.f32 %v1699_v46, %v2521_v42 }
 0x137   : > { %v1816_v52 = vpop.f32.mrf.mxu0  ;;  %v1350_v37 = vpop.f32.mrf.mxu1 }
 0x138   : > { %v1410_v54 = vmax.f32 %v1348_v39, 0.0  ;;  %v1254_v35 = vadd.f32 %v1815_v38, %v1157_v55  ;;  %v1170_v39 = vadd.f32 %v1760_v41, %v1073_v51 }
 0x139   : > { %v1817_v58 = vpop.f32.mrf.mxu0  ;;  %v1890_v40 = vpop.f32.mrf.mxu1 }
 0x13a   : > { %1426 = vst [vmem:[%s2550_s21] sm:$0xff] %v1410_v54  ;;  %v1818_v44 = vadd.f32 %v1817_v58, %v1816_v52  ;;  %v1351_v45 = vadd.f32 %v1350_v37, %v1254_v35  ;;  %v1702_v52 = vadd.f32 %v2450_v7, %v2446_v5  ;;  %v1766_v58 = vadd.f32 %v2456_v10, %v2452_v8 }
 0x13b   : > { %v1819_v47 = vpop.f32.mrf.mxu0  ;;  %v1363_v55 = vpop.f32.mrf.mxu1  ;;  %v1173_v7 = vadd.f32 %v1763_v2, %v1076_v0  ;;  %v1084_v8 = vadd.f32 %v1705_v57, %v2521_v42  ;;  %v1769_v10 = vadd.f32 %v2464_v14, %v2460_v12 }
 0x13c   : > { %v1259_v50 = vadd.f32 %v1818_v44, %v1162_v43  ;;  %v1411_v49 = vmax.f32 %v1351_v45, 0.0  ;;  %v1081_v56 = vadd.f32 %v1702_v52, %v2521_v42  ;;  %v1714_v52 = vadd.f32 %v2482_v23, %v2478_v21 }
 0x13d   : > { %v1820_v61 = vpop.f32.mrf.mxu0  ;;  %v1891_v35 = vpop.f32.mrf.mxu1 }
 0x13e   : > { %v1356_v53 = vadd.f32 %v1886_v48, %v1259_v50  ;;  %1427 = vst [vmem:[%s2550_s21 + $0x8] sm:$0xff] %v1411_v49  ;;  %v1821_v60 = vadd.f32 %v1820_v61, %v1819_v47  ;;  %v1178_v47 = vadd.f32 %v1766_v58, %v1081_v56  ;;  %v1708_v50 = vadd.f32 %v2466_v15, %v2462_v13 }
 0x13f   : > { %v1822_v62 = vpop.f32.mrf.mxu0  ;;  %v1366_v59 = vpop.f32.mrf.mxu1  ;;  %v1181_v15 = vadd.f32 %v1769_v10, %v1084_v8 }
 0x140   : > { %v1412_v36 = vmax.f32 %v1356_v53, 0.0  ;;  %v1262_v38 = vadd.f32 %v1821_v60, %v1165_v63  ;;  %v1089_v46 = vadd.f32 %v1708_v50, %v2521_v42  ;;  %v1772_v53 = vadd.f32 %v2472_v18, %v2468_v16  ;;  %v2663_v50 = vld [vmem:[#allocation3_spill] sm:$0xff] }
 0x141   : > { %v1823_v54 = vpop.f32.mrf.mxu0  ;;  %v1894_v41 = vpop.f32.mrf.mxu1  ;;  %v1711_v60 = vadd.f32 %v2474_v19, %v2470_v17  ;;  %v1775_v18 = vadd.f32 %v2480_v22, %v2476_v20 }
 0x142   : > { %1428 = vst [vmem:[%s2550_s21 + $0x10] sm:$0xff] %v1412_v36  ;;  %v1359_v1 = vadd.f32 %v1887_v33, %v1262_v38  ;;  %v1824_v3 = vadd.f32 %v1823_v54, %v1822_v62 }
 0x143   : > { %v1825_v48 = vpop.f32.mrf.mxu0  ;;  %v1092_v16 = vadd.f32 %v1711_v60, %v2521_v42 }
 0x144   : > { %v1413_v37 = vmax.f32 %v1359_v1, 0.0  ;;  %v1267_v43 = vadd.f32 %v1824_v3, %v1170_v39  ;;  %v1186_v39 = vadd.f32 %v1772_v53, %v1089_v46  ;;  %v1097_v3 = vadd.f32 %v1714_v52, %v2521_v42 }
 0x145   : > { %v1826_v5 = vpop.f32.mrf.mxu0  ;;  %v1189_v23 = vadd.f32 %v1775_v18, %v1092_v16  ;;  %v2670_v18 = vld [vmem:[#allocation9_spill] sm:$0xff] }
 0x146   : > { %1429 = vst [vmem:[%s2550_s21 + $0x18] sm:$0xff] %v1413_v37  ;;  %v1827_v4 = vadd.f32 %v1826_v5, %v1825_v48  ;;  %v1364_v6 = vadd.f32 %v1363_v55, %v1267_v43  ;;  %v1379_v55 = vpop.f32.mrf.mxu1  ;;  %v1778_v48 = vadd.f32 %v2488_v26, %v2484_v24  ;;  %v1717_v37 = vadd.f32 %v2490_v27, %v2486_v25 }
 0x147   : > { %v1828_v33 = vpop.f32.mrf.mxu0  ;;  %v1781_v26 = vadd.f32 %v2496_v30, %v2492_v28 }
 0x148   : > { %v1414_v44 = vmax.f32 %v1364_v6, 0.0  ;;  %v1270_v45 = vadd.f32 %v1827_v4, %v1173_v7  ;;  %v1895_v0 = vpop.f32.mrf.mxu1  ;;  %v1194_v5 = vadd.f32 %v1778_v48, %v1097_v3  ;;  %v1720_v7 = vadd.f32 %v2498_v31, %v2494_v29 }
 0x149   : > { %v1829_v49 = vpop.f32.mrf.mxu0  ;;  %v1100_v24 = vadd.f32 %v1717_v37, %v2521_v42 }
 0x14a   : > { %1430 = vst [vmem:[%s2550_s21 + $0x20] sm:$0xff] %v1414_v44  ;;  %v1830_v9 = vadd.f32 %v1829_v49, %v1828_v33  ;;  %v1367_v11 = vadd.f32 %v1366_v59, %v1270_v45  ;;  %v1382_v43 = vpop.f32.mrf.mxu1  ;;  %v1105_v44 = vadd.f32 %v1720_v7, %v2521_v42  ;;  %v1784_v45 = vadd.f32 %v2504_v34, %v2500_v32  ;;  %v2666_v34 = vld [vmem:[#allocation4_spill] sm:$0xff] }
 0x14b   : > { %v1831_v51 = vpop.f32.mrf.mxu0  ;;  %v1197_v31 = vadd.f32 %v1781_v26, %v1100_v24 }
 0x14c   : > { %v1275_v61 = vadd.f32 %v1830_v9, %v1178_v47  ;;  %v1415_v63 = vmax.f32 %v1367_v11, 0.0  ;;  %v1898_v6 = vpop.f32.mrf.mxu1  ;;  %v2662_v47 = vld [vmem:[#allocation2_spill] sm:$0xff] }
 0x14d   : > { %v1832_v13 = vpop.f32.mrf.mxu0  ;;  %v1723_v49 = vadd.f32 %v2663_v50, %v2662_v47 }
 0x14e   : > { %v1372_v62 = vadd.f32 %v1890_v40, %v1275_v61  ;;  %1431 = vst [vmem:[%s2550_s21 + $0x28] sm:$0xff] %v1415_v63  ;;  %v1833_v12 = vadd.f32 %v1832_v13, %v1831_v51  ;;  %v1395_v10 = vpop.f32.mrf.mxu1  ;;  %v1202_v51 = vadd.f32 %v1784_v45, %v1105_v44  ;;  %v2664_v61 = vld [vmem:[#allocation5_spill] sm:$0xff]  ;;  %v2665_v63 = vld [vmem:[#allocation7_spill] sm:$0xff]  ;;  %v2667_v13 = vld [vmem:[#allocation6_spill] sm:$0xff] }
 0x14f   : > { %v1834_v14 = vpop.f32.mrf.mxu0  ;;  %v1726_v46 = vadd.f32 %v2665_v63, %v2664_v61  ;;  %v1108_v32 = vadd.f32 %v1723_v49, %v2521_v42 }
 0x150   : > { %v1416_v36 = vmax.f32 %v1372_v62, 0.0  ;;  %v1278_v38 = vadd.f32 %v1833_v12, %v1181_v15  ;;  %v1787_v15 = vadd.f32 %v2667_v13, %v2666_v34  ;;  %v1899_v12 = vpop.f32.mrf.mxu1 }
 0x151   : > { %v1835_v54 = vpop.f32.mrf.mxu0 }
 0x152   : > { %1432 = vst [vmem:[%s2550_s21 + $0x30] sm:$0xff] %v1416_v36  ;;  %v1375_v17 = vadd.f32 %v1891_v35, %v1278_v38  ;;  %v1836_v19 = vadd.f32 %v1835_v54, %v1834_v14  ;;  %v1113_v36 = vadd.f32 %v1726_v46, %v2521_v42  ;;  %v2668_v38 = vld [vmem:[#allocation8_spill] sm:$0xff]  ;;  %v1205_v16 = vadd.f32 %v1787_v15, %v1108_v32 }
 0x153   : > { %v1837_v40 = vpop.f32.mrf.mxu0 }
 0x154   : > { %v1417_v2 = vmax.f32 %v1375_v17, 0.0  ;;  %v1283_v1 = vadd.f32 %v1836_v19, %v1186_v39  ;;  %v2669_v39 = vld [vmem:[#allocation10_spill] sm:$0xff]  ;;  %v2671_v17 = vld [vmem:[#allocation11_spill] sm:$0xff] }
 0x155   : > { %v1838_v21 = vpop.f32.mrf.mxu0  ;;  %v1790_v52 = vadd.f32 %v2669_v39, %v2668_v38  ;;  %v1729_v19 = vadd.f32 %v2671_v17, %v2670_v18 }
 0x156   : > { %1433 = vst [vmem:[%s2550_s21 + $0x38] sm:$0xff] %v1417_v2  ;;  %v1839_v20 = vadd.f32 %v1838_v21, %v1837_v40  ;;  %v1380_v22 = vadd.f32 %v1379_v55, %v1283_v1  ;;  %v1398_v1 = vpop.f32.mrf.mxu1 }
 0x157   : > { %v1840_v35 = vpop.f32.mrf.mxu0  ;;  %v1210_v21 = vadd.f32 %v1790_v52, %v1113_v36  ;;  %v1116_v37 = vadd.f32 %v1729_v19, %v2521_v42 }
 0x158   : > { %v1418_v56 = vmax.f32 %v1380_v22, 0.0  ;;  %v1286_v58 = vadd.f32 %v1839_v20, %v1189_v23  ;;  %v2672_v20 = vld [vmem:[#allocation12_spill] sm:$0xff]  ;;  %v2673_v22 = vld [vmem:[#allocation13_spill] sm:$0xff] }
 0x159   : > { %v1841_v57 = vpop.f32.mrf.mxu0 }
 0x15a   : > { %1434 = vst [vmem:[%s2550_s21 + $0x40] sm:$0xff] %v1418_v56  ;;  %v1842_v25 = vadd.f32 %v1841_v57, %v1840_v35  ;;  %v1383_v27 = vadd.f32 %v1382_v43, %v1286_v58  ;;  %v1793_v35 = vadd.f32 %v2673_v22, %v2672_v20 }
 0x15b   : > { %v1843_v4 = vpop.f32.mrf.mxu0 }
 0x15c   : > { %v1291_v33 = vadd.f32 %v1842_v25, %v1194_v5  ;;  %v1419_v59 = vmax.f32 %v1383_v27, 0.0  ;;  %v1213_v24 = vadd.f32 %v1793_v35, %v1116_v37 }
 0x15d   : > { %v1844_v29 = vpop.f32.mrf.mxu0 }
 0x15e   : > { %v1388_v8 = vadd.f32 %v1894_v41, %v1291_v33  ;;  %1435 = vst [vmem:[%s2550_s21 + $0x48] sm:$0xff] %v1419_v59  ;;  %v1845_v28 = vadd.f32 %v1844_v29, %v1843_v4 }
 0x15f   : > { %v1846_v30 = vpop.f32.mrf.mxu0 }
 0x160   : > { %v1420_v9 = vmax.f32 %v1388_v8, 0.0  ;;  %v1294_v11 = vadd.f32 %v1845_v28, %v1197_v31 }
 0x161   : > { %v1847_v53 = vpop.f32.mrf.mxu0 }
 0x162   : > { %1436 = vst [vmem:[%s2550_s21 + $0x50] sm:$0xff] %v1420_v9  ;;  %v1391_v60 = vadd.f32 %v1895_v0, %v1294_v11  ;;  %v1848_v41 = vadd.f32 %v1847_v53, %v1846_v30 }
 0x163   : > { %v1849_v62 = vpop.f32.mrf.mxu0 }
 0x164   : > { %v1421_v14 = vmax.f32 %v1391_v60, 0.0  ;;  %v1299_v55 = vadd.f32 %v1848_v41, %v1202_v51 }
 0x165   : > { %v1850_v54 = vpop.f32.mrf.mxu0 }
 0x166   : > { %1437 = vst [vmem:[%s2550_s21 + $0x58] sm:$0xff] %v1421_v14  ;;  %v1851_v40 = vadd.f32 %v1850_v54, %v1849_v62  ;;  %v1396_v2 = vadd.f32 %v1395_v10, %v1299_v55 }
 0x167   : > { %v1852_v0 = vpop.f32.mrf.mxu0 }
 0x168   : > { %v1422_v3 = vmax.f32 %v1396_v2, 0.0  ;;  %v1302_v48 = vadd.f32 %v1851_v40, %v1205_v16 }
 0x169   : > { %v1853_v23 = vpop.f32.mrf.mxu0 }
 0x16a   : > { %1438 = vst [vmem:[%s2550_s21 + $0x60] sm:$0xff] %v1422_v3  ;;  %v1854_v43 = vadd.f32 %v1853_v23, %v1852_v0  ;;  %v1399_v56 = vadd.f32 %v1398_v1, %v1302_v48 }
 0x16b   : > { %v1855_v58 = vpop.f32.mrf.mxu0 }
 0x16c   : > { %v1307_v5 = vadd.f32 %v1854_v43, %v1210_v21  ;;  %v1423_v7 = vmax.f32 %v1399_v56, 0.0 }
 0x16d   : > { %v1856_v57 = vpop.f32.mrf.mxu0 }
 0x16e   : > { %v1404_v26 = vadd.f32 %v1898_v6, %v1307_v5  ;;  %1439 = vst [vmem:[%s2550_s21 + $0x68] sm:$0xff] %v1423_v7  ;;  %v1857_v25 = vadd.f32 %v1856_v57, %v1855_v58 }
 0x170   : > { %v1424_v27 = vmax.f32 %v1404_v26, 0.0  ;;  %v1310_v4 = vadd.f32 %v1857_v25, %v1213_v24 }
 0x172   : > { %1440 = vst [vmem:[%s2550_s21 + $0x70] sm:$0xff] %v1424_v27  ;;  %v1407_v33 = vadd.f32 %v1899_v12, %v1310_v4 }
 0x174   : > { %v1425_v42 = vmax.f32 %v1407_v33, 0.0 }
 0x176   : > { %1441 = vst [vmem:[%s2550_s21 + $0x78] sm:$0xff] %v1425_v42 }
 0x177 PF: > { %s13_s16 = sadd.s32 1, %s2114_s16   ;;  %s2674_s12 = smov %s2106_s14 }
 0x178   : > { %p10_p7 = scmp.ge.s32.totalorder %s13_s16, 6   ;;  %s2675_s13 = smov %s2110_s15 }
 0x179   : > { %s2676_s14 = smov %s2679_s17  ;;  %s2677_s15 = smov %s2683_s18 }
 0x17a   :  { %12 = sbr.rel (!%p10_p7) target bundleno = 3 (0x3), region = 62 }

</bundles_post_ra>
